<compile_context>
chip_gen: v6e
topology: v6e:2x2x1
jax: 0.10.0
libtpu: 0.0.40
codegen_flags: <defaults>
</compile_context>

<pallas_src>
import jax
import jax.numpy as jnp
from jax import lax
from jax.experimental import pallas as pl
from jax.experimental.pallas import tpu as pltpu


def _round_up(x, m):
    return (x + m - 1) // m * m


# ----------------------------------------------------------------------------
# Pallas kernels
# ----------------------------------------------------------------------------
def make_lstm_rec_kernel(T, H, G):
    """Recurrence-only single-layer LSTM, zero initial state, PyTorch gate
    order (i, f, g, o) packed into G = round_up(4*H, 128) lanes.

    pg_ref  : (T, Bb, G) f32   pre-gates (x @ W_ih^T + b_ih + b_hh), time-major
    whh_ref : (Kp, G)    bf16  W_hh^T, gate-packed columns, rows padded to Kp
    out_ref : (Bb, T*H)  bf16  per-sequence concat over time of hidden states
    h_ref   : (Bb, Kp)   f32 scratch  hidden state (lanes >= H stay zero)
    c_ref   : (Bb, H)    f32 scratch  cell state
    """

    def kernel(pg_ref, whh_ref, out_ref, h_ref, c_ref):
        # Packed-gate activation constants (loop invariant, hoisted):
        #   sigmoid(x) = 0.5*tanh(0.5*x) + 0.5 on i/f/o lanes, tanh(x) on g lanes.
        lane = lax.broadcasted_iota(jnp.int32, (1, G), 1)
        is_g = jnp.logical_and(lane >= 2 * H, lane < 3 * H)
        pre = jnp.where(is_g, 1.0, 0.5).astype(jnp.float32)   # pre & post scale
        off = jnp.where(is_g, 0.0, 0.5).astype(jnp.float32)   # post offset

        h_ref[...] = jnp.zeros_like(h_ref)
        c_ref[...] = jnp.zeros_like(c_ref)

        for t in range(T):  # short char/word sequences: fully static unroll
            gates = pg_ref[t] + jnp.dot(
                h_ref[...].astype(whh_ref.dtype), whh_ref[...],
                preferred_element_type=jnp.float32)            # (Bb, G) f32
            # One EUP tanh for all four gates.
            act = jnp.tanh(gates * pre) * pre + off
            i_g = act[:, 0 * H:1 * H]
            f_g = act[:, 1 * H:2 * H]
            g_g = act[:, 2 * H:3 * H]
            o_g = act[:, 3 * H:4 * H]
            c_new = f_g * c_ref[...] + i_g * g_g
            h_new = o_g * jnp.tanh(c_new)
            c_ref[...] = c_new
            h_ref[:, 0:H] = h_new                              # pad lanes stay 0
            out_ref[:, t * H:(t + 1) * H] = h_new.astype(out_ref.dtype)

    return kernel


def linear_kernel(x_ref, w_ref, b_ref, o_ref):
    """o = x @ w + b  (w pre-transposed, output columns padded lane-dense)."""
    o_ref[...] = (
        jnp.dot(x_ref[...], w_ref[...], preferred_element_type=jnp.float32)
        + b_ref[...]
    )


# ----------------------------------------------------------------------------
# Wrappers
# ----------------------------------------------------------------------------
_VMEM_SPEC = pl.BlockSpec(memory_space=pltpu.MemorySpace.VMEM)


def linear_pallas(x, w_t, b_row):
    """x: (M, K), w_t: (K, Gp) with Gp % 128 == 0, b_row: (1, Gp) f32.
    Returns (round_up(M, 8), Gp) f32.  Used only for small matmuls (pre-gate
    table, high-layer input projection, classifier) that fit whole in VMEM."""
    M, _ = x.shape
    Gp = w_t.shape[1]
    Mp = _round_up(M, 8)
    x_p = jnp.pad(x, ((0, Mp - M), (0, 0)))
    return pl.pallas_call(
        linear_kernel,
        out_shape=jax.ShapeDtypeStruct((Mp, Gp), jnp.float32),
        in_specs=[_VMEM_SPEC, _VMEM_SPEC, _VMEM_SPEC],
        out_specs=_VMEM_SPEC,
    )(x_p, w_t, b_row)


def _pick_batch_block(N, T, G, H, Kp):
    """Sequence-block rows: multiple of 16 (bf16 output tiling), <=256, sized
    from a ~12 MiB working-set budget (double-buffered pg/out blocks + state),
    and capped at ceil(N/2) when N >= 32 so v7x gets >= 2 parallel blocks."""
    per_row = 2 * T * G * 4 + 2 * T * H * 2 + (Kp + H) * 4
    blk = (12 * 2**20) // max(per_row, 1)
    blk = max(16, min(256, blk // 16 * 16))
    if N >= 32:
        blk = min(blk, _round_up((N + 1) // 2, 16))
    return int(min(blk, _round_up(N, 16)))


def lstm_recurrence(pg_tm, w_hh, H, out_dtype=jnp.bfloat16):
    """pg_tm: (T, N, G) f32 packed pre-gates, time-major; w_hh: (4H, H) torch.
    Returns (N, T*H) out_dtype: per-sequence concat over time of h_t."""
    T, N, G = pg_tm.shape
    Kp = _round_up(H, 128)   # pad the recurrent contraction dim (MXU-depth safe)

    whh_p = jnp.pad(jnp.transpose(w_hh).astype(jnp.float32),
                    ((0, Kp - H), (0, G - 4 * H))).astype(jnp.bfloat16)

    Bb = _pick_batch_block(N, T, G, H, Kp)
    Np = _round_up(N, Bb)
    n_blocks = Np // Bb
    pg_p = jnp.pad(pg_tm, ((0, 0), (0, Np - N), (0, 0)))

    est = (2 * T * Bb * G * 4        # pg blocks, f32, double-buffered
           + 2 * Bb * T * H * 2      # out blocks, bf16, double-buffered
           + Kp * G * 2              # W_hh, bf16
           + Bb * (Kp + H) * 4)      # h / c state
    vmem_limit = int(min(max(2 * est, 8 * 2**20), 32 * 2**20))

    out = pl.pallas_call(
        make_lstm_rec_kernel(T, H, G),
        out_shape=jax.ShapeDtypeStruct((Np, T * H), out_dtype),
        grid_spec=pltpu.PrefetchScalarGridSpec(
            num_scalar_prefetch=0,
            grid=(n_blocks,),
            in_specs=[
                pl.BlockSpec((T, Bb, G), lambda b: (0, b, 0)),
                pl.BlockSpec((Kp, G), lambda b: (0, 0)),
            ],
            out_specs=pl.BlockSpec((Bb, T * H), lambda b: (b, 0)),
            scratch_shapes=[
                pltpu.VMEM((Bb, Kp), jnp.float32),   # h state
                pltpu.VMEM((Bb, H), jnp.float32),    # c state
            ],
        ),
        compiler_params=pltpu.CompilerParams(
            dimension_semantics=("parallel",),
            vmem_limit_bytes=vmem_limit),
    )(pg_p, whh_p)
    return out[:N]


def hier_rnn_forward(params, x_idx):
    """Mirror of HierRNN.forward (use_highway=False, use_high_highway=False).
    Note: like the PyTorch module, the LSTMs run over every (padded) position
    -- no pack_padded_sequence semantics."""
    batch, S, W = x_idx.shape
    emb = params["embedding"]                      # (vocab, E) f32
    Hl = params["low_w_hh"].shape[1]
    Hh = params["high_w_hh"].shape[1]
    Gl = _round_up(4 * Hl, 128)
    Gh = _round_up(4 * Hh, 128)

    # ---- low LSTM: per-vocab pre-gate table, gathered per character --------
    wih_l = jnp.pad(jnp.transpose(params["low_w_ih"]).astype(jnp.float32),
                    ((0, 0), (0, Gl - 4 * Hl)))                        # (E, Gl)
    b_l = jnp.pad((params["low_b_ih"] + params["low_b_hh"]).astype(jnp.float32),
                  (0, Gl - 4 * Hl)).reshape(1, Gl)
    pg_table = linear_pallas(emb.astype(jnp.float32), wih_l, b_l)      # (vocab_p, Gl) f32

    # gather pre-gates directly in time-major order (W, batch*S, Gl)
    idx_tm = jnp.transpose(x_idx.reshape(batch * S, W))                # (W, batch*S)
    pg_low = jnp.take(pg_table, idx_tm, axis=0)                        # (W, batch*S, Gl)

    # every word starts from a fresh zero state -> all batch*S words batched
    low_out = lstm_recurrence(pg_low, params["low_w_hh"], Hl)          # (batch*S, W*Hl) bf16

    # ---- high LSTM: input projection of word features -> packed pre-gates --
    wih_h = jnp.pad(jnp.transpose(params["high_w_ih"]).astype(jnp.float32),
                    ((0, 0), (0, Gh - 4 * Hh))).astype(jnp.bfloat16)   # (W*Hl, Gh)
    b_h = jnp.pad((params["high_b_ih"] + params["high_b_hh"]).astype(jnp.float32),
                  (0, Gh - 4 * Hh)).reshape(1, Gh)
    pg_high_flat = linear_pallas(low_out, wih_h, b_h)[:batch * S]      # (batch*S, Gh) f32
    pg_high = jnp.transpose(pg_high_flat.reshape(batch, S, Gh), (1, 0, 2))  # (S, batch, Gh)

    high_out = lstm_recurrence(pg_high, params["high_w_hh"], Hh)       # (batch, S*Hh) bf16

    # ---- classifier ---------------------------------------------------------
    C = params["out_w"].shape[0]
    Cp = _round_up(C, 128)
    w_o = jnp.pad(jnp.transpose(params["out_w"]).astype(jnp.float32),
                  ((0, 0), (0, Cp - C))).astype(jnp.bfloat16)          # (S*Hh, Cp)
    b_o = jnp.pad(params["out_b"].astype(jnp.float32), (0, Cp - C)).reshape(1, Cp)
    logits = linear_pallas(high_out, w_o, b_o)                         # (batch_p, Cp) f32
    return logits[:batch, :C]


# ----------------------------------------------------------------------------
# Pure-JAX f32 reference (correctness check)
# ----------------------------------------------------------------------------
def _ref_lstm(x_bte, w_ih, w_hh, b_ih, b_hh):
    B, T, E = x_bte.shape
    H = w_hh.shape[1]

    def step(carry, x_t):
        h, c = carry
        gates = x_t @ w_ih.T + h @ w_hh.T + b_ih + b_hh
        i_g = jax.nn.sigmoid(gates[:, 0 * H:1 * H])
        f_g = jax.nn.sigmoid(gates[:, 1 * H:2 * H])
        g_g = jnp.tanh(gates[:, 2 * H:3 * H])
        o_g = jax.nn.sigmoid(gates[:, 3 * H:4 * H])
        c = f_g * c + i_g * g_g
        h = o_g * jnp.tanh(c)
        return (h, c), h

    init = (jnp.zeros((B, H)), jnp.zeros((B, H)))
    _, hs = lax.scan(step, init, jnp.transpose(x_bte, (1, 0, 2)))
    return jnp.transpose(hs, (1, 0, 2))


def _ref_forward(params, x_idx):
    batch, S, W = x_idx.shape
    Hl = params["low_w_hh"].shape[1]
    Hh = params["high_w_hh"].shape[1]
    emb = jnp.take(params["embedding"], x_idx.reshape(-1), axis=0)
    emb = emb.reshape(batch * S, W, -1)
    low = _ref_lstm(emb, params["low_w_ih"], params["low_w_hh"],
                    params["low_b_ih"], params["low_b_hh"])
    sent = low.reshape(batch, S, W * Hl)
    high = _ref_lstm(sent, params["high_w_ih"], params["high_w_hh"],
                     params["high_b_ih"], params["high_b_hh"])
    return high.reshape(batch, S * Hh) @ params["out_w"].T + params["out_b"]


# ----------------------------------------------------------------------------
# Deterministic parameter init (PyTorch-style uniform(-1/sqrt(H), 1/sqrt(H)))
# ----------------------------------------------------------------------------
def init_params(key, vocab_size, embedding_dim, low_hidden, high_hidden,
                num_classes, max_word_length, max_sen_length):
    keys = jax.random.split(key, 12)

    def u(k, shape, scale):
        return jax.random.uniform(k, shape, jnp.float32, -scale, scale)

    sl = 1.0 / jnp.sqrt(low_hidden)
    sh = 1.0 / jnp.sqrt(high_hidden)
    so = 1.0 / jnp.sqrt(high_hidden * max_sen_length)
    return {
        "embedding": jax.random.normal(keys[0], (vocab_size, embedding_dim), jnp.float32),
        "low_w_ih": u(keys[1], (4 * low_hidden, embedding_dim), sl),
        "low_w_hh": u(keys[2], (4 * low_hidden, low_hidden), sl),
        "low_b_ih": u(keys[3], (4 * low_hidden,), sl),
        "low_b_hh": u(keys[4], (4 * low_hidden,), sl),
        "high_w_ih": u(keys[5], (4 * high_hidden, low_hidden * max_word_length), sh),
        "high_w_hh": u(keys[6], (4 * high_hidden, high_hidden), sh),
        "high_b_ih": u(keys[7], (4 * high_hidden,), sh),
        "high_b_hh": u(keys[8], (4 * high_hidden,), sh),
        "out_w": u(keys[9], (num_classes, high_hidden * max_sen_length), so),
        "out_b": u(keys[10], (num_classes,), so),
    }


# ----------------------------------------------------------------------------
if __name__ == "__main__":
    # Small shapes consistent with the module (word/sentence lengths shrunk).
    vocab_size = 50
    embedding_dim = 16
    low_hidden = 8
    high_hidden = 32
    num_classes = 6
    max_word_length = 8
    max_sen_length = 4
    batch = 2

    key = jax.random.PRNGKey(0)
    pkey, xkey = jax.random.split(key)
    params = init_params(pkey, vocab_size, embedding_dim, low_hidden, high_hidden,
                         num_classes, max_word_length, max_sen_length)

    x = jax.random.randint(xkey, (batch, max_sen_length, max_word_length),
                           0, vocab_size, dtype=jnp.int32)

    out = jax.jit(hier_rnn_forward)(params, x)
    out = jax.block_until_ready(out)

    ref = _ref_forward(params, x)
    assert out.shape == (batch, num_classes)
    # bf16 matmul operands with f32 accumulation: tightened tolerance vs the
    # previous 1e-1 (per review); observed error is O(1e-3).
    assert jnp.allclose(out, ref, atol=2e-2, rtol=2e-2), "Pallas output mismatch"

    print("KERNEL_OK")
</pallas_src>

<mosaic_0001>
module attributes {stable_mosaic.version = 11 : i64} {
  func.func @linear_kernel(%arg0: memref<8x64xbf16, #tpu.memory_space<vmem>>, %arg1: memref<64x128xbf16, #tpu.memory_space<vmem>>, %arg2: memref<1x128xf32, #tpu.memory_space<vmem>>, %arg3: memref<8x128xf32, #tpu.memory_space<vmem>>) attributes {dimension_semantics = [], scalar_prefetch = 0 : i64, scratch_operands = 0 : i64, tpu.core_type = #tpu.core_type<tc>} {
    %c0 = arith.constant 0 : index
    %c0_0 = arith.constant 0 : index
    %0 = vector.load %arg0[%c0, %c0_0] : memref<8x64xbf16, #tpu.memory_space<vmem>>, vector<8x64xbf16>
    %c0_1 = arith.constant 0 : index
    %c0_2 = arith.constant 0 : index
    %1 = vector.load %arg1[%c0_1, %c0_2] : memref<64x128xbf16, #tpu.memory_space<vmem>>, vector<64x128xbf16>
    %cst = arith.constant dense<0.000000e+00> : vector<8x128xf32>
    %2 = tpu.matmul %0, %1, %cst {dimension_numbers = #tpu.dot_dimension_numbers<[1], [0], [0], [1], [0, 0, 1, 1], [], []>} : vector<8x64xbf16>, vector<64x128xbf16>, vector<8x128xf32> -> vector<8x128xf32>
    %c0_3 = arith.constant 0 : index
    %c0_4 = arith.constant 0 : index
    %3 = vector.load %arg2[%c0_3, %c0_4] : memref<1x128xf32, #tpu.memory_space<vmem>>, vector<1x128xf32>
    %4 = vector.broadcast %3 : vector<1x128xf32> to vector<8x128xf32>
    %5 = arith.addf %2, %4 : vector<8x128xf32>
    %c0_5 = arith.constant 0 : index
    %c0_6 = arith.constant 0 : index
    %6 = vector.load %arg3[%c0_5, %c0_6] : memref<8x128xf32, #tpu.memory_space<vmem>>, vector<8x128xf32>
    tpu.vector_store %arg3[%c0_5, %c0_6], %5 {strides = array<i32>} : memref<8x128xf32, #tpu.memory_space<vmem>>, vector<8x128xf32>,
    return
  }
}

module attributes {stable_mosaic.version = 11 : i64} {
  func.func @linear_kernel(%arg0: memref<56x16xf32, #tpu.memory_space<vmem>>, %arg1: memref<16x128xf32, #tpu.memory_space<vmem>>, %arg2: memref<1x128xf32, #tpu.memory_space<vmem>>, %arg3: memref<56x128xf32, #tpu.memory_space<vmem>>) attributes {dimension_semantics = [], scalar_prefetch = 0 : i64, scratch_operands = 0 : i64, tpu.core_type = #tpu.core_type<tc>} {
    %c0 = arith.constant 0 : index
    %c0_0 = arith.constant 0 : index
    %0 = vector.load %arg0[%c0, %c0_0] : memref<56x16xf32, #tpu.memory_space<vmem>>, vector<56x16xf32>
    %c0_1 = arith.constant 0 : index
    %c0_2 = arith.constant 0 : index
    %1 = vector.load %arg1[%c0_1, %c0_2] : memref<16x128xf32, #tpu.memory_space<vmem>>, vector<16x128xf32>
    %cst = arith.constant dense<0.000000e+00> : vector<56x128xf32>
    %2 = tpu.matmul %0, %1, %cst {dimension_numbers = #tpu.dot_dimension_numbers<[1], [0], [0], [1], [0, 0, 1, 1], [], []>} : vector<56x16xf32>, vector<16x128xf32>, vector<56x128xf32> -> vector<56x128xf32>
    %c0_3 = arith.constant 0 : index
    %c0_4 = arith.constant 0 : index
    %3 = vector.load %arg2[%c0_3, %c0_4] : memref<1x128xf32, #tpu.memory_space<vmem>>, vector<1x128xf32>
    %4 = vector.broadcast %3 : vector<1x128xf32> to vector<56x128xf32>
    %5 = arith.addf %2, %4 : vector<56x128xf32>
    %c0_5 = arith.constant 0 : index
    %c0_6 = arith.constant 0 : index
    %6 = vector.load %arg3[%c0_5, %c0_6] : memref<56x128xf32, #tpu.memory_space<vmem>>, vector<56x128xf32>
    tpu.vector_store %arg3[%c0_5, %c0_6], %5 {strides = array<i32>} : memref<56x128xf32, #tpu.memory_space<vmem>>, vector<56x128xf32>,
    return
  }
}

module attributes {stable_mosaic.version = 11 : i64} {
  func.func @kernel(%arg0: i32, %arg1: memref<8x16x128xf32, #tpu.memory_space<vmem>>, %arg2: memref<128x128xbf16, #tpu.memory_space<vmem>>, %arg3: memref<16x64xbf16, #tpu.memory_space<vmem>>, %arg4: memref<16x128xf32, #tpu.memory_space<vmem>>, %arg5: memref<16x8xf32, #tpu.memory_space<vmem>>) attributes {dimension_semantics = [#tpu.dimension_semantics<parallel>], iteration_bounds = array<i64: 1>, scalar_prefetch = 0 : i64, scratch_operands = 2 : i64, tpu.core_type = #tpu.core_type<tc>, window_params = [{transform_indices = @transform_0, window_bounds = array<i64: 8, 16, 128>}, {pipeline_mode = #tpu.pipeline_mode<synchronous>, transform_indices = @transform_1, window_bounds = array<i64: 128, 128>}, {transform_indices = @transform_2, window_bounds = array<i64: 16, 64>}]} {
    %0 = tpu.iota {dimensions = array<i32: 1>} : vector<1x128xi32>
    %c16_i32 = arith.constant 16 : i32
    %1 = vector.broadcast %c16_i32 : i32 to vector<1x128xi32>
    %2 = arith.cmpi sge, %0, %1 : vector<1x128xi32>
    %c24_i32 = arith.constant 24 : i32
    %3 = vector.broadcast %c24_i32 : i32 to vector<1x128xi32>
    %4 = arith.cmpi slt, %0, %3 : vector<1x128xi32>
    %5 = arith.andi %2, %4 : vector<1x128xi1>
    %cst = arith.constant 1.000000e+00 : f32
    %cst_0 = arith.constant 5.000000e-01 : f32
    %6 = vector.broadcast %cst : f32 to vector<1x128xf32>
    %7 = vector.broadcast %cst_0 : f32 to vector<1x128xf32>
    %8 = arith.select %5, %6, %7 : vector<1x128xi1>, vector<1x128xf32>
    %cst_1 = arith.constant 0.000000e+00 : f32
    %cst_2 = arith.constant 5.000000e-01 : f32
    %9 = vector.broadcast %cst_1 : f32 to vector<1x128xf32>
    %10 = vector.broadcast %cst_2 : f32 to vector<1x128xf32>
    %11 = arith.select %5, %9, %10 : vector<1x128xi1>, vector<1x128xf32>
    %cst_3 = arith.constant 0.000000e+00 : f32
    %12 = vector.broadcast %cst_3 : f32 to vector<16x128xf32>
    %c0 = arith.constant 0 : index
    %c0_4 = arith.constant 0 : index
    %13 = vector.load %arg4[%c0, %c0_4] : memref<16x128xf32, #tpu.memory_space<vmem>>, vector<16x128xf32>
    tpu.vector_store %arg4[%c0, %c0_4], %12 {strides = array<i32>} : memref<16x128xf32, #tpu.memory_space<vmem>>, vector<16x128xf32>,
    %cst_5 = arith.constant 0.000000e+00 : f32
    %14 = vector.broadcast %cst_5 : f32 to vector<16x8xf32>
    %c0_6 = arith.constant 0 : index
    %c0_7 = arith.constant 0 : index
    %15 = vector.load %arg5[%c0_6, %c0_7] : memref<16x8xf32, #tpu.memory_space<vmem>>, vector<16x8xf32>
    tpu.vector_store %arg5[%c0_6, %c0_7], %14 {strides = array<i32>} : memref<16x8xf32, #tpu.memory_space<vmem>>, vector<16x8xf32>,
    %c0_8 = arith.constant 0 : index
    %c0_9 = arith.constant 0 : index
    %c0_10 = arith.constant 0 : index
    %16 = vector.load %arg1[%c0_8, %c0_9, %c0_10] : memref<8x16x128xf32, #tpu.memory_space<vmem>>, vector<1x16x128xf32>
    %17 = vector.shape_cast %16 : vector<1x16x128xf32> to vector<16x128xf32>
    %c0_11 = arith.constant 0 : index
    %c0_12 = arith.constant 0 : index
    %18 = vector.load %arg4[%c0_11, %c0_12] : memref<16x128xf32, #tpu.memory_space<vmem>>, vector<16x128xf32>
    %19 = arith.truncf %18 : vector<16x128xf32> to vector<16x128xbf16>
    %c0_13 = arith.constant 0 : index
    %c0_14 = arith.constant 0 : index
    %20 = vector.load %arg2[%c0_13, %c0_14] : memref<128x128xbf16, #tpu.memory_space<vmem>>, vector<128x128xbf16>
    %cst_15 = arith.constant dense<0.000000e+00> : vector<16x128xf32>
    %21 = tpu.matmul %19, %20, %cst_15 {dimension_numbers = #tpu.dot_dimension_numbers<[1], [0], [0], [1], [0, 0, 1, 1], [], []>} : vector<16x128xbf16>, vector<128x128xbf16>, vector<16x128xf32> -> vector<16x128xf32>
    %22 = arith.addf %17, %21 : vector<16x128xf32>
    %23 = vector.broadcast %8 : vector<1x128xf32> to vector<16x128xf32>
    %24 = arith.mulf %22, %23 : vector<16x128xf32>
    %25 = math.tanh %24 : vector<16x128xf32>
    %26 = vector.broadcast %8 : vector<1x128xf32> to vector<16x128xf32>
    %27 = arith.mulf %25, %26 : vector<16x128xf32>
    %28 = vector.broadcast %11 : vector<1x128xf32> to vector<16x128xf32>
    %29 = arith.addf %27, %28 : vector<16x128xf32>
    %30 = vector.extract_strided_slice %29 {offsets = [0, 0], sizes = [16, 8], strides = [1, 1]} : vector<16x128xf32> to vector<16x8xf32>
    %31 = vector.extract_strided_slice %29 {offsets = [0, 8], sizes = [16, 8], strides = [1, 1]} : vector<16x128xf32> to vector<16x8xf32>
    %32 = vector.extract_strided_slice %29 {offsets = [0, 16], sizes = [16, 8], strides = [1, 1]} : vector<16x128xf32> to vector<16x8xf32>
    %33 = vector.extract_strided_slice %29 {offsets = [0, 24], sizes = [16, 8], strides = [1, 1]} : vector<16x128xf32> to vector<16x8xf32>
    %c0_16 = arith.constant 0 : index
    %c0_17 = arith.constant 0 : index
    %34 = vector.load %arg5[%c0_16, %c0_17] : memref<16x8xf32, #tpu.memory_space<vmem>>, vector<16x8xf32>
    %35 = arith.mulf %31, %34 : vector<16x8xf32>
    %36 = arith.mulf %30, %32 : vector<16x8xf32>
    %37 = arith.addf %35, %36 : vector<16x8xf32>
    %38 = math.tanh %37 : vector<16x8xf32>
    %39 = arith.mulf %33, %38 : vector<16x8xf32>
    %c0_18 = arith.constant 0 : index
    %c0_19 = arith.constant 0 : index
    %40 = vector.load %arg5[%c0_18, %c0_19] : memref<16x8xf32, #tpu.memory_space<vmem>>, vector<16x8xf32>
    tpu.vector_store %arg5[%c0_18, %c0_19], %37 {strides = array<i32>} : memref<16x8xf32, #tpu.memory_space<vmem>>, vector<16x8xf32>,
    %c0_20 = arith.constant 0 : index
    %c0_21 = arith.constant 0 : index
    %41 = vector.load %arg4[%c0_20, %c0_21] : memref<16x128xf32, #tpu.memory_space<vmem>>, vector<16x8xf32>
    tpu.vector_store %arg4[%c0_20, %c0_21], %39 {strides = array<i32>} : memref<16x128xf32, #tpu.memory_space<vmem>>, vector<16x8xf32>,
    %42 = arith.truncf %39 : vector<16x8xf32> to vector<16x8xbf16>
    %c0_22 = arith.constant 0 : index
    %c0_23 = arith.constant 0 : index
    %43 = vector.load %arg3[%c0_22, %c0_23] : memref<16x64xbf16, #tpu.memory_space<vmem>>, vector<16x8xbf16>
    tpu.vector_store %arg3[%c0_22, %c0_23], %42 {strides = array<i32>} : memref<16x64xbf16, #tpu.memory_space<vmem>>, vector<16x8xbf16>,
    %c1 = arith.constant 1 : index
    %c0_24 = arith.constant 0 : index
    %c0_25 = arith.constant 0 : index
    %44 = vector.load %arg1[%c1, %c0_24, %c0_25] : memref<8x16x128xf32, #tpu.memory_space<vmem>>, vector<1x16x128xf32>
    %45 = vector.shape_cast %44 : vector<1x16x128xf32> to vector<16x128xf32>
    %c0_26 = arith.constant 0 : index
    %c0_27 = arith.constant 0 : index
    %46 = vector.load %arg4[%c0_26, %c0_27] : memref<16x128xf32, #tpu.memory_space<vmem>>, vector<16x128xf32>
    %47 = arith.truncf %46 : vector<16x128xf32> to vector<16x128xbf16>
    %c0_28 = arith.constant 0 : index
    %c0_29 = arith.constant 0 : index
    %48 = vector.load %arg2[%c0_28, %c0_29] : memref<128x128xbf16, #tpu.memory_space<vmem>>, vector<128x128xbf16>
    %cst_30 = arith.constant dense<0.000000e+00> : vector<16x128xf32>
    %49 = tpu.matmul %47, %48, %cst_30 {dimension_numbers = #tpu.dot_dimension_numbers<[1], [0], [0], [1], [0, 0, 1, 1], [], []>} : vector<16x128xbf16>, vector<128x128xbf16>, vector<16x128xf32> -> vector<16x128xf32>
    %50 = arith.addf %45, %49 : vector<16x128xf32>
    %51 = vector.broadcast %8 : vector<1x128xf32> to vector<16x128xf32>
    %52 = arith.mulf %50, %51 : vector<16x128xf32>
    %53 = math.tanh %52 : vector<16x128xf32>
    %54 = vector.broadcast %8 : vector<1x128xf32> to vector<16x128xf32>
    %55 = arith.mulf %53, %54 : vector<16x128xf32>
    %56 = vector.broadcast %11 : vector<1x128xf32> to vector<16x128xf32>
    %57 = arith.addf %55, %56 : vector<16x128xf32>
    %58 = vector.extract_strided_slice %57 {offsets = [0, 0], sizes = [16, 8], strides = [1, 1]} : vector<16x128xf32> to vector<16x8xf32>
    %59 = vector.extract_strided_slice %57 {offsets = [0, 8], sizes = [16, 8], strides = [1, 1]} : vector<16x128xf32> to vector<16x8xf32>
    %60 = vector.extract_strided_slice %57 {offsets = [0, 16], sizes = [16, 8], strides = [1, 1]} : vector<16x128xf32> to vector<16x8xf32>
    %61 = vector.extract_strided_slice %57 {offsets = [0, 24], sizes = [16, 8], strides = [1, 1]} : vector<16x128xf32> to vector<16x8xf32>
    %c0_31 = arith.constant 0 : index
    %c0_32 = arith.constant 0 : index
    %62 = vector.load %arg5[%c0_31, %c0_32] : memref<16x8xf32, #tpu.memory_space<vmem>>, vector<16x8xf32>
    %63 = arith.mulf %59, %62 : vector<16x8xf32>
    %64 = arith.mulf %58, %60 : vector<16x8xf32>
    %65 = arith.addf %63, %64 : vector<16x8xf32>
    %66 = math.tanh %65 : vector<16x8xf32>
    %67 = arith.mulf %61, %66 : vector<16x8xf32>
    %c0_33 = arith.constant 0 : index
    %c0_34 = arith.constant 0 : index
    %68 = vector.load %arg5[%c0_33, %c0_34] : memref<16x8xf32, #tpu.memory_space<vmem>>, vector<16x8xf32>
    tpu.vector_store %arg5[%c0_33, %c0_34], %65 {strides = array<i32>} : memref<16x8xf32, #tpu.memory_space<vmem>>, vector<16x8xf32>,
    %c0_35 = arith.constant 0 : index
    %c0_36 = arith.constant 0 : index
    %69 = vector.load %arg4[%c0_35, %c0_36] : memref<16x128xf32, #tpu.memory_space<vmem>>, vector<16x8xf32>
    tpu.vector_store %arg4[%c0_35, %c0_36], %67 {strides = array<i32>} : memref<16x128xf32, #tpu.memory_space<vmem>>, vector<16x8xf32>,
    %70 = arith.truncf %67 : vector<16x8xf32> to vector<16x8xbf16>
    %c0_37 = arith.constant 0 : index
    %c8 = arith.constant 8 : index
    %71 = vector.load %arg3[%c0_37, %c8] : memref<16x64xbf16, #tpu.memory_space<vmem>>, vector<16x8xbf16>
    tpu.vector_store %arg3[%c0_37, %c8], %70 {strides = array<i32>} : memref<16x64xbf16, #tpu.memory_space<vmem>>, vector<16x8xbf16>,
    %c2 = arith.constant 2 : index
    %c0_38 = arith.constant 0 : index
    %c0_39 = arith.constant 0 : index
    %72 = vector.load %arg1[%c2, %c0_38, %c0_39] : memref<8x16x128xf32, #tpu.memory_space<vmem>>, vector<1x16x128xf32>
    %73 = vector.shape_cast %72 : vector<1x16x128xf32> to vector<16x128xf32>
    %c0_40 = arith.constant 0 : index
    %c0_41 = arith.constant 0 : index
    %74 = vector.load %arg4[%c0_40, %c0_41] : memref<16x128xf32, #tpu.memory_space<vmem>>, vector<16x128xf32>
    %75 = arith.truncf %74 : vector<16x128xf32> to vector<16x128xbf16>
    %c0_42 = arith.constant 0 : index
    %c0_43 = arith.constant 0 : index
    %76 = vector.load %arg2[%c0_42, %c0_43] : memref<128x128xbf16, #tpu.memory_space<vmem>>, vector<128x128xbf16>
    %cst_44 = arith.constant dense<0.000000e+00> : vector<16x128xf32>
    %77 = tpu.matmul %75, %76, %cst_44 {dimension_numbers = #tpu.dot_dimension_numbers<[1], [0], [0], [1], [0, 0, 1, 1], [], []>} : vector<16x128xbf16>, vector<128x128xbf16>, vector<16x128xf32> -> vector<16x128xf32>
    %78 = arith.addf %73, %77 : vector<16x128xf32>
    %79 = vector.broadcast %8 : vector<1x128xf32> to vector<16x128xf32>
    %80 = arith.mulf %78, %79 : vector<16x128xf32>
    %81 = math.tanh %80 : vector<16x128xf32>
    %82 = vector.broadcast %8 : vector<1x128xf32> to vector<16x128xf32>
    %83 = arith.mulf %81, %82 : vector<16x128xf32>
    %84 = vector.broadcast %11 : vector<1x128xf32> to vector<16x128xf32>
    %85 = arith.addf %83, %84 : vector<16x128xf32>
    %86 = vector.extract_strided_slice %85 {offsets = [0, 0], sizes = [16, 8], strides = [1, 1]} : vector<16x128xf32> to vector<16x8xf32>
    %87 = vector.extract_strided_slice %85 {offsets = [0, 8], sizes = [16, 8], strides = [1, 1]} : vector<16x128xf32> to vector<16x8xf32>
    %88 = vector.extract_strided_slice %85 {offsets = [0, 16], sizes = [16, 8], strides = [1, 1]} : vector<16x128xf32> to vector<16x8xf32>
    %89 = vector.extract_strided_slice %85 {offsets = [0, 24], sizes = [16, 8], strides = [1, 1]} : vector<16x128xf32> to vector<16x8xf32>
    %c0_45 = arith.constant 0 : index
    %c0_46 = arith.constant 0 : index
    %90 = vector.load %arg5[%c0_45, %c0_46] : memref<16x8xf32, #tpu.memory_space<vmem>>, vector<16x8xf32>
    %91 = arith.mulf %87, %90 : vector<16x8xf32>
    %92 = arith.mulf %86, %88 : vector<16x8xf32>
    %93 = arith.addf %91, %92 : vector<16x8xf32>
    %94 = math.tanh %93 : vector<16x8xf32>
    %95 = arith.mulf %89, %94 : vector<16x8xf32>
    %c0_47 = arith.constant 0 : index
    %c0_48 = arith.constant 0 : index
    %96 = vector.load %arg5[%c0_47, %c0_48] : memref<16x8xf32, #tpu.memory_space<vmem>>, vector<16x8xf32>
    tpu.vector_store %arg5[%c0_47, %c0_48], %93 {strides = array<i32>} : memref<16x8xf32, #tpu.memory_space<vmem>>, vector<16x8xf32>,
    %c0_49 = arith.constant 0 : index
    %c0_50 = arith.constant 0 : index
    %97 = vector.load %arg4[%c0_49, %c0_50] : memref<16x128xf32, #tpu.memory_space<vmem>>, vector<16x8xf32>
    tpu.vector_store %arg4[%c0_49, %c0_50], %95 {strides = array<i32>} : memref<16x128xf32, #tpu.memory_space<vmem>>, vector<16x8xf32>,
    %98 = arith.truncf %95 : vector<16x8xf32> to vector<16x8xbf16>
    %c0_51 = arith.constant 0 : index
    %c16 = arith.constant 16 : index
    %99 = vector.load %arg3[%c0_51, %c16] : memref<16x64xbf16, #tpu.memory_space<vmem>>, vector<16x8xbf16>
    tpu.vector_store %arg3[%c0_51, %c16], %98 {strides = array<i32>} : memref<16x64xbf16, #tpu.memory_space<vmem>>, vector<16x8xbf16>,
    %c3 = arith.constant 3 : index
    %c0_52 = arith.constant 0 : index
    %c0_53 = arith.constant 0 : index
    %100 = vector.load %arg1[%c3, %c0_52, %c0_53] : memref<8x16x128xf32, #tpu.memory_space<vmem>>, vector<1x16x128xf32>
    %101 = vector.shape_cast %100 : vector<1x16x128xf32> to vector<16x128xf32>
    %c0_54 = arith.constant 0 : index
    %c0_55 = arith.constant 0 : index
    %102 = vector.load %arg4[%c0_54, %c0_55] : memref<16x128xf32, #tpu.memory_space<vmem>>, vector<16x128xf32>
    %103 = arith.truncf %102 : vector<16x128xf32> to vector<16x128xbf16>
    %c0_56 = arith.constant 0 : index
    %c0_57 = arith.constant 0 : index
    %104 = vector.load %arg2[%c0_56, %c0_57] : memref<128x128xbf16, #tpu.memory_space<vmem>>, vector<128x128xbf16>
    %cst_58 = arith.constant dense<0.000000e+00> : vector<16x128xf32>
    %105 = tpu.matmul %103, %104, %cst_58 {dimension_numbers = #tpu.dot_dimension_numbers<[1], [0], [0], [1], [0, 0, 1, 1], [], []>} : vector<16x128xbf16>, vector<128x128xbf16>, vector<16x128xf32> -> vector<16x128xf32>
    %106 = arith.addf %101, %105 : vector<16x128xf32>
    %107 = vector.broadcast %8 : vector<1x128xf32> to vector<16x128xf32>
    %108 = arith.mulf %106, %107 : vector<16x128xf32>
    %109 = math.tanh %108 : vector<16x128xf32>
    %110 = vector.broadcast %8 : vector<1x128xf32> to vector<16x128xf32>
    %111 = arith.mulf %109, %110 : vector<16x128xf32>
    %112 = vector.broadcast %11 : vector<1x128xf32> to vector<16x128xf32>
    %113 = arith.addf %111, %112 : vector<16x128xf32>
    %114 = vector.extract_strided_slice %113 {offsets = [0, 0], sizes = [16, 8], strides = [1, 1]} : vector<16x128xf32> to vector<16x8xf32>
    %115 = vector.extract_strided_slice %113 {offsets = [0, 8], sizes = [16, 8], strides = [1, 1]} : vector<16x128xf32> to vector<16x8xf32>
    %116 = vector.extract_strided_slice %113 {offsets = [0, 16], sizes = [16, 8], strides = [1, 1]} : vector<16x128xf32> to vector<16x8xf32>
    %117 = vector.extract_strided_slice %113 {offsets = [0, 24], sizes = [16, 8], strides = [1, 1]} : vector<16x128xf32> to vector<16x8xf32>
    %c0_59 = arith.constant 0 : index
    %c0_60 = arith.constant 0 : index
    %118 = vector.load %arg5[%c0_59, %c0_60] : memref<16x8xf32, #tpu.memory_space<vmem>>, vector<16x8xf32>
    %119 = arith.mulf %115, %118 : vector<16x8xf32>
    %120 = arith.mulf %114, %116 : vector<16x8xf32>
    %121 = arith.addf %119, %120 : vector<16x8xf32>
    %122 = math.tanh %121 : vector<16x8xf32>
    %123 = arith.mulf %117, %122 : vector<16x8xf32>
    %c0_61 = arith.constant 0 : index
    %c0_62 = arith.constant 0 : index
    %124 = vector.load %arg5[%c0_61, %c0_62] : memref<16x8xf32, #tpu.memory_space<vmem>>, vector<16x8xf32>
    tpu.vector_store %arg5[%c0_61, %c0_62], %121 {strides = array<i32>} : memref<16x8xf32, #tpu.memory_space<vmem>>, vector<16x8xf32>,
    %c0_63 = arith.constant 0 : index
    %c0_64 = arith.constant 0 : index
    %125 = vector.load %arg4[%c0_63, %c0_64] : memref<16x128xf32, #tpu.memory_space<vmem>>, vector<16x8xf32>
    tpu.vector_store %arg4[%c0_63, %c0_64], %123 {strides = array<i32>} : memref<16x128xf32, #tpu.memory_space<vmem>>, vector<16x8xf32>,
    %126 = arith.truncf %123 : vector<16x8xf32> to vector<16x8xbf16>
    %c0_65 = arith.constant 0 : index
    %c24 = arith.constant 24 : index
    %127 = vector.load %arg3[%c0_65, %c24] : memref<16x64xbf16, #tpu.memory_space<vmem>>, vector<16x8xbf16>
    tpu.vector_store %arg3[%c0_65, %c24], %126 {strides = array<i32>} : memref<16x64xbf16, #tpu.memory_space<vmem>>, vector<16x8xbf16>,
    %c4 = arith.constant 4 : index
    %c0_66 = arith.constant 0 : index
    %c0_67 = arith.constant 0 : index
    %128 = vector.load %arg1[%c4, %c0_66, %c0_67] : memref<8x16x128xf32, #tpu.memory_space<vmem>>, vector<1x16x128xf32>
    %129 = vector.shape_cast %128 : vector<1x16x128xf32> to vector<16x128xf32>
    %c0_68 = arith.constant 0 : index
    %c0_69 = arith.constant 0 : index
    %130 = vector.load %arg4[%c0_68, %c0_69] : memref<16x128xf32, #tpu.memory_space<vmem>>, vector<16x128xf32>
    %131 = arith.truncf %130 : vector<16x128xf32> to vector<16x128xbf16>
    %c0_70 = arith.constant 0 : index
    %c0_71 = arith.constant 0 : index
    %132 = vector.load %arg2[%c0_70, %c0_71] : memref<128x128xbf16, #tpu.memory_space<vmem>>, vector<128x128xbf16>
    %cst_72 = arith.constant dense<0.000000e+00> : vector<16x128xf32>
    %133 = tpu.matmul %131, %132, %cst_72 {dimension_numbers = #tpu.dot_dimension_numbers<[1], [0], [0], [1], [0, 0, 1, 1], [], []>} : vector<16x128xbf16>, vector<128x128xbf16>, vector<16x128xf32> -> vector<16x128xf32>
    %134 = arith.addf %129, %133 : vector<16x128xf32>
    %135 = vector.broadcast %8 : vector<1x128xf32> to vector<16x128xf32>
    %136 = arith.mulf %134, %135 : vector<16x128xf32>
    %137 = math.tanh %136 : vector<16x128xf32>
    %138 = vector.broadcast %8 : vector<1x128xf32> to vector<16x128xf32>
    %139 = arith.mulf %137, %138 : vector<16x128xf32>
    %140 = vector.broadcast %11 : vector<1x128xf32> to vector<16x128xf32>
    %141 = arith.addf %139, %140 : vector<16x128xf32>
    %142 = vector.extract_strided_slice %141 {offsets = [0, 0], sizes = [16, 8], strides = [1, 1]} : vector<16x128xf32> to vector<16x8xf32>
    %143 = vector.extract_strided_slice %141 {offsets = [0, 8], sizes = [16, 8], strides = [1, 1]} : vector<16x128xf32> to vector<16x8xf32>
    %144 = vector.extract_strided_slice %141 {offsets = [0, 16], sizes = [16, 8], strides = [1, 1]} : vector<16x128xf32> to vector<16x8xf32>
    %145 = vector.extract_strided_slice %141 {offsets = [0, 24], sizes = [16, 8], strides = [1, 1]} : vector<16x128xf32> to vector<16x8xf32>
    %c0_73 = arith.constant 0 : index
    %c0_74 = arith.constant 0 : index
    %146 = vector.load %arg5[%c0_73, %c0_74] : memref<16x8xf32, #tpu.memory_space<vmem>>, vector<16x8xf32>
    %147 = arith.mulf %143, %146 : vector<16x8xf32>
    %148 = arith.mulf %142, %144 : vector<16x8xf32>
    %149 = arith.addf %147, %148 : vector<16x8xf32>
    %150 = math.tanh %149 : vector<16x8xf32>
    %151 = arith.mulf %145, %150 : vector<16x8xf32>
    %c0_75 = arith.constant 0 : index
    %c0_76 = arith.constant 0 : index
    %152 = vector.load %arg5[%c0_75, %c0_76] : memref<16x8xf32, #tpu.memory_space<vmem>>, vector<16x8xf32>
    tpu.vector_store %arg5[%c0_75, %c0_76], %149 {strides = array<i32>} : memref<16x8xf32, #tpu.memory_space<vmem>>, vector<16x8xf32>,
    %c0_77 = arith.constant 0 : index
    %c0_78 = arith.constant 0 : index
    %153 = vector.load %arg4[%c0_77, %c0_78] : memref<16x128xf32, #tpu.memory_space<vmem>>, vector<16x8xf32>
    tpu.vector_store %arg4[%c0_77, %c0_78], %151 {strides = array<i32>} : memref<16x128xf32, #tpu.memory_space<vmem>>, vector<16x8xf32>,
    %154 = arith.truncf %151 : vector<16x8xf32> to vector<16x8xbf16>
    %c0_79 = arith.constant 0 : index
    %c32 = arith.constant 32 : index
    %155 = vector.load %arg3[%c0_79, %c32] : memref<16x64xbf16, #tpu.memory_space<vmem>>, vector<16x8xbf16>
    tpu.vector_store %arg3[%c0_79, %c32], %154 {strides = array<i32>} : memref<16x64xbf16, #tpu.memory_space<vmem>>, vector<16x8xbf16>,
    %c5 = arith.constant 5 : index
    %c0_80 = arith.constant 0 : index
    %c0_81 = arith.constant 0 : index
    %156 = vector.load %arg1[%c5, %c0_80, %c0_81] : memref<8x16x128xf32, #tpu.memory_space<vmem>>, vector<1x16x128xf32>
    %157 = vector.shape_cast %156 : vector<1x16x128xf32> to vector<16x128xf32>
    %c0_82 = arith.constant 0 : index
    %c0_83 = arith.constant 0 : index
    %158 = vector.load %arg4[%c0_82, %c0_83] : memref<16x128xf32, #tpu.memory_space<vmem>>, vector<16x128xf32>
    %159 = arith.truncf %158 : vector<16x128xf32> to vector<16x128xbf16>
    %c0_84 = arith.constant 0 : index
    %c0_85 = arith.constant 0 : index
    %160 = vector.load %arg2[%c0_84, %c0_85] : memref<128x128xbf16, #tpu.memory_space<vmem>>, vector<128x128xbf16>
    %cst_86 = arith.constant dense<0.000000e+00> : vector<16x128xf32>
    %161 = tpu.matmul %159, %160, %cst_86 {dimension_numbers = #tpu.dot_dimension_numbers<[1], [0], [0], [1], [0, 0, 1, 1], [], []>} : vector<16x128xbf16>, vector<128x128xbf16>, vector<16x128xf32> -> vector<16x128xf32>
    %162 = arith.addf %157, %161 : vector<16x128xf32>
    %163 = vector.broadcast %8 : vector<1x128xf32> to vector<16x128xf32>
    %164 = arith.mulf %162, %163 : vector<16x128xf32>
    %165 = math.tanh %164 : vector<16x128xf32>
    %166 = vector.broadcast %8 : vector<1x128xf32> to vector<16x128xf32>
    %167 = arith.mulf %165, %166 : vector<16x128xf32>
    %168 = vector.broadcast %11 : vector<1x128xf32> to vector<16x128xf32>
    %169 = arith.addf %167, %168 : vector<16x128xf32>
    %170 = vector.extract_strided_slice %169 {offsets = [0, 0], sizes = [16, 8], strides = [1, 1]} : vector<16x128xf32> to vector<16x8xf32>
    %171 = vector.extract_strided_slice %169 {offsets = [0, 8], sizes = [16, 8], strides = [1, 1]} : vector<16x128xf32> to vector<16x8xf32>
    %172 = vector.extract_strided_slice %169 {offsets = [0, 16], sizes = [16, 8], strides = [1, 1]} : vector<16x128xf32> to vector<16x8xf32>
    %173 = vector.extract_strided_slice %169 {offsets = [0, 24], sizes = [16, 8], strides = [1, 1]} : vector<16x128xf32> to vector<16x8xf32>
    %c0_87 = arith.constant 0 : index
    %c0_88 = arith.constant 0 : index
    %174 = vector.load %arg5[%c0_87, %c0_88] : memref<16x8xf32, #tpu.memory_space<vmem>>, vector<16x8xf32>
    %175 = arith.mulf %171, %174 : vector<16x8xf32>
    %176 = arith.mulf %170, %172 : vector<16x8xf32>
    %177 = arith.addf %175, %176 : vector<16x8xf32>
    %178 = math.tanh %177 : vector<16x8xf32>
    %179 = arith.mulf %173, %178 : vector<16x8xf32>
    %c0_89 = arith.constant 0 : index
    %c0_90 = arith.constant 0 : index
    %180 = vector.load %arg5[%c0_89, %c0_90] : memref<16x8xf32, #tpu.memory_space<vmem>>, vector<16x8xf32>
    tpu.vector_store %arg5[%c0_89, %c0_90], %177 {strides = array<i32>} : memref<16x8xf32, #tpu.memory_space<vmem>>, vector<16x8xf32>,
    %c0_91 = arith.constant 0 : index
    %c0_92 = arith.constant 0 : index
    %181 = vector.load %arg4[%c0_91, %c0_92] : memref<16x128xf32, #tpu.memory_space<vmem>>, vector<16x8xf32>
    tpu.vector_store %arg4[%c0_91, %c0_92], %179 {strides = array<i32>} : memref<16x128xf32, #tpu.memory_space<vmem>>, vector<16x8xf32>,
    %182 = arith.truncf %179 : vector<16x8xf32> to vector<16x8xbf16>
    %c0_93 = arith.constant 0 : index
    %c40 = arith.constant 40 : index
    %183 = vector.load %arg3[%c0_93, %c40] : memref<16x64xbf16, #tpu.memory_space<vmem>>, vector<16x8xbf16>
    tpu.vector_store %arg3[%c0_93, %c40], %182 {strides = array<i32>} : memref<16x64xbf16, #tpu.memory_space<vmem>>, vector<16x8xbf16>,
    %c6 = arith.constant 6 : index
    %c0_94 = arith.constant 0 : index
    %c0_95 = arith.constant 0 : index
    %184 = vector.load %arg1[%c6, %c0_94, %c0_95] : memref<8x16x128xf32, #tpu.memory_space<vmem>>, vector<1x16x128xf32>
    %185 = vector.shape_cast %184 : vector<1x16x128xf32> to vector<16x128xf32>
    %c0_96 = arith.constant 0 : index
    %c0_97 = arith.constant 0 : index
    %186 = vector.load %arg4[%c0_96, %c0_97] : memref<16x128xf32, #tpu.memory_space<vmem>>, vector<16x128xf32>
    %187 = arith.truncf %186 : vector<16x128xf32> to vector<16x128xbf16>
    %c0_98 = arith.constant 0 : index
    %c0_99 = arith.constant 0 : index
    %188 = vector.load %arg2[%c0_98, %c0_99] : memref<128x128xbf16, #tpu.memory_space<vmem>>, vector<128x128xbf16>
    %cst_100 = arith.constant dense<0.000000e+00> : vector<16x128xf32>
    %189 = tpu.matmul %187, %188, %cst_100 {dimension_numbers = #tpu.dot_dimension_numbers<[1], [0], [0], [1], [0, 0, 1, 1], [], []>} : vector<16x128xbf16>, vector<128x128xbf16>, vector<16x128xf32> -> vector<16x128xf32>
    %190 = arith.addf %185, %189 : vector<16x128xf32>
    %191 = vector.broadcast %8 : vector<1x128xf32> to vector<16x128xf32>
    %192 = arith.mulf %190, %191 : vector<16x128xf32>
    %193 = math.tanh %192 : vector<16x128xf32>
    %194 = vector.broadcast %8 : vector<1x128xf32> to vector<16x128xf32>
    %195 = arith.mulf %193, %194 : vector<16x128xf32>
    %196 = vector.broadcast %11 : vector<1x128xf32> to vector<16x128xf32>
    %197 = arith.addf %195, %196 : vector<16x128xf32>
    %198 = vector.extract_strided_slice %197 {offsets = [0, 0], sizes = [16, 8], strides = [1, 1]} : vector<16x128xf32> to vector<16x8xf32>
    %199 = vector.extract_strided_slice %197 {offsets = [0, 8], sizes = [16, 8], strides = [1, 1]} : vector<16x128xf32> to vector<16x8xf32>
    %200 = vector.extract_strided_slice %197 {offsets = [0, 16], sizes = [16, 8], strides = [1, 1]} : vector<16x128xf32> to vector<16x8xf32>
    %201 = vector.extract_strided_slice %197 {offsets = [0, 24], sizes = [16, 8], strides = [1, 1]} : vector<16x128xf32> to vector<16x8xf32>
    %c0_101 = arith.constant 0 : index
    %c0_102 = arith.constant 0 : index
    %202 = vector.load %arg5[%c0_101, %c0_102] : memref<16x8xf32, #tpu.memory_space<vmem>>, vector<16x8xf32>
    %203 = arith.mulf %199, %202 : vector<16x8xf32>
    %204 = arith.mulf %198, %200 : vector<16x8xf32>
    %205 = arith.addf %203, %204 : vector<16x8xf32>
    %206 = math.tanh %205 : vector<16x8xf32>
    %207 = arith.mulf %201, %206 : vector<16x8xf32>
    %c0_103 = arith.constant 0 : index
    %c0_104 = arith.constant 0 : index
    %208 = vector.load %arg5[%c0_103, %c0_104] : memref<16x8xf32, #tpu.memory_space<vmem>>, vector<16x8xf32>
    tpu.vector_store %arg5[%c0_103, %c0_104], %205 {strides = array<i32>} : memref<16x8xf32, #tpu.memory_space<vmem>>, vector<16x8xf32>,
    %c0_105 = arith.constant 0 : index
    %c0_106 = arith.constant 0 : index
    %209 = vector.load %arg4[%c0_105, %c0_106] : memref<16x128xf32, #tpu.memory_space<vmem>>, vector<16x8xf32>
    tpu.vector_store %arg4[%c0_105, %c0_106], %207 {strides = array<i32>} : memref<16x128xf32, #tpu.memory_space<vmem>>, vector<16x8xf32>,
    %210 = arith.truncf %207 : vector<16x8xf32> to vector<16x8xbf16>
    %c0_107 = arith.constant 0 : index
    %c48 = arith.constant 48 : index
    %211 = vector.load %arg3[%c0_107, %c48] : memref<16x64xbf16, #tpu.memory_space<vmem>>, vector<16x8xbf16>
    tpu.vector_store %arg3[%c0_107, %c48], %210 {strides = array<i32>} : memref<16x64xbf16, #tpu.memory_space<vmem>>, vector<16x8xbf16>,
    %c7 = arith.constant 7 : index
    %c0_108 = arith.constant 0 : index
    %c0_109 = arith.constant 0 : index
    %212 = vector.load %arg1[%c7, %c0_108, %c0_109] : memref<8x16x128xf32, #tpu.memory_space<vmem>>, vector<1x16x128xf32>
    %213 = vector.shape_cast %212 : vector<1x16x128xf32> to vector<16x128xf32>
    %c0_110 = arith.constant 0 : index
    %c0_111 = arith.constant 0 : index
    %214 = vector.load %arg4[%c0_110, %c0_111] : memref<16x128xf32, #tpu.memory_space<vmem>>, vector<16x128xf32>
    %215 = arith.truncf %214 : vector<16x128xf32> to vector<16x128xbf16>
    %c0_112 = arith.constant 0 : index
    %c0_113 = arith.constant 0 : index
    %216 = vector.load %arg2[%c0_112, %c0_113] : memref<128x128xbf16, #tpu.memory_space<vmem>>, vector<128x128xbf16>
    %cst_114 = arith.constant dense<0.000000e+00> : vector<16x128xf32>
    %217 = tpu.matmul %215, %216, %cst_114 {dimension_numbers = #tpu.dot_dimension_numbers<[1], [0], [0], [1], [0, 0, 1, 1], [], []>} : vector<16x128xbf16>, vector<128x128xbf16>, vector<16x128xf32> -> vector<16x128xf32>
    %218 = arith.addf %213, %217 : vector<16x128xf32>
    %219 = vector.broadcast %8 : vector<1x128xf32> to vector<16x128xf32>
    %220 = arith.mulf %218, %219 : vector<16x128xf32>
    %221 = math.tanh %220 : vector<16x128xf32>
    %222 = vector.broadcast %8 : vector<1x128xf32> to vector<16x128xf32>
    %223 = arith.mulf %221, %222 : vector<16x128xf32>
    %224 = vector.broadcast %11 : vector<1x128xf32> to vector<16x128xf32>
    %225 = arith.addf %223, %224 : vector<16x128xf32>
    %226 = vector.extract_strided_slice %225 {offsets = [0, 0], sizes = [16, 8], strides = [1, 1]} : vector<16x128xf32> to vector<16x8xf32>
    %227 = vector.extract_strided_slice %225 {offsets = [0, 8], sizes = [16, 8], strides = [1, 1]} : vector<16x128xf32> to vector<16x8xf32>
    %228 = vector.extract_strided_slice %225 {offsets = [0, 16], sizes = [16, 8], strides = [1, 1]} : vector<16x128xf32> to vector<16x8xf32>
    %229 = vector.extract_strided_slice %225 {offsets = [0, 24], sizes = [16, 8], strides = [1, 1]} : vector<16x128xf32> to vector<16x8xf32>
    %c0_115 = arith.constant 0 : index
    %c0_116 = arith.constant 0 : index
    %230 = vector.load %arg5[%c0_115, %c0_116] : memref<16x8xf32, #tpu.memory_space<vmem>>, vector<16x8xf32>
    %231 = arith.mulf %227, %230 : vector<16x8xf32>
    %232 = arith.mulf %226, %228 : vector<16x8xf32>
    %233 = arith.addf %231, %232 : vector<16x8xf32>
    %234 = math.tanh %233 : vector<16x8xf32>
    %235 = arith.mulf %229, %234 : vector<16x8xf32>
    %c0_117 = arith.constant 0 : index
    %c0_118 = arith.constant 0 : index
    %236 = vector.load %arg5[%c0_117, %c0_118] : memref<16x8xf32, #tpu.memory_space<vmem>>, vector<16x8xf32>
    tpu.vector_store %arg5[%c0_117, %c0_118], %233 {strides = array<i32>} : memref<16x8xf32, #tpu.memory_space<vmem>>, vector<16x8xf32>,
    %c0_119 = arith.constant 0 : index
    %c0_120 = arith.constant 0 : index
    %237 = vector.load %arg4[%c0_119, %c0_120] : memref<16x128xf32, #tpu.memory_space<vmem>>, vector<16x8xf32>
    tpu.vector_store %arg4[%c0_119, %c0_120], %235 {strides = array<i32>} : memref<16x128xf32, #tpu.memory_space<vmem>>, vector<16x8xf32>,
    %238 = arith.truncf %235 : vector<16x8xf32> to vector<16x8xbf16>
    %c0_121 = arith.constant 0 : index
    %c56 = arith.constant 56 : index
    %239 = vector.load %arg3[%c0_121, %c56] : memref<16x64xbf16, #tpu.memory_space<vmem>>, vector<16x8xbf16>
    tpu.vector_store %arg3[%c0_121, %c56], %238 {strides = array<i32>} : memref<16x64xbf16, #tpu.memory_space<vmem>>, vector<16x8xbf16>,
    return
  }
  func.func @transform_0(%arg0: i32) -> (i32, i32, i32) {
    %c0_i32 = arith.constant 0 : i32
    %c0_i32_0 = arith.constant 0 : i32
    %c0_i32_1 = arith.constant 0 : i32
    return %c0_i32, %arg0, %c0_i32_0 : i32, i32, i32
  }
  func.func @transform_1(%arg0: i32) -> (i32, i32) {
    %c0_i32 = arith.constant 0 : i32
    %c0_i32_0 = arith.constant 0 : i32
    %c0_i32_1 = arith.constant 0 : i32
    return %c0_i32, %c0_i32_0 : i32, i32
  }
  func.func @transform_2(%arg0: i32) -> (i32, i32) {
    %c0_i32 = arith.constant 0 : i32
    %c0_i32_0 = arith.constant 0 : i32
    return %arg0, %c0_i32 : i32, i32
  }
}

module attributes {stable_mosaic.version = 11 : i64} {
  func.func @kernel(%arg0: i32, %arg1: memref<4x16x128xf32, #tpu.memory_space<vmem>>, %arg2: memref<128x128xbf16, #tpu.memory_space<vmem>>, %arg3: memref<16x128xbf16, #tpu.memory_space<vmem>>, %arg4: memref<16x128xf32, #tpu.memory_space<vmem>>, %arg5: memref<16x32xf32, #tpu.memory_space<vmem>>) attributes {dimension_semantics = [#tpu.dimension_semantics<parallel>], iteration_bounds = array<i64: 1>, scalar_prefetch = 0 : i64, scratch_operands = 2 : i64, tpu.core_type = #tpu.core_type<tc>, window_params = [{transform_indices = @transform_0, window_bounds = array<i64: 4, 16, 128>}, {pipeline_mode = #tpu.pipeline_mode<synchronous>, transform_indices = @transform_1, window_bounds = array<i64: 128, 128>}, {transform_indices = @transform_2, window_bounds = array<i64: 16, 128>}]} {
    %0 = tpu.iota {dimensions = array<i32: 1>} : vector<1x128xi32>
    %c64_i32 = arith.constant 64 : i32
    %1 = vector.broadcast %c64_i32 : i32 to vector<1x128xi32>
    %2 = arith.cmpi sge, %0, %1 : vector<1x128xi32>
    %c96_i32 = arith.constant 96 : i32
    %3 = vector.broadcast %c96_i32 : i32 to vector<1x128xi32>
    %4 = arith.cmpi slt, %0, %3 : vector<1x128xi32>
    %5 = arith.andi %2, %4 : vector<1x128xi1>
    %cst = arith.constant 1.000000e+00 : f32
    %cst_0 = arith.constant 5.000000e-01 : f32
    %6 = vector.broadcast %cst : f32 to vector<1x128xf32>
    %7 = vector.broadcast %cst_0 : f32 to vector<1x128xf32>
    %8 = arith.select %5, %6, %7 : vector<1x128xi1>, vector<1x128xf32>
    %cst_1 = arith.constant 0.000000e+00 : f32
    %cst_2 = arith.constant 5.000000e-01 : f32
    %9 = vector.broadcast %cst_1 : f32 to vector<1x128xf32>
    %10 = vector.broadcast %cst_2 : f32 to vector<1x128xf32>
    %11 = arith.select %5, %9, %10 : vector<1x128xi1>, vector<1x128xf32>
    %cst_3 = arith.constant 0.000000e+00 : f32
    %12 = vector.broadcast %cst_3 : f32 to vector<16x128xf32>
    %c0 = arith.constant 0 : index
    %c0_4 = arith.constant 0 : index
    %13 = vector.load %arg4[%c0, %c0_4] : memref<16x128xf32, #tpu.memory_space<vmem>>, vector<16x128xf32>
    tpu.vector_store %arg4[%c0, %c0_4], %12 {strides = array<i32>} : memref<16x128xf32, #tpu.memory_space<vmem>>, vector<16x128xf32>,
    %cst_5 = arith.constant 0.000000e+00 : f32
    %14 = vector.broadcast %cst_5 : f32 to vector<16x32xf32>
    %c0_6 = arith.constant 0 : index
    %c0_7 = arith.constant 0 : index
    %15 = vector.load %arg5[%c0_6, %c0_7] : memref<16x32xf32, #tpu.memory_space<vmem>>, vector<16x32xf32>
    tpu.vector_store %arg5[%c0_6, %c0_7], %14 {strides = array<i32>} : memref<16x32xf32, #tpu.memory_space<vmem>>, vector<16x32xf32>,
    %c0_8 = arith.constant 0 : index
    %c0_9 = arith.constant 0 : index
    %c0_10 = arith.constant 0 : index
    %16 = vector.load %arg1[%c0_8, %c0_9, %c0_10] : memref<4x16x128xf32, #tpu.memory_space<vmem>>, vector<1x16x128xf32>
    %17 = vector.shape_cast %16 : vector<1x16x128xf32> to vector<16x128xf32>
    %c0_11 = arith.constant 0 : index
    %c0_12 = arith.constant 0 : index
    %18 = vector.load %arg4[%c0_11, %c0_12] : memref<16x128xf32, #tpu.memory_space<vmem>>, vector<16x128xf32>
    %19 = arith.truncf %18 : vector<16x128xf32> to vector<16x128xbf16>
    %c0_13 = arith.constant 0 : index
    %c0_14 = arith.constant 0 : index
    %20 = vector.load %arg2[%c0_13, %c0_14] : memref<128x128xbf16, #tpu.memory_space<vmem>>, vector<128x128xbf16>
    %cst_15 = arith.constant dense<0.000000e+00> : vector<16x128xf32>
    %21 = tpu.matmul %19, %20, %cst_15 {dimension_numbers = #tpu.dot_dimension_numbers<[1], [0], [0], [1], [0, 0, 1, 1], [], []>} : vector<16x128xbf16>, vector<128x128xbf16>, vector<16x128xf32> -> vector<16x128xf32>
    %22 = arith.addf %17, %21 : vector<16x128xf32>
    %23 = vector.broadcast %8 : vector<1x128xf32> to vector<16x128xf32>
    %24 = arith.mulf %22, %23 : vector<16x128xf32>
    %25 = math.tanh %24 : vector<16x128xf32>
    %26 = vector.broadcast %8 : vector<1x128xf32> to vector<16x128xf32>
    %27 = arith.mulf %25, %26 : vector<16x128xf32>
    %28 = vector.broadcast %11 : vector<1x128xf32> to vector<16x128xf32>
    %29 = arith.addf %27, %28 : vector<16x128xf32>
    %30 = vector.extract_strided_slice %29 {offsets = [0, 0], sizes = [16, 32], strides = [1, 1]} : vector<16x128xf32> to vector<16x32xf32>
    %31 = vector.extract_strided_slice %29 {offsets = [0, 32], sizes = [16, 32], strides = [1, 1]} : vector<16x128xf32> to vector<16x32xf32>
    %32 = vector.extract_strided_slice %29 {offsets = [0, 64], sizes = [16, 32], strides = [1, 1]} : vector<16x128xf32> to vector<16x32xf32>
    %33 = vector.extract_strided_slice %29 {offsets = [0, 96], sizes = [16, 32], strides = [1, 1]} : vector<16x128xf32> to vector<16x32xf32>
    %c0_16 = arith.constant 0 : index
    %c0_17 = arith.constant 0 : index
    %34 = vector.load %arg5[%c0_16, %c0_17] : memref<16x32xf32, #tpu.memory_space<vmem>>, vector<16x32xf32>
    %35 = arith.mulf %31, %34 : vector<16x32xf32>
    %36 = arith.mulf %30, %32 : vector<16x32xf32>
    %37 = arith.addf %35, %36 : vector<16x32xf32>
    %38 = math.tanh %37 : vector<16x32xf32>
    %39 = arith.mulf %33, %38 : vector<16x32xf32>
    %c0_18 = arith.constant 0 : index
    %c0_19 = arith.constant 0 : index
    %40 = vector.load %arg5[%c0_18, %c0_19] : memref<16x32xf32, #tpu.memory_space<vmem>>, vector<16x32xf32>
    tpu.vector_store %arg5[%c0_18, %c0_19], %37 {strides = array<i32>} : memref<16x32xf32, #tpu.memory_space<vmem>>, vector<16x32xf32>,
    %c0_20 = arith.constant 0 : index
    %c0_21 = arith.constant 0 : index
    %41 = vector.load %arg4[%c0_20, %c0_21] : memref<16x128xf32, #tpu.memory_space<vmem>>, vector<16x32xf32>
    tpu.vector_store %arg4[%c0_20, %c0_21], %39 {strides = array<i32>} : memref<16x128xf32, #tpu.memory_space<vmem>>, vector<16x32xf32>,
    %42 = arith.truncf %39 : vector<16x32xf32> to vector<16x32xbf16>
    %c0_22 = arith.constant 0 : index
    %c0_23 = arith.constant 0 : index
    %43 = vector.load %arg3[%c0_22, %c0_23] : memref<16x128xbf16, #tpu.memory_space<vmem>>, vector<16x32xbf16>
    tpu.vector_store %arg3[%c0_22, %c0_23], %42 {strides = array<i32>} : memref<16x128xbf16, #tpu.memory_space<vmem>>, vector<16x32xbf16>,
    %c1 = arith.constant 1 : index
    %c0_24 = arith.constant 0 : index
    %c0_25 = arith.constant 0 : index
    %44 = vector.load %arg1[%c1, %c0_24, %c0_25] : memref<4x16x128xf32, #tpu.memory_space<vmem>>, vector<1x16x128xf32>
    %45 = vector.shape_cast %44 : vector<1x16x128xf32> to vector<16x128xf32>
    %c0_26 = arith.constant 0 : index
    %c0_27 = arith.constant 0 : index
    %46 = vector.load %arg4[%c0_26, %c0_27] : memref<16x128xf32, #tpu.memory_space<vmem>>, vector<16x128xf32>
    %47 = arith.truncf %46 : vector<16x128xf32> to vector<16x128xbf16>
    %c0_28 = arith.constant 0 : index
    %c0_29 = arith.constant 0 : index
    %48 = vector.load %arg2[%c0_28, %c0_29] : memref<128x128xbf16, #tpu.memory_space<vmem>>, vector<128x128xbf16>
    %cst_30 = arith.constant dense<0.000000e+00> : vector<16x128xf32>
    %49 = tpu.matmul %47, %48, %cst_30 {dimension_numbers = #tpu.dot_dimension_numbers<[1], [0], [0], [1], [0, 0, 1, 1], [], []>} : vector<16x128xbf16>, vector<128x128xbf16>, vector<16x128xf32> -> vector<16x128xf32>
    %50 = arith.addf %45, %49 : vector<16x128xf32>
    %51 = vector.broadcast %8 : vector<1x128xf32> to vector<16x128xf32>
    %52 = arith.mulf %50, %51 : vector<16x128xf32>
    %53 = math.tanh %52 : vector<16x128xf32>
    %54 = vector.broadcast %8 : vector<1x128xf32> to vector<16x128xf32>
    %55 = arith.mulf %53, %54 : vector<16x128xf32>
    %56 = vector.broadcast %11 : vector<1x128xf32> to vector<16x128xf32>
    %57 = arith.addf %55, %56 : vector<16x128xf32>
    %58 = vector.extract_strided_slice %57 {offsets = [0, 0], sizes = [16, 32], strides = [1, 1]} : vector<16x128xf32> to vector<16x32xf32>
    %59 = vector.extract_strided_slice %57 {offsets = [0, 32], sizes = [16, 32], strides = [1, 1]} : vector<16x128xf32> to vector<16x32xf32>
    %60 = vector.extract_strided_slice %57 {offsets = [0, 64], sizes = [16, 32], strides = [1, 1]} : vector<16x128xf32> to vector<16x32xf32>
    %61 = vector.extract_strided_slice %57 {offsets = [0, 96], sizes = [16, 32], strides = [1, 1]} : vector<16x128xf32> to vector<16x32xf32>
    %c0_31 = arith.constant 0 : index
    %c0_32 = arith.constant 0 : index
    %62 = vector.load %arg5[%c0_31, %c0_32] : memref<16x32xf32, #tpu.memory_space<vmem>>, vector<16x32xf32>
    %63 = arith.mulf %59, %62 : vector<16x32xf32>
    %64 = arith.mulf %58, %60 : vector<16x32xf32>
    %65 = arith.addf %63, %64 : vector<16x32xf32>
    %66 = math.tanh %65 : vector<16x32xf32>
    %67 = arith.mulf %61, %66 : vector<16x32xf32>
    %c0_33 = arith.constant 0 : index
    %c0_34 = arith.constant 0 : index
    %68 = vector.load %arg5[%c0_33, %c0_34] : memref<16x32xf32, #tpu.memory_space<vmem>>, vector<16x32xf32>
    tpu.vector_store %arg5[%c0_33, %c0_34], %65 {strides = array<i32>} : memref<16x32xf32, #tpu.memory_space<vmem>>, vector<16x32xf32>,
    %c0_35 = arith.constant 0 : index
    %c0_36 = arith.constant 0 : index
    %69 = vector.load %arg4[%c0_35, %c0_36] : memref<16x128xf32, #tpu.memory_space<vmem>>, vector<16x32xf32>
    tpu.vector_store %arg4[%c0_35, %c0_36], %67 {strides = array<i32>} : memref<16x128xf32, #tpu.memory_space<vmem>>, vector<16x32xf32>,
    %70 = arith.truncf %67 : vector<16x32xf32> to vector<16x32xbf16>
    %c0_37 = arith.constant 0 : index
    %c32 = arith.constant 32 : index
    %71 = vector.load %arg3[%c0_37, %c32] : memref<16x128xbf16, #tpu.memory_space<vmem>>, vector<16x32xbf16>
    tpu.vector_store %arg3[%c0_37, %c32], %70 {strides = array<i32>} : memref<16x128xbf16, #tpu.memory_space<vmem>>, vector<16x32xbf16>,
    %c2 = arith.constant 2 : index
    %c0_38 = arith.constant 0 : index
    %c0_39 = arith.constant 0 : index
    %72 = vector.load %arg1[%c2, %c0_38, %c0_39] : memref<4x16x128xf32, #tpu.memory_space<vmem>>, vector<1x16x128xf32>
    %73 = vector.shape_cast %72 : vector<1x16x128xf32> to vector<16x128xf32>
    %c0_40 = arith.constant 0 : index
    %c0_41 = arith.constant 0 : index
    %74 = vector.load %arg4[%c0_40, %c0_41] : memref<16x128xf32, #tpu.memory_space<vmem>>, vector<16x128xf32>
    %75 = arith.truncf %74 : vector<16x128xf32> to vector<16x128xbf16>
    %c0_42 = arith.constant 0 : index
    %c0_43 = arith.constant 0 : index
    %76 = vector.load %arg2[%c0_42, %c0_43] : memref<128x128xbf16, #tpu.memory_space<vmem>>, vector<128x128xbf16>
    %cst_44 = arith.constant dense<0.000000e+00> : vector<16x128xf32>
    %77 = tpu.matmul %75, %76, %cst_44 {dimension_numbers = #tpu.dot_dimension_numbers<[1], [0], [0], [1], [0, 0, 1, 1], [], []>} : vector<16x128xbf16>, vector<128x128xbf16>, vector<16x128xf32> -> vector<16x128xf32>
    %78 = arith.addf %73, %77 : vector<16x128xf32>
    %79 = vector.broadcast %8 : vector<1x128xf32> to vector<16x128xf32>
    %80 = arith.mulf %78, %79 : vector<16x128xf32>
    %81 = math.tanh %80 : vector<16x128xf32>
    %82 = vector.broadcast %8 : vector<1x128xf32> to vector<16x128xf32>
    %83 = arith.mulf %81, %82 : vector<16x128xf32>
    %84 = vector.broadcast %11 : vector<1x128xf32> to vector<16x128xf32>
    %85 = arith.addf %83, %84 : vector<16x128xf32>
    %86 = vector.extract_strided_slice %85 {offsets = [0, 0], sizes = [16, 32], strides = [1, 1]} : vector<16x128xf32> to vector<16x32xf32>
    %87 = vector.extract_strided_slice %85 {offsets = [0, 32], sizes = [16, 32], strides = [1, 1]} : vector<16x128xf32> to vector<16x32xf32>
    %88 = vector.extract_strided_slice %85 {offsets = [0, 64], sizes = [16, 32], strides = [1, 1]} : vector<16x128xf32> to vector<16x32xf32>
    %89 = vector.extract_strided_slice %85 {offsets = [0, 96], sizes = [16, 32], strides = [1, 1]} : vector<16x128xf32> to vector<16x32xf32>
    %c0_45 = arith.constant 0 : index
    %c0_46 = arith.constant 0 : index
    %90 = vector.load %arg5[%c0_45, %c0_46] : memref<16x32xf32, #tpu.memory_space<vmem>>, vector<16x32xf32>
    %91 = arith.mulf %87, %90 : vector<16x32xf32>
    %92 = arith.mulf %86, %88 : vector<16x32xf32>
    %93 = arith.addf %91, %92 : vector<16x32xf32>
    %94 = math.tanh %93 : vector<16x32xf32>
    %95 = arith.mulf %89, %94 : vector<16x32xf32>
    %c0_47 = arith.constant 0 : index
    %c0_48 = arith.constant 0 : index
    %96 = vector.load %arg5[%c0_47, %c0_48] : memref<16x32xf32, #tpu.memory_space<vmem>>, vector<16x32xf32>
    tpu.vector_store %arg5[%c0_47, %c0_48], %93 {strides = array<i32>} : memref<16x32xf32, #tpu.memory_space<vmem>>, vector<16x32xf32>,
    %c0_49 = arith.constant 0 : index
    %c0_50 = arith.constant 0 : index
    %97 = vector.load %arg4[%c0_49, %c0_50] : memref<16x128xf32, #tpu.memory_space<vmem>>, vector<16x32xf32>
    tpu.vector_store %arg4[%c0_49, %c0_50], %95 {strides = array<i32>} : memref<16x128xf32, #tpu.memory_space<vmem>>, vector<16x32xf32>,
    %98 = arith.truncf %95 : vector<16x32xf32> to vector<16x32xbf16>
    %c0_51 = arith.constant 0 : index
    %c64 = arith.constant 64 : index
    %99 = vector.load %arg3[%c0_51, %c64] : memref<16x128xbf16, #tpu.memory_space<vmem>>, vector<16x32xbf16>
    tpu.vector_store %arg3[%c0_51, %c64], %98 {strides = array<i32>} : memref<16x128xbf16, #tpu.memory_space<vmem>>, vector<16x32xbf16>,
    %c3 = arith.constant 3 : index
    %c0_52 = arith.constant 0 : index
    %c0_53 = arith.constant 0 : index
    %100 = vector.load %arg1[%c3, %c0_52, %c0_53] : memref<4x16x128xf32, #tpu.memory_space<vmem>>, vector<1x16x128xf32>
    %101 = vector.shape_cast %100 : vector<1x16x128xf32> to vector<16x128xf32>
    %c0_54 = arith.constant 0 : index
    %c0_55 = arith.constant 0 : index
    %102 = vector.load %arg4[%c0_54, %c0_55] : memref<16x128xf32, #tpu.memory_space<vmem>>, vector<16x128xf32>
    %103 = arith.truncf %102 : vector<16x128xf32> to vector<16x128xbf16>
    %c0_56 = arith.constant 0 : index
    %c0_57 = arith.constant 0 : index
    %104 = vector.load %arg2[%c0_56, %c0_57] : memref<128x128xbf16, #tpu.memory_space<vmem>>, vector<128x128xbf16>
    %cst_58 = arith.constant dense<0.000000e+00> : vector<16x128xf32>
    %105 = tpu.matmul %103, %104, %cst_58 {dimension_numbers = #tpu.dot_dimension_numbers<[1], [0], [0], [1], [0, 0, 1, 1], [], []>} : vector<16x128xbf16>, vector<128x128xbf16>, vector<16x128xf32> -> vector<16x128xf32>
    %106 = arith.addf %101, %105 : vector<16x128xf32>
    %107 = vector.broadcast %8 : vector<1x128xf32> to vector<16x128xf32>
    %108 = arith.mulf %106, %107 : vector<16x128xf32>
    %109 = math.tanh %108 : vector<16x128xf32>
    %110 = vector.broadcast %8 : vector<1x128xf32> to vector<16x128xf32>
    %111 = arith.mulf %109, %110 : vector<16x128xf32>
    %112 = vector.broadcast %11 : vector<1x128xf32> to vector<16x128xf32>
    %113 = arith.addf %111, %112 : vector<16x128xf32>
    %114 = vector.extract_strided_slice %113 {offsets = [0, 0], sizes = [16, 32], strides = [1, 1]} : vector<16x128xf32> to vector<16x32xf32>
    %115 = vector.extract_strided_slice %113 {offsets = [0, 32], sizes = [16, 32], strides = [1, 1]} : vector<16x128xf32> to vector<16x32xf32>
    %116 = vector.extract_strided_slice %113 {offsets = [0, 64], sizes = [16, 32], strides = [1, 1]} : vector<16x128xf32> to vector<16x32xf32>
    %117 = vector.extract_strided_slice %113 {offsets = [0, 96], sizes = [16, 32], strides = [1, 1]} : vector<16x128xf32> to vector<16x32xf32>
    %c0_59 = arith.constant 0 : index
    %c0_60 = arith.constant 0 : index
    %118 = vector.load %arg5[%c0_59, %c0_60] : memref<16x32xf32, #tpu.memory_space<vmem>>, vector<16x32xf32>
    %119 = arith.mulf %115, %118 : vector<16x32xf32>
    %120 = arith.mulf %114, %116 : vector<16x32xf32>
    %121 = arith.addf %119, %120 : vector<16x32xf32>
    %122 = math.tanh %121 : vector<16x32xf32>
    %123 = arith.mulf %117, %122 : vector<16x32xf32>
    %c0_61 = arith.constant 0 : index
    %c0_62 = arith.constant 0 : index
    %124 = vector.load %arg5[%c0_61, %c0_62] : memref<16x32xf32, #tpu.memory_space<vmem>>, vector<16x32xf32>
    tpu.vector_store %arg5[%c0_61, %c0_62], %121 {strides = array<i32>} : memref<16x32xf32, #tpu.memory_space<vmem>>, vector<16x32xf32>,
    %c0_63 = arith.constant 0 : index
    %c0_64 = arith.constant 0 : index
    %125 = vector.load %arg4[%c0_63, %c0_64] : memref<16x128xf32, #tpu.memory_space<vmem>>, vector<16x32xf32>
    tpu.vector_store %arg4[%c0_63, %c0_64], %123 {strides = array<i32>} : memref<16x128xf32, #tpu.memory_space<vmem>>, vector<16x32xf32>,
    %126 = arith.truncf %123 : vector<16x32xf32> to vector<16x32xbf16>
    %c0_65 = arith.constant 0 : index
    %c96 = arith.constant 96 : index
    %127 = vector.load %arg3[%c0_65, %c96] : memref<16x128xbf16, #tpu.memory_space<vmem>>, vector<16x32xbf16>
    tpu.vector_store %arg3[%c0_65, %c96], %126 {strides = array<i32>} : memref<16x128xbf16, #tpu.memory_space<vmem>>, vector<16x32xbf16>,
    return
  }
  func.func @transform_0(%arg0: i32) -> (i32, i32, i32) {
    %c0_i32 = arith.constant 0 : i32
    %c0_i32_0 = arith.constant 0 : i32
    %c0_i32_1 = arith.constant 0 : i32
    return %c0_i32, %arg0, %c0_i32_0 : i32, i32, i32
  }
  func.func @transform_1(%arg0: i32) -> (i32, i32) {
    %c0_i32 = arith.constant 0 : i32
    %c0_i32_0 = arith.constant 0 : i32
    %c0_i32_1 = arith.constant 0 : i32
    return %c0_i32, %c0_i32_0 : i32, i32
  }
  func.func @transform_2(%arg0: i32) -> (i32, i32) {
    %c0_i32 = arith.constant 0 : i32
    %c0_i32_0 = arith.constant 0 : i32
    return %arg0, %c0_i32 : i32, i32
  }
}

module attributes {stable_mosaic.version = 11 : i64} {
  func.func @linear_kernel(%arg0: memref<8x128xbf16, #tpu.memory_space<vmem>>, %arg1: memref<128x128xbf16, #tpu.memory_space<vmem>>, %arg2: memref<1x128xf32, #tpu.memory_space<vmem>>, %arg3: memref<8x128xf32, #tpu.memory_space<vmem>>) attributes {dimension_semantics = [], scalar_prefetch = 0 : i64, scratch_operands = 0 : i64, tpu.core_type = #tpu.core_type<tc>} {
    %c0 = arith.constant 0 : index
    %c0_0 = arith.constant 0 : index
    %0 = vector.load %arg0[%c0, %c0_0] : memref<8x128xbf16, #tpu.memory_space<vmem>>, vector<8x128xbf16>
    %c0_1 = arith.constant 0 : index
    %c0_2 = arith.constant 0 : index
    %1 = vector.load %arg1[%c0_1, %c0_2] : memref<128x128xbf16, #tpu.memory_space<vmem>>, vector<128x128xbf16>
    %cst = arith.constant dense<0.000000e+00> : vector<8x128xf32>
    %2 = tpu.matmul %0, %1, %cst {dimension_numbers = #tpu.dot_dimension_numbers<[1], [0], [0], [1], [0, 0, 1, 1], [], []>} : vector<8x128xbf16>, vector<128x128xbf16>, vector<8x128xf32> -> vector<8x128xf32>
    %c0_3 = arith.constant 0 : index
    %c0_4 = arith.constant 0 : index
    %3 = vector.load %arg2[%c0_3, %c0_4] : memref<1x128xf32, #tpu.memory_space<vmem>>, vector<1x128xf32>
    %4 = vector.broadcast %3 : vector<1x128xf32> to vector<8x128xf32>
    %5 = arith.addf %2, %4 : vector<8x128xf32>
    %c0_5 = arith.constant 0 : index
    %c0_6 = arith.constant 0 : index
    %6 = vector.load %arg3[%c0_5, %c0_6] : memref<8x128xf32, #tpu.memory_space<vmem>>, vector<8x128xf32>
    tpu.vector_store %arg3[%c0_5, %c0_6], %5 {strides = array<i32>} : memref<8x128xf32, #tpu.memory_space<vmem>>, vector<8x128xf32>,
    return
  }
}

</mosaic_0001>

<bundles_post_ra>
// kernel: hier_rnn_forward.5
= control target key start
LH: loop header
LB: loop body
LE: loop exit
PB: predicated region body
PF: predicated region fallthrough
CT: control target
= control target key end

     0   :  { %v211_v0 = vmov 0.0   ;;  %vm30_vm0 = vcmask 130048   ;;  %vm212_vm1 = vmmov 0   ;;  %s298_s1 = inlined_call_operand.vmem [shape: f32[16,128], index: 1, kind: input, shape index: {}]   ;;  %s299_s0 = inlined_call_operand.vmem [shape: f32[56,16], index: 0, kind: input, shape index: {}]   ;;  %s300_s2 = inlined_call_operand.vmem [shape: f32[1,128], index: 2, kind: input, shape index: {}]   ;;  %s301_s3 = inlined_call_operand.vmem [shape: f32[56,128], index: 3, kind: output, shape index: {}]  }
   0x1   :  { %180 = vmatprep.subr.mxu0 %v211_v0  ;;  %v22_v1 = vld [vmem:[%s298_s1 + $0x8] sm:$0xff]  ;;  %205 = vmatprep.subr.mxu1 %v211_v0  ;;  %v21_v2 = vld [vmem:[%s298_s1] sm:$0xff]  ;;  %v16_v7 = vld [vmem:[%s299_s0 + $0x10] sm:$0xff] }
   0x2   :  { %181 = vmatpush3.msra.mxu0 %v22_v1  ;;  %207 = vmatpush3.msra.mxu1 %v22_v1  ;;  %v14_v3 = vld [vmem:[%s299_s0] sm:$0xff]  ;;  %v15_v5 = vld [vmem:[%s299_s0 + $0x8] sm:$0xff]  ;;  %v20_v8 = vld [vmem:[%s299_s0 + $0x30] sm:$0xff] }
   0x3   :  { %182 = vmatprep.subr.mxu0 %v211_v0  ;;  %184 = vmatprep.mubr.msk.f32.mxu0 %vm212_vm1, %v211_v0  ;;  %v18_v4 = vld [vmem:[%s299_s0 + $0x20] sm:$0xff]  ;;  %v19_v6 = vld [vmem:[%s299_s0 + $0x28] sm:$0xff]  ;;  %v17_v9 = vld [vmem:[%s299_s0 + $0x18] sm:$0xff] }
   0x4   :  { %183 = vmatpush3.msra.mxu0 %v21_v2  ;;  %206 = vmatprep.subr.mxu1 %v211_v0  ;;  %v163_v10 = vld [vmem:[%s300_s2] ss:$0 sm:$0xff] }
   0x5   :  { %185 = vmatmul.mubr.msk.f32.vlgmr.msra.gmra.mxu0 %vm30_vm0, %v14_v3  ;;  %208 = vmatpush3.msra.mxu1 %v21_v2 }
   0x6   :  { %196 = vmatprep.mubr.msk.f32.mxu1 %vm212_vm1, %v211_v0  ;;  %187 = vmatprep.mubr.msk.f32.mxu0 %vm212_vm1, %v211_v0 }
   0x7   :  { %197 = vmatmul.mubr.msk.f32.vlgmr.msra.gmra.mxu1 %vm30_vm0, %v18_v4 }
   0x8   :  { %199 = vmatprep.mubr.msk.f32.mxu1 %vm212_vm1, %v211_v0 }
   0x9   :  { %188 = vmatmul.mubr.msk.f32.gmra.mxu0 %vm30_vm0, %v15_v5 }
   0xa   :  { %190 = vmatprep.mubr.msk.f32.mxu0 %vm212_vm1, %v211_v0 }
   0xb   :  { %200 = vmatmul.mubr.msk.f32.gmra.mxu1 %vm30_vm0, %v19_v6 }
   0xc   :  { %202 = vmatprep.mubr.msk.f32.mxu1 %vm212_vm1, %v211_v0 }
   0xd   :  { %191 = vmatmul.mubr.msk.f32.gmra.mxu0 %vm30_vm0, %v16_v7 }
   0xe   :  { %193 = vmatprep.mubr.msk.f32.mxu0 %vm212_vm1, %v211_v0 }
   0xf   :  { %203 = vmatmul.mubr.msk.f32.gmra.mxu1 %vm30_vm0, %v20_v8 }
  0x11   :  { %194 = vmatmul.mubr.msk.f32.gmra.mxu0 %vm30_vm0, %v17_v9 }
  0xc5   :  { %v118_v11 = vpop.f32.mrf.mxu0 }
  0xc6   :  { %v119_v12 = vadd.f32 %v163_v10, %v118_v11 }
  0xc7   :  { %v186_v13 = vpop.f32.mrf.mxu0  ;;  %v138_v14 = vpop.f32.mrf.mxu1 }
  0xc8   :  { %152 = vst [vmem:[%s301_s3] sm:$0xff] %v119_v12  ;;  %v139_v15 = vadd.f32 %v163_v10, %v138_v14 }
  0xc9   :  { %v123_v16 = vpop.f32.mrf.mxu0  ;;  %v198_v17 = vpop.f32.mrf.mxu1 }
  0xca   :  { %156 = vst [vmem:[%s301_s3 + $0x20] sm:$0xff] %v139_v15  ;;  %v124_v18 = vadd.f32 %v163_v10, %v123_v16 }
  0xcb   :  { %v189_v19 = vpop.f32.mrf.mxu0  ;;  %v143_v20 = vpop.f32.mrf.mxu1 }
  0xcc   :  { %153 = vst [vmem:[%s301_s3 + $0x8] sm:$0xff] %v124_v18  ;;  %v144_v21 = vadd.f32 %v163_v10, %v143_v20 }
  0xcd   :  { %v128_v22 = vpop.f32.mrf.mxu0  ;;  %v201_v23 = vpop.f32.mrf.mxu1 }
  0xce   :  { %157 = vst [vmem:[%s301_s3 + $0x28] sm:$0xff] %v144_v21  ;;  %v129_v24 = vadd.f32 %v163_v10, %v128_v22 }
  0xcf   :  { %v192_v25 = vpop.f32.mrf.mxu0  ;;  %v148_v26 = vpop.f32.mrf.mxu1 }
  0xd0   :  { %154 = vst [vmem:[%s301_s3 + $0x10] sm:$0xff] %v129_v24  ;;  %v149_v27 = vadd.f32 %v163_v10, %v148_v26 }
  0xd1   :  { %v133_v28 = vpop.f32.mrf.mxu0  ;;  %v204_v29 = vpop.f32.mrf.mxu1 }
  0xd2   :  { %158 = vst [vmem:[%s301_s3 + $0x30] sm:$0xff] %v149_v27  ;;  %v134_v30 = vadd.f32 %v163_v10, %v133_v28 }
  0xd3   :  { %v195_v31 = vpop.f32.mrf.mxu0 }
  0xd4   :  { %155 = vst [vmem:[%s301_s3 + $0x18] sm:$0xff] %v134_v30 }

// kernel: hier_rnn_forward.7
= control target key start
LH: loop header
LB: loop body
LE: loop exit
PB: predicated region body
PF: predicated region fallthrough
CT: control target
= control target key end

     0   :  { %v133_v0 = vmov 0.0   ;;  %vm134_vm0 = vmmov 0   ;;  %vm55_vm1 = vcmask 523264   ;;  %s176_s1 = inlined_call_operand.vmem [shape: bf16[64,128], index: 1, kind: input, shape index: {}]   ;;  %s177_s0 = inlined_call_operand.vmem [shape: bf16[8,64], index: 0, kind: input, shape index: {}]   ;;  %s178_s2 = inlined_call_operand.vmem [shape: f32[1,128], index: 2, kind: input, shape index: {}]   ;;  %s179_s3 = inlined_call_operand.vmem [shape: f32[8,128], index: 3, kind: output, shape index: {}]  }
   0x1   :  { %115 = vmatprep.subr.bf16.mxu0 %v133_v0  ;;  %v129_v1 = vld [vmem:[%s176_s1 + $0x18] sm:$0xff]   ;;  %123 = vmatprep.mubr.msk.bf16.mxu0 %vm134_vm0, %v133_v0  ;;  %v130_v2 = vld [vmem:[%s176_s1 + $0x10] sm:$0xff]   ;;  %v131_v3 = vld [vmem:[%s176_s1 + $0x8] sm:$0xff]  }
   0x2   :  { %116 = vmatpush3.bf16.msra.mxu0 %v129_v1  ;;  %v132_v4 = vld [vmem:[%s176_s1] sm:$0xff]  }
   0x3   :  { %117 = vmatprep.subr.bf16.mxu0 %v133_v0  ;;  %v15_v5 = vld [vmem:[%s177_s0] sm:$0xf] }
   0x4   :  { %v104_v6 = vld [vmem:[%s178_s2] ss:$0 sm:$0xff] }
   0x6   :  { %118 = vmatpush3.bf16.msra.mxu0 %v130_v2 }
   0x7   :  { %119 = vmatprep.subr.bf16.mxu0 %v133_v0 }
   0xa   :  { %120 = vmatpush3.bf16.msra.mxu0 %v131_v3 }
   0xb   :  { %121 = vmatprep.subr.bf16.mxu0 %v133_v0 }
   0xe   :  { %122 = vmatpush3.bf16.msra.mxu0 %v132_v4 }
  0x11   :  { %124 = vmatmul.mubr.msk.bf16.vlgmr.msra.gmra.mxu0 %vm55_vm1, %v15_v5 }
  0xd1   :  { %v93_v7 = vpop.f32.mrf.mxu0 }
  0xd2   :  { %v94_v8 = vadd.f32 %v104_v6, %v93_v7 }
  0xd3   :  { %v125_v9 = vpop.f32.mrf.mxu0 }
  0xd4   :  { %99 = vst [vmem:[%s179_s3] sm:$0xff] %v94_v8 }
  0xd5   :  { %v96_v10 = vpop.f32.mrf.mxu0 }
  0xd7   :  { %v126_v11 = vpop.f32.mrf.mxu0 }

// kernel: hier_rnn_forward.8
= control target key start
LH: loop header
LB: loop body
LE: loop exit
PB: predicated region body
PF: predicated region fallthrough
CT: control target
= control target key end

     0   :  { %vm21_vm0 = vcmask 261120   ;;  %v1063_v0 = vmov 0.0   ;;  %vm1064_vm1 = vmmov 0   ;;  %s1065_s17 = smov 32   ;;  %v1066_v11 = vmov 0.0|0.0   ;;  %s1068_s30 = smov 64   ;;  %s1411_s1 = inlined_call_operand.vmem [shape: bf16[128,128], index: 1, kind: input, shape index: {}]   ;;  %s1412_s0 = inlined_call_operand.vmem [shape: f32[4,16,128], index: 0, kind: input, shape index: {}]   ;;  %s1413_s2 = inlined_call_operand.vmem [shape: bf16[16,128], index: 2, kind: output, shape index: {}]  }
   0x1   :  { %913 = vmatprep.subr.bf16.mxu0 %v1063_v0  ;;  %19 = vst [vmem:[#allocation2] sm:$0xff] %v1063_v0  ;;  %20 = vst [vmem:[#allocation2 + $0x8] sm:$0xff] %v1063_v0  ;;  %v999_v1 = vld [vmem:[%s1411_s1 + $0x38] sm:$0xff]   ;;  %929 = vmatprep.mubr.msk.bf16.mxu0 %vm1064_vm1, %v1063_v0  ;;  %v1000_v2 = vld [vmem:[%s1411_s1 + $0x30] sm:$0xff]   ;;  %v12_v12 = vlaneseq  ;;  %v1067_v16 = vmov 0.5   ;;  %s1069_s20 = smov 96  }
   0x2   :  { %22 = vst.msk [vmem:[#allocation3] sm:$0xff] %vm21_vm0, %v1063_v0  ;;  %23 = vst.msk [vmem:[#allocation3 + $0x8] sm:$0xff] %vm21_vm0, %v1063_v0  ;;  %933 = vmatprep.subr.bf16.mxu1 %v1063_v0  ;;  %949 = vmatprep.mubr.msk.bf16.mxu1 %vm1064_vm1, %v1063_v0  ;;  %v1001_v3 = vld [vmem:[%s1411_s1 + $0x28] sm:$0xff]   ;;  %v1002_v4 = vld [vmem:[%s1411_s1 + $0x20] sm:$0xff]   ;;  %vm220_vm5 = vcmask 257024   ;;  %vm420_vm6 = vcmask 519424  }
   0x3   :  { %914 = vmatpush3.bf16.msra.mxu0 %v999_v1  ;;  %v1003_v7 = vld [vmem:[%s1411_s1 + $0x18] sm:$0xff]   ;;  %v1004_v8 = vld [vmem:[%s1411_s1 + $0x10] sm:$0xff]   ;;  %v1005_v9 = vld [vmem:[%s1411_s1 + $0x8] sm:$0xff]   ;;  %v13_v13 = vand.u32 127, %v12_v12  ;;  %vm620_vm7 = vcmask 781824   ;;  %vm816_vm8 = vcmask 1044224  }
   0x4   :  { %915 = vmatprep.subr.bf16.mxu0 %v1063_v0  ;;  %v1006_v10 = vld [vmem:[%s1411_s1] sm:$0xff]   ;;  %v25_v21 = vld [vmem:[%s1412_s0 + $0x8] sm:$0xff]  ;;  %v1007_v46 = vld [vmem:[%s1411_s1 + $0x38] sm:$0xff]  }
   0x5   :  { %vm14_vm2 = vcmp.ge.s32.totalorder %v13_v13, 64  ;;  %vm15_vm3 = vcmp.lt.s32.totalorder %v13_v13, 96  ;;  %v24_v15 = vld [vmem:[%s1412_s0] sm:$0xff]  ;;  %934 = vmatpush3.bf16.msra.mxu1 %v1007_v46  ;;  %v1008_v48 = vld [vmem:[%s1411_s1 + $0x30] sm:$0xff]   ;;  %v1009_v50 = vld [vmem:[%s1411_s1 + $0x28] sm:$0xff]  }
   0x6   :  { %vm1133_vm4 = vmand %vm14_vm2, %vm15_vm3  ;;  %935 = vmatprep.subr.bf16.mxu1 %v1063_v0  ;;  %v1010_v51 = vld [vmem:[%s1411_s1 + $0x20] sm:$0xff]   ;;  %v1011_v52 = vld [vmem:[%s1411_s1 + $0x18] sm:$0xff]  }
   0x7   :  { %916 = vmatpush3.bf16.msra.mxu0 %v1000_v2  ;;  %v1142_v17 = vsel %vm1133_vm4, 1.0, %v1067_v16  ;;  %v1151_v28 = vsel %vm1133_vm4, 0.0, %v1067_v16  ;;  %v1012_v53 = vld [vmem:[%s1411_s1 + $0x10] sm:$0xff]   ;;  %v1013_v54 = vld [vmem:[%s1411_s1 + $0x8] sm:$0xff]   ;;  %v1014_v55 = vld [vmem:[%s1411_s1] sm:$0xff]  }
   0x8   :  { %917 = vmatprep.subr.bf16.mxu0 %v1063_v0 }
   0x9   :  { %v144_v5 = vld [vmem:[#allocation3] sm:$0xff]  ;;  %v145_v6 = vld [vmem:[#allocation3 + $0x8] sm:$0xff]  ;;  %936 = vmatpush3.bf16.msra.mxu1 %v1008_v48 }
   0xa   :  { %148 = vrot.lane.b32.xlu1 %v144_v5, %s1065_s17  ;;  %937 = vmatprep.subr.bf16.mxu1 %v1063_v0 }
   0xb   :  { %918 = vmatpush3.bf16.msra.mxu0 %v1001_v3 }
   0xc   :  { %919 = vmatprep.subr.bf16.mxu0 %v1063_v0 }
   0xd   :  { %938 = vmatpush3.bf16.msra.mxu1 %v1009_v50 }
   0xe   :  { %150 = vrot.lane.b32.xlu1 %v145_v6, %s1065_s17  ;;  %939 = vmatprep.subr.bf16.mxu1 %v1063_v0 }
   0xf   :  { %920 = vmatpush3.bf16.msra.mxu0 %v1002_v4  ;;  %v833_v4 = vld [vmem:[%s1412_s0 + $0x10] sm:$0xff] }
  0x10   :  { %921 = vmatprep.subr.bf16.mxu0 %v1063_v0 }
  0x11   :  { %940 = vmatpush3.bf16.msra.mxu1 %v1010_v51 }
  0x12   :  { %941 = vmatprep.subr.bf16.mxu1 %v1063_v0 }
  0x13   :  { %922 = vmatpush3.bf16.msra.mxu0 %v1003_v7 }
  0x14   :  { %923 = vmatprep.subr.bf16.mxu0 %v1063_v0 }
  0x15   :  { %942 = vmatpush3.bf16.msra.mxu1 %v1011_v52 }
  0x16   :  { %943 = vmatprep.subr.bf16.mxu1 %v1063_v0 }
  0x17   :  { %924 = vmatpush3.bf16.msra.mxu0 %v1004_v8  ;;  %v834_v8 = vld [vmem:[%s1412_s0 + $0x18] sm:$0xff] }
  0x18   :  { %925 = vmatprep.subr.bf16.mxu0 %v1063_v0 }
  0x19   :  { %944 = vmatpush3.bf16.msra.mxu1 %v1012_v53 }
  0x1a   :  { %945 = vmatprep.subr.bf16.mxu1 %v1063_v0 }
  0x1b   :  { %926 = vmatpush3.bf16.msra.mxu0 %v1005_v9 }
  0x1c   :  { %927 = vmatprep.subr.bf16.mxu0 %v1063_v0 }
  0x1d   :  { %946 = vmatpush3.bf16.msra.mxu1 %v1013_v54 }
  0x1e   :  { %947 = vmatprep.subr.bf16.mxu1 %v1063_v0 }
  0x1f   :  { %928 = vmatpush3.bf16.msra.mxu0 %v1006_v10 }
  0x20   :  { %953 = vmatprep.subr.bf16.mxu0 %v1063_v0 }
  0x21   :  { %948 = vmatpush3.bf16.msra.mxu1 %v1014_v55 }
  0x22   :  { %930 = vmatmul.mubr.bf16.vlgmr.msra.gmra.mxu0 %v1066_v11  ;;  %973 = vmatprep.subr.bf16.mxu1 %v1063_v0 }
  0x23   :  { %969 = vmatprep.mubr.msk.bf16.mxu0 %vm1064_vm1, %v1063_v0 }
  0x7c   :  { %v149_v38 = vpop.permute.xlu1 %148 }
  0x80   :  { %v151_v40 = vpop.permute.xlu1 %150 }
  0xe2   :  { %v127_v18 = vpop.f32.mrf.mxu0 }
  0xe3   :  { %v134_v19 = vadd.f32 %v127_v18, %v24_v15 }
  0xe4   :  { %v931_v20 = vpop.f32.mrf.mxu0 }
  0xe5   :  { %v136_v22 = vmul.f32 %v134_v19, %v1142_v17 }
  0xe6   :  { %v130_v23 = vpop.f32.mrf.mxu0 }
  0xe7   :  { %1031 = vtanh.f32 %v136_v22  ;;  %v135_v24 = vadd.f32 %v130_v23, %v25_v21 }
  0xe8   :  { %v932_v25 = vpop.f32.mrf.mxu0 }
  0xe9   :  { %v137_v26 = vmul.f32 %v135_v24, %v1142_v17 }
  0xeb   :  { %1033 = vtanh.f32 %v137_v26 }
  0xf4   :  { %v1032_v27 = vpop.eup %1031 }
  0xf5   :  { %v140_v29 = vmul.f32 %v1032_v27, %v1142_v17 }
  0xf7   :  { %v142_v30 = vadd.f32 %v140_v29, %v1151_v28 }
  0xf8   :  { %v1034_v31 = vpop.eup %1033 }
  0xf9   :  { %158 = vrot.lane.b32.xlu0 %v142_v30, %s1068_s30  ;;  %v141_v32 = vmul.f32 %v1034_v31, %v1142_v17  ;;  %v154_v39 = vmul.f32 %v149_v38, %v142_v30  ;;  %v1016_v38 = vld [vmem:[%s1411_s1 + $0x30] sm:$0xff]  }
  0xfb   :  { %v143_v33 = vadd.f32 %v141_v32, %v1151_v28 }
  0xfd   :  { %160 = vrot.lane.b32.xlu0 %v143_v33, %s1068_s30  ;;  %v155_v43 = vmul.f32 %v151_v40, %v143_v33  ;;  %v1017_v40 = vld [vmem:[%s1411_s1 + $0x28] sm:$0xff]  }
 0x16b   :  { %v159_v34 = vpop.permute.xlu0 %158 }
 0x16c   :  { %v164_v35 = vmul.f32 %v159_v34, %v142_v30 }
 0x16e   :  { %168 = vrot.lane.b32.xlu0 %v164_v35, %s1065_s17 }
 0x16f   :  { %v161_v36 = vpop.permute.xlu0 %160 }
 0x170   :  { %v165_v37 = vmul.f32 %v161_v36, %v143_v33  ;;  %v1015_v36 = vld [vmem:[%s1411_s1 + $0x38] sm:$0xff]  }
 0x171   :  { %954 = vmatpush3.bf16.msra.mxu0 %v1015_v36  ;;  %v1029_v36 = vld [vmem:[%s1411_s1 + $0x8] sm:$0xff]  }
 0x172   :  { %170 = vrot.lane.b32.xlu1 %v165_v37, %s1065_s17  ;;  %955 = vmatprep.subr.bf16.mxu0 %v1063_v0 }
 0x175   :  { %956 = vmatpush3.bf16.msra.mxu0 %v1016_v38 }
 0x176   :  { %957 = vmatprep.subr.bf16.mxu0 %v1063_v0 }
 0x179   :  { %958 = vmatpush3.bf16.msra.mxu0 %v1017_v40 }
 0x17a   :  { %959 = vmatprep.subr.bf16.mxu0 %v1063_v0 }
 0x1e0   :  { %v169_v41 = vpop.permute.xlu0 %168 }
 0x1e1   :  { %v174_v42 = vadd.f32 %v169_v41, %v154_v39  ;;  %v1018_v41 = vld [vmem:[%s1411_s1 + $0x20] sm:$0xff]  }
 0x1e2   :  { %960 = vmatpush3.bf16.msra.mxu0 %v1018_v41 }
 0x1e3   :  { %1035 = vtanh.f32 %v174_v42  ;;  %961 = vmatprep.subr.bf16.mxu0 %v1063_v0 }
 0x1e4   :  { %v171_v44 = vpop.permute.xlu1 %170 }
 0x1e5   :  { %v175_v45 = vadd.f32 %v171_v44, %v155_v43  ;;  %v1020_v43 = vld [vmem:[%s1411_s1 + $0x10] sm:$0xff]   ;;  %v1021_v44 = vld [vmem:[%s1411_s1 + $0x8] sm:$0xff]  }
 0x1e7   :  { %1037 = vtanh.f32 %v175_v45 }
 0x1f0   :  { %v1036_v47 = vpop.eup %1035 }
 0x1f1   :  { %180 = vrot.lane.b32.xlu0 %v1036_v47, %s1068_s30 }
 0x1f4   :  { %v1038_v49 = vpop.eup %1037 }
 0x1f5   :  { %182 = vrot.lane.b32.xlu1 %v1038_v49, %s1068_s30 }
 0x263   :  { %v181_v56 = vpop.permute.xlu0 %180 }
 0x264   :  { %v1194_v57 = vmul.f32 %v181_v56, %v142_v30 }
 0x266   :  { %200 = vrot.lane.b32.xlu0 %v1194_v57, %s1065_s17 }
 0x267   :  { %v183_v58 = vpop.permute.xlu1 %182 }
 0x268   :  { %v1199_v59 = vmul.f32 %v183_v58, %v143_v33  ;;  %v845_v58 = vld [vmem:[%s1412_s0 + $0x20] sm:$0xff] }
 0x26a   :  { %202 = vrot.lane.b32.xlu1 %v1199_v59, %s1065_s17  ;;  %190 = vrot.lane.b32.xlu0 %v174_v42, %s1069_s20  ;;  %v1019_v42 = vld [vmem:[%s1411_s1 + $0x18] sm:$0xff]  }
 0x26b   :  { %962 = vmatpush3.bf16.msra.mxu0 %v1019_v42 }
 0x26c   :  { %963 = vmatprep.subr.bf16.mxu0 %v1063_v0 }
 0x26e   :  { %192 = vrot.lane.b32.xlu1 %v175_v45, %s1069_s20  ;;  %v1022_v45 = vld [vmem:[%s1411_s1] sm:$0xff]  }
 0x26f   :  { %964 = vmatpush3.bf16.msra.mxu0 %v1020_v43 }
 0x270   :  { %965 = vmatprep.subr.bf16.mxu0 %v1063_v0 }
 0x273   :  { %966 = vmatpush3.bf16.msra.mxu0 %v1021_v44 }
 0x274   :  { %967 = vmatprep.subr.bf16.mxu0 %v1063_v0 }
 0x277   :  { %968 = vmatpush3.bf16.msra.mxu0 %v1022_v45 }
 0x2d8   :  { %v201_v60 = vpop.permute.xlu0 %200 }
 0x2d9   :  { %206 = vst.msk [vmem:[#allocation2] sm:$0xff] %vm21_vm0, %v201_v60 }
 0x2dc   :  { %v203_v61 = vpop.permute.xlu1 %202  ;;  %v191_v62 = vpop.permute.xlu0 %190 }
 0x2dd   :  { %207 = vst.msk [vmem:[#allocation2 + $0x8] sm:$0xff] %vm21_vm0, %v203_v61  ;;  %196 = vst.msk [vmem:[#allocation3] sm:$0xff] %vm21_vm0, %v191_v62 }
 0x2e0   :  { %v193_v63 = vpop.permute.xlu1 %192  ;;  %v226_v1 = vld [vmem:[#allocation2] sm:$0xff] }
 0x2e1   :  { %197 = vst.msk [vmem:[#allocation3 + $0x8] sm:$0xff] %vm21_vm0, %v193_v63  ;;  %v846_v63 = vld [vmem:[%s1412_s0 + $0x28] sm:$0xff] }
 0x2e4   :  { %v227_v2 = vld [vmem:[#allocation2 + $0x8] sm:$0xff]  ;;  %v344_v21 = vld [vmem:[#allocation3] sm:$0xff] }
 0x2e5   :  { %v228_v3 = vpack.c.bf16 %v227_v2, %v226_v1 }
 0x2e7   :  { %950 = vmatmul.mubr.bf16.vlgmr.msra.gmra.mxu1 %v228_v3 }
 0x2e8   :  { %989 = vmatprep.mubr.msk.bf16.mxu1 %vm1064_vm1, %v1063_v0  ;;  %v345_v22 = vld [vmem:[#allocation3 + $0x8] sm:$0xff] }
 0x3a7   :  { %v327_v5 = vpop.f32.mrf.mxu1 }
 0x3a8   :  { %v334_v6 = vadd.f32 %v833_v4, %v327_v5 }
 0x3a9   :  { %v951_v7 = vpop.f32.mrf.mxu1 }
 0x3aa   :  { %v336_v9 = vmul.f32 %v334_v6, %v1142_v17 }
 0x3ab   :  { %v330_v10 = vpop.f32.mrf.mxu1 }
 0x3ac   :  { %1039 = vtanh.f32 %v336_v9  ;;  %v335_v11 = vadd.f32 %v834_v8, %v330_v10 }
 0x3ad   :  { %v952_v12 = vpop.f32.mrf.mxu1 }
 0x3ae   :  { %v337_v13 = vmul.f32 %v335_v11, %v1142_v17 }
 0x3b0   :  { %1041 = vtanh.f32 %v337_v13 }
 0x3b9   :  { %v1040_v14 = vpop.eup %1039 }
 0x3ba   :  { %v340_v15 = vmul.f32 %v1040_v14, %v1142_v17 }
 0x3bc   :  { %v342_v16 = vadd.f32 %v340_v15, %v1151_v28 }
 0x3bd   :  { %v1042_v18 = vpop.eup %1041 }
 0x3be   :  { %358 = vrot.lane.b32.xlu0 %v342_v16, %s1068_s30  ;;  %v341_v19 = vmul.f32 %v1042_v18, %v1142_v17 }
 0x3c0   :  { %v343_v20 = vadd.f32 %v341_v19, %v1151_v28 }
 0x3c2   :  { %360 = vrot.lane.b32.xlu1 %v343_v20, %s1068_s30  ;;  %348 = vrot.lane.b32.xlu0 %v344_v21, %s1065_s17 }
 0x3c6   :  { %350 = vrot.lane.b32.xlu1 %v345_v22, %s1065_s17 }
 0x430   :  { %v359_v23 = vpop.permute.xlu0 %358 }
 0x431   :  { %v364_v24 = vmul.f32 %v359_v23, %v342_v16 }
 0x433   :  { %368 = vrot.lane.b32.xlu0 %v364_v24, %s1065_s17 }
 0x434   :  { %v361_v25 = vpop.permute.xlu1 %360  ;;  %v349_v27 = vpop.permute.xlu0 %348 }
 0x435   :  { %v365_v26 = vmul.f32 %v361_v25, %v343_v20  ;;  %v354_v29 = vmul.f32 %v349_v27, %v342_v16  ;;  %v1023_v27 = vld [vmem:[%s1411_s1 + $0x38] sm:$0xff]  }
 0x436   :  { %974 = vmatpush3.bf16.msra.mxu1 %v1023_v27 }
 0x437   :  { %370 = vrot.lane.b32.xlu1 %v365_v26, %s1065_s17  ;;  %975 = vmatprep.subr.bf16.mxu1 %v1063_v0 }
 0x438   :  { %v351_v30 = vpop.permute.xlu1 %350 }
 0x439   :  { %v355_v33 = vmul.f32 %v351_v30, %v343_v20  ;;  %v1024_v30 = vld [vmem:[%s1411_s1 + $0x30] sm:$0xff]  }
 0x43a   :  { %976 = vmatpush3.bf16.msra.mxu1 %v1024_v30 }
 0x43b   :  { %977 = vmatprep.subr.bf16.mxu1 %v1063_v0 }
 0x4a5   :  { %v369_v31 = vpop.permute.xlu0 %368 }
 0x4a6   :  { %v374_v32 = vadd.f32 %v369_v31, %v354_v29 }
 0x4a8   :  { %1043 = vtanh.f32 %v374_v32 }
 0x4a9   :  { %v371_v34 = vpop.permute.xlu1 %370 }
 0x4aa   :  { %v375_v35 = vadd.f32 %v371_v34, %v355_v33  ;;  %v1026_v33 = vld [vmem:[%s1411_s1 + $0x20] sm:$0xff]   ;;  %v1027_v34 = vld [vmem:[%s1411_s1 + $0x18] sm:$0xff]  }
 0x4ac   :  { %1045 = vtanh.f32 %v375_v35 }
 0x4b5   :  { %v1044_v37 = vpop.eup %1043 }
 0x4b6   :  { %380 = vrot.lane.b32.xlu0 %v1044_v37, %s1068_s30  ;;  %v1030_v37 = vld [vmem:[%s1411_s1] sm:$0xff]  }
 0x4b9   :  { %v1046_v39 = vpop.eup %1045 }
 0x4ba   :  { %382 = vrot.lane.b32.xlu1 %v1046_v39, %s1068_s30 }
 0x528   :  { %v381_v46 = vpop.permute.xlu0 %380 }
 0x529   :  { %v1262_v47 = vmul.f32 %v381_v46, %v342_v16 }
 0x52b   :  { %400 = vrot.lane.b32.xlu0 %v1262_v47, %s1065_s17 }
 0x52c   :  { %v383_v48 = vpop.permute.xlu1 %382 }
 0x52d   :  { %v1266_v49 = vmul.f32 %v383_v48, %v343_v20 }
 0x52f   :  { %402 = vrot.lane.b32.xlu1 %v1266_v49, %s1065_s17  ;;  %390 = vrot.lane.b32.xlu0 %v374_v32, %s1069_s20  ;;  %v1025_v32 = vld [vmem:[%s1411_s1 + $0x28] sm:$0xff]  }
 0x530   :  { %978 = vmatpush3.bf16.msra.mxu1 %v1025_v32 }
 0x531   :  { %979 = vmatprep.subr.bf16.mxu1 %v1063_v0 }
 0x533   :  { %392 = vrot.lane.b32.xlu1 %v375_v35, %s1069_s20  ;;  %v1028_v35 = vld [vmem:[%s1411_s1 + $0x10] sm:$0xff]  }
 0x534   :  { %980 = vmatpush3.bf16.msra.mxu1 %v1026_v33 }
 0x535   :  { %981 = vmatprep.subr.bf16.mxu1 %v1063_v0 }
 0x538   :  { %982 = vmatpush3.bf16.msra.mxu1 %v1027_v34 }
 0x539   :  { %983 = vmatprep.subr.bf16.mxu1 %v1063_v0 }
 0x53c   :  { %984 = vmatpush3.bf16.msra.mxu1 %v1028_v35 }
 0x53d   :  { %985 = vmatprep.subr.bf16.mxu1 %v1063_v0 }
 0x540   :  { %986 = vmatpush3.bf16.msra.mxu1 %v1029_v36 }
 0x541   :  { %987 = vmatprep.subr.bf16.mxu1 %v1063_v0 }
 0x544   :  { %988 = vmatpush3.bf16.msra.mxu1 %v1030_v37 }
 0x59d   :  { %v401_v50 = vpop.permute.xlu0 %400 }
 0x59e   :  { %406 = vst.msk [vmem:[#allocation2] sm:$0xff] %vm21_vm0, %v401_v50  ;;  %v857_v50 = vld [vmem:[%s1412_s0 + $0x30] sm:$0xff] }
 0x5a1   :  { %v403_v51 = vpop.permute.xlu1 %402  ;;  %v391_v52 = vpop.permute.xlu0 %390 }
 0x5a2   :  { %407 = vst.msk [vmem:[#allocation2 + $0x8] sm:$0xff] %vm21_vm0, %v403_v51  ;;  %396 = vst.msk [vmem:[#allocation3] sm:$0xff] %vm21_vm0, %v391_v52 }
 0x5a5   :  { %v393_v53 = vpop.permute.xlu1 %392  ;;  %v426_v54 = vld [vmem:[#allocation2] sm:$0xff] }
 0x5a6   :  { %397 = vst.msk [vmem:[#allocation3 + $0x8] sm:$0xff] %vm21_vm0, %v393_v53 }
 0x5a9   :  { %v427_v55 = vld [vmem:[#allocation2 + $0x8] sm:$0xff]  ;;  %v544_v12 = vld [vmem:[#allocation3] sm:$0xff] }
 0x5aa   :  { %v428_v56 = vpack.c.bf16 %v427_v55, %v426_v54  ;;  %v858_v54 = vld [vmem:[%s1412_s0 + $0x38] sm:$0xff] }
 0x5ac   :  { %970 = vmatmul.mubr.bf16.vlgmr.msra.gmra.mxu0 %v428_v56 }
 0x5ad   :  { %v545_v13 = vld [vmem:[#allocation3 + $0x8] sm:$0xff] }
 0x66c   :  { %v527_v60 = vpop.f32.mrf.mxu0 }
 0x66d   :  { %v534_v61 = vadd.f32 %v845_v58, %v527_v60 }
 0x66e   :  { %v971_v62 = vpop.f32.mrf.mxu0 }
 0x66f   :  { %v536_v1 = vmul.f32 %v534_v61, %v1142_v17 }
 0x670   :  { %v530_v2 = vpop.f32.mrf.mxu0 }
 0x671   :  { %1047 = vtanh.f32 %v536_v1  ;;  %v535_v3 = vadd.f32 %v846_v63, %v530_v2 }
 0x672   :  { %v972_v4 = vpop.f32.mrf.mxu0 }
 0x673   :  { %v537_v5 = vmul.f32 %v535_v3, %v1142_v17 }
 0x675   :  { %1049 = vtanh.f32 %v537_v5 }
 0x67e   :  { %v1048_v6 = vpop.eup %1047 }
 0x67f   :  { %v540_v7 = vmul.f32 %v1048_v6, %v1142_v17 }
 0x681   :  { %v542_v8 = vadd.f32 %v540_v7, %v1151_v28 }
 0x682   :  { %v1050_v9 = vpop.eup %1049 }
 0x683   :  { %558 = vrot.lane.b32.xlu0 %v542_v8, %s1068_s30  ;;  %v541_v10 = vmul.f32 %v1050_v9, %v1142_v17 }
 0x685   :  { %v543_v11 = vadd.f32 %v541_v10, %v1151_v28 }
 0x687   :  { %560 = vrot.lane.b32.xlu1 %v543_v11, %s1068_s30  ;;  %548 = vrot.lane.b32.xlu0 %v544_v12, %s1065_s17 }
 0x68b   :  { %550 = vrot.lane.b32.xlu1 %v545_v13, %s1065_s17 }
 0x6f5   :  { %v559_v14 = vpop.permute.xlu0 %558 }
 0x6f6   :  { %v564_v15 = vmul.f32 %v559_v14, %v542_v8 }
 0x6f8   :  { %568 = vrot.lane.b32.xlu0 %v564_v15, %s1065_s17 }
 0x6f9   :  { %v561_v16 = vpop.permute.xlu1 %560  ;;  %v549_v19 = vpop.permute.xlu0 %548 }
 0x6fa   :  { %v565_v18 = vmul.f32 %v561_v16, %v543_v11  ;;  %v554_v20 = vmul.f32 %v549_v19, %v542_v8  ;;  %v869_v19 = vpack.c.bf16 %v1194_v57, %v1194_v57 }
 0x6fc   :  { %570 = vrot.lane.b32.xlu1 %v565_v18, %s1065_s17 }
 0x6fd   :  { %v551_v21 = vpop.permute.xlu1 %550 }
 0x6fe   :  { %v555_v24 = vmul.f32 %v551_v21, %v543_v11  ;;  %v870_v21 = vpack.c.bf16 %v1199_v59, %v1199_v59 }
 0x76a   :  { %v569_v22 = vpop.permute.xlu0 %568 }
 0x76b   :  { %v574_v23 = vadd.f32 %v569_v22, %v554_v20  ;;  %v871_v22 = vpack.c.bf16 %v1262_v47, %v1262_v47 }
 0x76d   :  { %1051 = vtanh.f32 %v574_v23 }
 0x76e   :  { %v571_v25 = vpop.permute.xlu1 %570 }
 0x76f   :  { %v575_v26 = vadd.f32 %v571_v25, %v555_v24 }
 0x771   :  { %1053 = vtanh.f32 %v575_v26 }
 0x77a   :  { %v1052_v29 = vpop.eup %1051 }
 0x77b   :  { %580 = vrot.lane.b32.xlu0 %v1052_v29, %s1068_s30 }
 0x77e   :  { %v1054_v31 = vpop.eup %1053 }
 0x77f   :  { %582 = vrot.lane.b32.xlu1 %v1054_v31, %s1068_s30 }
 0x7ed   :  { %v581_v38 = vpop.permute.xlu0 %580 }
 0x7ee   :  { %v1327_v39 = vmul.f32 %v581_v38, %v542_v8 }
 0x7f0   :  { %600 = vrot.lane.b32.xlu0 %v1327_v39, %s1065_s17  ;;  %v873_v57 = vpack.c.bf16 %v1327_v39, %v1327_v39 }
 0x7f1   :  { %v583_v40 = vpop.permute.xlu1 %582 }
 0x7f2   :  { %v1331_v41 = vmul.f32 %v583_v40, %v543_v11 }
 0x7f4   :  { %602 = vrot.lane.b32.xlu1 %v1331_v41, %s1065_s17  ;;  %590 = vrot.lane.b32.xlu0 %v574_v23, %s1069_s20  ;;  %v872_v23 = vpack.c.bf16 %v1266_v49, %v1266_v49  ;;  %v874_v59 = vpack.c.bf16 %v1331_v41, %v1331_v41 }
 0x7f8   :  { %592 = vrot.lane.b32.xlu1 %v575_v26, %s1069_s20 }
 0x862   :  { %v601_v0 = vpop.permute.xlu0 %600 }
 0x863   :  { %606 = vst.msk [vmem:[#allocation2] sm:$0xff] %vm21_vm0, %v601_v0 }
 0x866   :  { %v603_v42 = vpop.permute.xlu1 %602  ;;  %v591_v43 = vpop.permute.xlu0 %590 }
 0x867   :  { %607 = vst.msk [vmem:[#allocation2 + $0x8] sm:$0xff] %vm21_vm0, %v603_v42  ;;  %596 = vst.msk [vmem:[#allocation3] sm:$0xff] %vm21_vm0, %v591_v43 }
 0x86a   :  { %v593_v44 = vpop.permute.xlu1 %592  ;;  %v626_v45 = vld [vmem:[#allocation2] sm:$0xff] }
 0x86b   :  { %597 = vst.msk [vmem:[#allocation3 + $0x8] sm:$0xff] %vm21_vm0, %v593_v44 }
 0x86e   :  { %v627_v46 = vld [vmem:[#allocation2 + $0x8] sm:$0xff]  ;;  %v744_v5 = vld [vmem:[#allocation3] sm:$0xff] }
 0x86f   :  { %v628_v48 = vpack.c.bf16 %v627_v46, %v626_v45 }
 0x871   :  { %990 = vmatmul.mubr.bf16.vlgmr.msra.gmra.mxu1 %v628_v48 }
 0x872   :  { %v745_v6 = vld [vmem:[#allocation3 + $0x8] sm:$0xff] }
 0x931   :  { %v727_v51 = vpop.f32.mrf.mxu1 }
 0x932   :  { %v734_v52 = vadd.f32 %v857_v50, %v727_v51 }
 0x933   :  { %v991_v53 = vpop.f32.mrf.mxu1 }
 0x934   :  { %v736_v55 = vmul.f32 %v734_v52, %v1142_v17 }
 0x935   :  { %v730_v56 = vpop.f32.mrf.mxu1 }
 0x936   :  { %1055 = vtanh.f32 %v736_v55  ;;  %v735_v58 = vadd.f32 %v858_v54, %v730_v56 }
 0x937   :  { %v992_v60 = vpop.f32.mrf.mxu1 }
 0x938   :  { %v737_v61 = vmul.f32 %v735_v58, %v1142_v17 }
 0x93a   :  { %1057 = vtanh.f32 %v737_v61 }
 0x943   :  { %v1056_v62 = vpop.eup %1055 }
 0x944   :  { %v740_v63 = vmul.f32 %v1056_v62, %v1142_v17 }
 0x946   :  { %v742_v1 = vadd.f32 %v740_v63, %v1151_v28 }
 0x947   :  { %v1058_v2 = vpop.eup %1057 }
 0x948   :  { %758 = vrot.lane.b32.xlu0 %v742_v1, %s1068_s30  ;;  %v741_v3 = vmul.f32 %v1058_v2, %v1142_v17 }
 0x94a   :  { %v743_v4 = vadd.f32 %v741_v3, %v1151_v28 }
 0x94c   :  { %760 = vrot.lane.b32.xlu1 %v743_v4, %s1068_s30  ;;  %748 = vrot.lane.b32.xlu0 %v744_v5, %s1065_s17 }
 0x950   :  { %750 = vrot.lane.b32.xlu1 %v745_v6, %s1065_s17 }
 0x9ba   :  { %v759_v7 = vpop.permute.xlu0 %758 }
 0x9bb   :  { %v764_v8 = vmul.f32 %v759_v7, %v742_v1 }
 0x9bd   :  { %768 = vrot.lane.b32.xlu0 %v764_v8, %s1065_s17 }
 0x9be   :  { %v761_v9 = vpop.permute.xlu1 %760  ;;  %v749_v11 = vpop.permute.xlu0 %748 }
 0x9bf   :  { %v765_v10 = vmul.f32 %v761_v9, %v743_v4  ;;  %v754_v17 = vmul.f32 %v749_v11, %v742_v1 }
 0x9c1   :  { %770 = vrot.lane.b32.xlu1 %v765_v10, %s1065_s17 }
 0x9c2   :  { %v751_v12 = vpop.permute.xlu1 %750 }
 0x9c3   :  { %v755_v14 = vmul.f32 %v751_v12, %v743_v4 }
 0xa2f   :  { %v769_v28 = vpop.permute.xlu0 %768 }
 0xa30   :  { %v774_v13 = vadd.f32 %v769_v28, %v754_v17 }
 0xa32   :  { %1059 = vtanh.f32 %v774_v13 }
 0xa33   :  { %v771_v15 = vpop.permute.xlu1 %770 }
 0xa34   :  { %v775_v16 = vadd.f32 %v771_v15, %v755_v14 }
 0xa36   :  { %1061 = vtanh.f32 %v775_v16 }
 0xa3f   :  { %v1060_v18 = vpop.eup %1059 }
 0xa40   :  { %780 = vrot.lane.b32.xlu0 %v1060_v18, %s1068_s30 }
 0xa43   :  { %v1062_v20 = vpop.eup %1061 }
 0xa44   :  { %782 = vrot.lane.b32.xlu1 %v1062_v20, %s1068_s30  ;;  %214 = vrot.lane.b32.xlu0 %v869_v19, %s1065_s17 }
 0xa48   :  { %216 = vrot.lane.b32.xlu1 %v870_v21, %s1065_s17  ;;  %414 = vrot.lane.b32.xlu0 %v871_v22, %s1068_s30 }
 0xa4c   :  { %416 = vrot.lane.b32.xlu1 %v872_v23, %s1068_s30  ;;  %614 = vrot.lane.b32.xlu0 %v873_v57, %s1069_s20 }
 0xa50   :  { %616 = vrot.lane.b32.xlu1 %v874_v59, %s1069_s20  ;;  %790 = vrot.lane.b32.xlu0 %v774_v13, %s1069_s20 }
 0xa54   :  { %792 = vrot.lane.b32.xlu1 %v775_v16, %s1069_s20 }
 0xab2   :  { %v781_v47 = vpop.permute.xlu0 %780 }
 0xab3   :  { %v786_v24 = vmul.f32 %v781_v47, %v742_v1 }
 0xab5   :  { %800 = vrot.lane.b32.xlu0 %v786_v24, %s1065_s17  ;;  %v875_v30 = vpack.c.bf16 %v786_v24, %v786_v24 }
 0xab6   :  { %v783_v49 = vpop.permute.xlu1 %782  ;;  %v215_v25 = vpop.permute.xlu0 %214 }
 0xab7   :  { %v787_v26 = vmul.f32 %v783_v49, %v743_v4  ;;  %221 = vst.msk [vmem:[%s1413_s2] sm:$0xf] %vm220_vm5, %v215_v25 }
 0xab9   :  { %802 = vrot.lane.b32.xlu1 %v787_v26, %s1065_s17  ;;  %v876_v33 = vpack.c.bf16 %v787_v26, %v787_v26 }
 0xaba   :  { %v217_v27 = vpop.permute.xlu1 %216  ;;  %v415_v29 = vpop.permute.xlu0 %414 }
 0xabb   :  { %222 = vst.msk [vmem:[%s1413_s2 + $0x4] sm:$0xf] %vm220_vm5, %v217_v27 }
 0xabc   :  { %421 = vst.msk [vmem:[%s1413_s2] sm:$0xf] %vm420_vm6, %v415_v29 }
 0xabe   :  { %v417_v31 = vpop.permute.xlu1 %416  ;;  %v615_v32 = vpop.permute.xlu0 %614 }
 0xabf   :  { %422 = vst.msk [vmem:[%s1413_s2 + $0x4] sm:$0xf] %vm420_vm6, %v417_v31 }
 0xac0   :  { %621 = vst.msk [vmem:[%s1413_s2] sm:$0xf] %vm620_vm7, %v615_v32 }
 0xac1   :  { %817 = vst.msk [vmem:[%s1413_s2] sm:$0xf] %vm816_vm8, %v875_v30 }
 0xac2   :  { %v617_v34 = vpop.permute.xlu1 %616  ;;  %v791_v35 = vpop.permute.xlu0 %790 }
 0xac3   :  { %622 = vst.msk [vmem:[%s1413_s2 + $0x4] sm:$0xf] %vm620_vm7, %v617_v34 }
 0xac4   :  { %796 = vst.msk [vmem:[#allocation3] sm:$0xff] %vm21_vm0, %v791_v35 }
 0xac5   :  { %818 = vst.msk [vmem:[%s1413_s2 + $0x4] sm:$0xf] %vm816_vm8, %v876_v33 }
 0xac6   :  { %v793_v36 = vpop.permute.xlu1 %792 }
 0xac7   :  { %797 = vst.msk [vmem:[#allocation3 + $0x8] sm:$0xff] %vm21_vm0, %v793_v36 }
 0xb27   :  { %v801_v37 = vpop.permute.xlu0 %800 }
 0xb28   :  { %806 = vst.msk [vmem:[#allocation2] sm:$0xff] %vm21_vm0, %v801_v37 }
 0xb2b   :  { %v803_v38 = vpop.permute.xlu1 %802 }
 0xb2c   :  { %807 = vst.msk [vmem:[#allocation2 + $0x8] sm:$0xff] %vm21_vm0, %v803_v38 }

// kernel: hier_rnn_forward.6
= control target key start
LH: loop header
LB: loop body
LE: loop exit
PB: predicated region body
PF: predicated region fallthrough
CT: control target
= control target key end

     0   :  { %vm21_vm0 = vcmask 64512   ;;  %v2103_v0 = vmov 0.0   ;;  %vm2104_vm1 = vmmov 0   ;;  %s2105_s17 = smov 8   ;;  %v2106_v11 = vmov 0.0|0.0   ;;  %s2108_s30 = smov 112   ;;  %s2771_s1 = inlined_call_operand.vmem [shape: bf16[128,128], index: 1, kind: input, shape index: {}]   ;;  %s2772_s0 = inlined_call_operand.vmem [shape: f32[8,16,128], index: 0, kind: input, shape index: {}]   ;;  %s2773_s2 = inlined_call_operand.vmem [shape: bf16[16,64], index: 2, kind: output, shape index: {}]  }
   0x1   :  { %1805 = vmatprep.subr.bf16.mxu0 %v2103_v0  ;;  %19 = vst [vmem:[#allocation2] sm:$0xff] %v2103_v0  ;;  %20 = vst [vmem:[#allocation2 + $0x8] sm:$0xff] %v2103_v0  ;;  %v1975_v1 = vld [vmem:[%s2771_s1 + $0x38] sm:$0xff]   ;;  %1821 = vmatprep.mubr.msk.bf16.mxu0 %vm2104_vm1, %v2103_v0  ;;  %v1976_v2 = vld [vmem:[%s2771_s1 + $0x30] sm:$0xff]   ;;  %v12_v12 = vlaneseq  ;;  %v2107_v16 = vmov 0.5   ;;  %s2109_s7 = smov 16  }
   0x2   :  { %22 = vst.msk [vmem:[#allocation3] sm:$0xff] %vm21_vm0, %v2103_v0  ;;  %23 = vst.msk [vmem:[#allocation3 + $0x8] sm:$0xff] %vm21_vm0, %v2103_v0  ;;  %1825 = vmatprep.subr.bf16.mxu1 %v2103_v0  ;;  %1841 = vmatprep.mubr.msk.bf16.mxu1 %vm2104_vm1, %v2103_v0  ;;  %v1977_v3 = vld [vmem:[%s2771_s1 + $0x28] sm:$0xff]   ;;  %v1978_v4 = vld [vmem:[%s2771_s1 + $0x20] sm:$0xff]   ;;  %s2110_s21 = smov 104   ;;  %s2111_s22 = smov 120  }
   0x3   :  { %1806 = vmatpush3.bf16.msra.mxu0 %v1975_v1  ;;  %v1979_v7 = vld [vmem:[%s2771_s1 + $0x18] sm:$0xff]   ;;  %v1980_v8 = vld [vmem:[%s2771_s1 + $0x10] sm:$0xff]   ;;  %v1981_v9 = vld [vmem:[%s2771_s1 + $0x8] sm:$0xff]   ;;  %v13_v13 = vand.u32 127, %v12_v12  ;;  %vm220_vm5 = vcmask 60416   ;;  %vm420_vm6 = vcmask 126016  }
   0x4   :  { %1807 = vmatprep.subr.bf16.mxu0 %v2103_v0  ;;  %v1982_v10 = vld [vmem:[%s2771_s1] sm:$0xff]   ;;  %v25_v21 = vld [vmem:[%s2772_s0 + $0x8] sm:$0xff]  ;;  %v1983_v46 = vld [vmem:[%s2771_s1 + $0x38] sm:$0xff]   ;;  %vm620_vm7 = vcmask 191616   ;;  %vm816_vm8 = vcmask 257216   ;;  %vm1016_vm9 = vcmask 322816  }
   0x5   :  { %vm14_vm2 = vcmp.ge.s32.totalorder %v13_v13, 16  ;;  %vm15_vm3 = vcmp.lt.s32.totalorder %v13_v13, 24  ;;  %v24_v15 = vld [vmem:[%s2772_s0] sm:$0xff]  ;;  %1826 = vmatpush3.bf16.msra.mxu1 %v1983_v46  ;;  %v1984_v48 = vld [vmem:[%s2771_s1 + $0x30] sm:$0xff]   ;;  %v1985_v50 = vld [vmem:[%s2771_s1 + $0x28] sm:$0xff]   ;;  %vm1216_vm10 = vcmask 388416  }
   0x6   :  { %vm2177_vm4 = vmand %vm14_vm2, %vm15_vm3  ;;  %1827 = vmatprep.subr.bf16.mxu1 %v2103_v0  ;;  %v1986_v51 = vld [vmem:[%s2771_s1 + $0x20] sm:$0xff]   ;;  %v1987_v52 = vld [vmem:[%s2771_s1 + $0x18] sm:$0xff]   ;;  %vm1416_vm11 = vcmask 454016   ;;  %vm1616_vm12 = vcmask 519616  }
   0x7   :  { %1808 = vmatpush3.bf16.msra.mxu0 %v1976_v2  ;;  %v2186_v17 = vsel %vm2177_vm4, 1.0, %v2107_v16  ;;  %v2195_v28 = vsel %vm2177_vm4, 0.0, %v2107_v16  ;;  %v1988_v53 = vld [vmem:[%s2771_s1 + $0x10] sm:$0xff]   ;;  %v1989_v54 = vld [vmem:[%s2771_s1 + $0x8] sm:$0xff]   ;;  %v1990_v55 = vld [vmem:[%s2771_s1] sm:$0xff]  }
   0x8   :  { %1809 = vmatprep.subr.bf16.mxu0 %v2103_v0 }
   0x9   :  { %v144_v5 = vld [vmem:[#allocation3] sm:$0xff]  ;;  %v145_v6 = vld [vmem:[#allocation3 + $0x8] sm:$0xff]  ;;  %1828 = vmatpush3.bf16.msra.mxu1 %v1984_v48 }
   0xa   :  { %148 = vrot.lane.b32.xlu1 %v144_v5, %s2105_s17  ;;  %1829 = vmatprep.subr.bf16.mxu1 %v2103_v0 }
   0xb   :  { %1810 = vmatpush3.bf16.msra.mxu0 %v1977_v3 }
   0xc   :  { %1811 = vmatprep.subr.bf16.mxu0 %v2103_v0 }
   0xd   :  { %1830 = vmatpush3.bf16.msra.mxu1 %v1985_v50 }
   0xe   :  { %150 = vrot.lane.b32.xlu1 %v145_v6, %s2105_s17  ;;  %1831 = vmatprep.subr.bf16.mxu1 %v2103_v0 }
   0xf   :  { %1812 = vmatpush3.bf16.msra.mxu0 %v1978_v4  ;;  %v1633_v4 = vld [vmem:[%s2772_s0 + $0x10] sm:$0xff] }
  0x10   :  { %1813 = vmatprep.subr.bf16.mxu0 %v2103_v0 }
  0x11   :  { %1832 = vmatpush3.bf16.msra.mxu1 %v1986_v51 }
  0x12   :  { %1833 = vmatprep.subr.bf16.mxu1 %v2103_v0 }
  0x13   :  { %1814 = vmatpush3.bf16.msra.mxu0 %v1979_v7 }
  0x14   :  { %1815 = vmatprep.subr.bf16.mxu0 %v2103_v0 }
  0x15   :  { %1834 = vmatpush3.bf16.msra.mxu1 %v1987_v52 }
  0x16   :  { %1835 = vmatprep.subr.bf16.mxu1 %v2103_v0 }
  0x17   :  { %1816 = vmatpush3.bf16.msra.mxu0 %v1980_v8  ;;  %v1634_v8 = vld [vmem:[%s2772_s0 + $0x18] sm:$0xff] }
  0x18   :  { %1817 = vmatprep.subr.bf16.mxu0 %v2103_v0 }
  0x19   :  { %1836 = vmatpush3.bf16.msra.mxu1 %v1988_v53 }
  0x1a   :  { %1837 = vmatprep.subr.bf16.mxu1 %v2103_v0 }
  0x1b   :  { %1818 = vmatpush3.bf16.msra.mxu0 %v1981_v9 }
  0x1c   :  { %1819 = vmatprep.subr.bf16.mxu0 %v2103_v0 }
  0x1d   :  { %1838 = vmatpush3.bf16.msra.mxu1 %v1989_v54 }
  0x1e   :  { %1839 = vmatprep.subr.bf16.mxu1 %v2103_v0 }
  0x1f   :  { %1820 = vmatpush3.bf16.msra.mxu0 %v1982_v10 }
  0x20   :  { %1845 = vmatprep.subr.bf16.mxu0 %v2103_v0 }
  0x21   :  { %1840 = vmatpush3.bf16.msra.mxu1 %v1990_v55 }
  0x22   :  { %1822 = vmatmul.mubr.bf16.vlgmr.msra.gmra.mxu0 %v2106_v11  ;;  %1865 = vmatprep.subr.bf16.mxu1 %v2103_v0 }
  0x23   :  { %1861 = vmatprep.mubr.msk.bf16.mxu0 %vm2104_vm1, %v2103_v0 }
  0x7c   :  { %v149_v38 = vpop.permute.xlu1 %148 }
  0x80   :  { %v151_v40 = vpop.permute.xlu1 %150 }
  0xe2   :  { %v127_v18 = vpop.f32.mrf.mxu0 }
  0xe3   :  { %v134_v19 = vadd.f32 %v127_v18, %v24_v15 }
  0xe4   :  { %v1823_v20 = vpop.f32.mrf.mxu0 }
  0xe5   :  { %v136_v22 = vmul.f32 %v134_v19, %v2186_v17 }
  0xe6   :  { %v130_v23 = vpop.f32.mrf.mxu0 }
  0xe7   :  { %2039 = vtanh.f32 %v136_v22  ;;  %v135_v24 = vadd.f32 %v130_v23, %v25_v21 }
  0xe8   :  { %v1824_v25 = vpop.f32.mrf.mxu0 }
  0xe9   :  { %v137_v26 = vmul.f32 %v135_v24, %v2186_v17 }
  0xeb   :  { %2041 = vtanh.f32 %v137_v26 }
  0xf4   :  { %v2040_v27 = vpop.eup %2039 }
  0xf5   :  { %v140_v29 = vmul.f32 %v2040_v27, %v2186_v17 }
  0xf7   :  { %v142_v30 = vadd.f32 %v140_v29, %v2195_v28 }
  0xf8   :  { %v2042_v31 = vpop.eup %2041 }
  0xf9   :  { %158 = vrot.lane.b32.xlu0 %v142_v30, %s2108_s30  ;;  %v141_v32 = vmul.f32 %v2042_v31, %v2186_v17  ;;  %v154_v39 = vmul.f32 %v149_v38, %v142_v30  ;;  %v1992_v38 = vld [vmem:[%s2771_s1 + $0x30] sm:$0xff]  }
  0xfb   :  { %v143_v33 = vadd.f32 %v141_v32, %v2195_v28 }
  0xfd   :  { %160 = vrot.lane.b32.xlu0 %v143_v33, %s2108_s30  ;;  %v155_v43 = vmul.f32 %v151_v40, %v143_v33  ;;  %v1993_v40 = vld [vmem:[%s2771_s1 + $0x28] sm:$0xff]  }
 0x16b   :  { %v159_v34 = vpop.permute.xlu0 %158 }
 0x16c   :  { %v164_v35 = vmul.f32 %v159_v34, %v142_v30 }
 0x16e   :  { %168 = vrot.lane.b32.xlu0 %v164_v35, %s2105_s17 }
 0x16f   :  { %v161_v36 = vpop.permute.xlu0 %160 }
 0x170   :  { %v165_v37 = vmul.f32 %v161_v36, %v143_v33  ;;  %v1991_v36 = vld [vmem:[%s2771_s1 + $0x38] sm:$0xff]  }
 0x171   :  { %1846 = vmatpush3.bf16.msra.mxu0 %v1991_v36  ;;  %v2005_v36 = vld [vmem:[%s2771_s1 + $0x8] sm:$0xff]  }
 0x172   :  { %170 = vrot.lane.b32.xlu1 %v165_v37, %s2105_s17  ;;  %1847 = vmatprep.subr.bf16.mxu0 %v2103_v0 }
 0x175   :  { %1848 = vmatpush3.bf16.msra.mxu0 %v1992_v38 }
 0x176   :  { %1849 = vmatprep.subr.bf16.mxu0 %v2103_v0 }
 0x179   :  { %1850 = vmatpush3.bf16.msra.mxu0 %v1993_v40 }
 0x17a   :  { %1851 = vmatprep.subr.bf16.mxu0 %v2103_v0 }
 0x1e0   :  { %v169_v41 = vpop.permute.xlu0 %168 }
 0x1e1   :  { %v174_v42 = vadd.f32 %v169_v41, %v154_v39  ;;  %v1994_v41 = vld [vmem:[%s2771_s1 + $0x20] sm:$0xff]  }
 0x1e2   :  { %1852 = vmatpush3.bf16.msra.mxu0 %v1994_v41 }
 0x1e3   :  { %2043 = vtanh.f32 %v174_v42  ;;  %1853 = vmatprep.subr.bf16.mxu0 %v2103_v0 }
 0x1e4   :  { %v171_v44 = vpop.permute.xlu1 %170 }
 0x1e5   :  { %v175_v45 = vadd.f32 %v171_v44, %v155_v43  ;;  %v1996_v43 = vld [vmem:[%s2771_s1 + $0x10] sm:$0xff]   ;;  %v1997_v44 = vld [vmem:[%s2771_s1 + $0x8] sm:$0xff]  }
 0x1e7   :  { %2045 = vtanh.f32 %v175_v45 }
 0x1f0   :  { %v2044_v47 = vpop.eup %2043 }
 0x1f1   :  { %180 = vrot.lane.b32.xlu0 %v2044_v47, %s2109_s7 }
 0x1f4   :  { %v2046_v49 = vpop.eup %2045 }
 0x1f5   :  { %182 = vrot.lane.b32.xlu1 %v2046_v49, %s2109_s7 }
 0x263   :  { %v181_v56 = vpop.permute.xlu0 %180 }
 0x264   :  { %v2238_v57 = vmul.f32 %v181_v56, %v142_v30 }
 0x266   :  { %200 = vrot.lane.b32.xlu0 %v2238_v57, %s2110_s21 }
 0x267   :  { %v183_v58 = vpop.permute.xlu1 %182 }
 0x268   :  { %v2243_v59 = vmul.f32 %v183_v58, %v143_v33  ;;  %v1645_v58 = vld [vmem:[%s2772_s0 + $0x20] sm:$0xff] }
 0x26a   :  { %202 = vrot.lane.b32.xlu1 %v2243_v59, %s2110_s21  ;;  %190 = vrot.lane.b32.xlu0 %v174_v42, %s2111_s22  ;;  %v1995_v42 = vld [vmem:[%s2771_s1 + $0x18] sm:$0xff]  }
 0x26b   :  { %1854 = vmatpush3.bf16.msra.mxu0 %v1995_v42 }
 0x26c   :  { %1855 = vmatprep.subr.bf16.mxu0 %v2103_v0 }
 0x26e   :  { %192 = vrot.lane.b32.xlu1 %v175_v45, %s2111_s22  ;;  %v1998_v45 = vld [vmem:[%s2771_s1] sm:$0xff]  }
 0x26f   :  { %1856 = vmatpush3.bf16.msra.mxu0 %v1996_v43 }
 0x270   :  { %1857 = vmatprep.subr.bf16.mxu0 %v2103_v0 }
 0x273   :  { %1858 = vmatpush3.bf16.msra.mxu0 %v1997_v44 }
 0x274   :  { %1859 = vmatprep.subr.bf16.mxu0 %v2103_v0 }
 0x277   :  { %1860 = vmatpush3.bf16.msra.mxu0 %v1998_v45 }
 0x278   :  { %1885 = vmatprep.subr.bf16.mxu0 %v2103_v0 }
 0x2d8   :  { %v201_v60 = vpop.permute.xlu0 %200 }
 0x2d9   :  { %206 = vst.msk [vmem:[#allocation2] sm:$0xff] %vm21_vm0, %v201_v60 }
 0x2dc   :  { %v203_v61 = vpop.permute.xlu1 %202  ;;  %v191_v62 = vpop.permute.xlu0 %190 }
 0x2dd   :  { %207 = vst.msk [vmem:[#allocation2 + $0x8] sm:$0xff] %vm21_vm0, %v203_v61  ;;  %196 = vst.msk [vmem:[#allocation3] sm:$0xff] %vm21_vm0, %v191_v62 }
 0x2e0   :  { %v193_v63 = vpop.permute.xlu1 %192  ;;  %v226_v1 = vld [vmem:[#allocation2] sm:$0xff] }
 0x2e1   :  { %197 = vst.msk [vmem:[#allocation3 + $0x8] sm:$0xff] %vm21_vm0, %v193_v63  ;;  %v1646_v63 = vld [vmem:[%s2772_s0 + $0x28] sm:$0xff] }
 0x2e4   :  { %v227_v2 = vld [vmem:[#allocation2 + $0x8] sm:$0xff]  ;;  %v344_v21 = vld [vmem:[#allocation3] sm:$0xff] }
 0x2e5   :  { %v228_v3 = vpack.c.bf16 %v227_v2, %v226_v1 }
 0x2e7   :  { %1842 = vmatmul.mubr.bf16.vlgmr.msra.gmra.mxu1 %v228_v3 }
 0x2e8   :  { %1881 = vmatprep.mubr.msk.bf16.mxu1 %vm2104_vm1, %v2103_v0  ;;  %v345_v22 = vld [vmem:[#allocation3 + $0x8] sm:$0xff] }
 0x3a7   :  { %v327_v5 = vpop.f32.mrf.mxu1 }
 0x3a8   :  { %v334_v6 = vadd.f32 %v1633_v4, %v327_v5 }
 0x3a9   :  { %v1843_v7 = vpop.f32.mrf.mxu1 }
 0x3aa   :  { %v336_v9 = vmul.f32 %v334_v6, %v2186_v17 }
 0x3ab   :  { %v330_v10 = vpop.f32.mrf.mxu1 }
 0x3ac   :  { %2047 = vtanh.f32 %v336_v9  ;;  %v335_v11 = vadd.f32 %v1634_v8, %v330_v10 }
 0x3ad   :  { %v1844_v12 = vpop.f32.mrf.mxu1 }
 0x3ae   :  { %v337_v13 = vmul.f32 %v335_v11, %v2186_v17 }
 0x3b0   :  { %2049 = vtanh.f32 %v337_v13 }
 0x3b9   :  { %v2048_v14 = vpop.eup %2047 }
 0x3ba   :  { %v340_v15 = vmul.f32 %v2048_v14, %v2186_v17 }
 0x3bc   :  { %v342_v16 = vadd.f32 %v340_v15, %v2195_v28 }
 0x3bd   :  { %v2050_v18 = vpop.eup %2049 }
 0x3be   :  { %358 = vrot.lane.b32.xlu0 %v342_v16, %s2108_s30  ;;  %v341_v19 = vmul.f32 %v2050_v18, %v2186_v17 }
 0x3c0   :  { %v343_v20 = vadd.f32 %v341_v19, %v2195_v28 }
 0x3c2   :  { %360 = vrot.lane.b32.xlu1 %v343_v20, %s2108_s30  ;;  %348 = vrot.lane.b32.xlu0 %v344_v21, %s2105_s17 }
 0x3c6   :  { %350 = vrot.lane.b32.xlu1 %v345_v22, %s2105_s17 }
 0x430   :  { %v359_v23 = vpop.permute.xlu0 %358 }
 0x431   :  { %v364_v24 = vmul.f32 %v359_v23, %v342_v16 }
 0x433   :  { %368 = vrot.lane.b32.xlu0 %v364_v24, %s2105_s17 }
 0x434   :  { %v361_v25 = vpop.permute.xlu1 %360  ;;  %v349_v27 = vpop.permute.xlu0 %348 }
 0x435   :  { %v365_v26 = vmul.f32 %v361_v25, %v343_v20  ;;  %v354_v29 = vmul.f32 %v349_v27, %v342_v16  ;;  %v1999_v27 = vld [vmem:[%s2771_s1 + $0x38] sm:$0xff]  }
 0x436   :  { %1866 = vmatpush3.bf16.msra.mxu1 %v1999_v27  ;;  %v2011_v27 = vld [vmem:[%s2771_s1 + $0x18] sm:$0xff]  }
 0x437   :  { %370 = vrot.lane.b32.xlu1 %v365_v26, %s2105_s17  ;;  %1867 = vmatprep.subr.bf16.mxu1 %v2103_v0 }
 0x438   :  { %v351_v30 = vpop.permute.xlu1 %350 }
 0x439   :  { %v355_v33 = vmul.f32 %v351_v30, %v343_v20  ;;  %v2000_v30 = vld [vmem:[%s2771_s1 + $0x30] sm:$0xff]  }
 0x43a   :  { %1868 = vmatpush3.bf16.msra.mxu1 %v2000_v30  ;;  %v2013_v30 = vld [vmem:[%s2771_s1 + $0x8] sm:$0xff]  }
 0x43b   :  { %1869 = vmatprep.subr.bf16.mxu1 %v2103_v0 }
 0x4a5   :  { %v369_v31 = vpop.permute.xlu0 %368 }
 0x4a6   :  { %v374_v32 = vadd.f32 %v369_v31, %v354_v29 }
 0x4a8   :  { %2051 = vtanh.f32 %v374_v32 }
 0x4a9   :  { %v371_v34 = vpop.permute.xlu1 %370 }
 0x4aa   :  { %v375_v35 = vadd.f32 %v371_v34, %v355_v33  ;;  %v2002_v33 = vld [vmem:[%s2771_s1 + $0x20] sm:$0xff]   ;;  %v2003_v34 = vld [vmem:[%s2771_s1 + $0x18] sm:$0xff]  }
 0x4ac   :  { %2053 = vtanh.f32 %v375_v35 }
 0x4b5   :  { %v2052_v37 = vpop.eup %2051 }
 0x4b6   :  { %380 = vrot.lane.b32.xlu0 %v2052_v37, %s2109_s7  ;;  %v2006_v37 = vld [vmem:[%s2771_s1] sm:$0xff]  }
 0x4b9   :  { %v2054_v39 = vpop.eup %2053 }
 0x4ba   :  { %382 = vrot.lane.b32.xlu1 %v2054_v39, %s2109_s7 }
 0x528   :  { %v381_v46 = vpop.permute.xlu0 %380 }
 0x529   :  { %v2306_v47 = vmul.f32 %v381_v46, %v342_v16 }
 0x52b   :  { %400 = vrot.lane.b32.xlu0 %v2306_v47, %s2110_s21 }
 0x52c   :  { %v383_v48 = vpop.permute.xlu1 %382 }
 0x52d   :  { %v2311_v49 = vmul.f32 %v383_v48, %v343_v20 }
 0x52f   :  { %402 = vrot.lane.b32.xlu1 %v2311_v49, %s2110_s21  ;;  %390 = vrot.lane.b32.xlu0 %v374_v32, %s2111_s22  ;;  %v2001_v32 = vld [vmem:[%s2771_s1 + $0x28] sm:$0xff]  }
 0x530   :  { %1870 = vmatpush3.bf16.msra.mxu1 %v2001_v32 }
 0x531   :  { %1871 = vmatprep.subr.bf16.mxu1 %v2103_v0 }
 0x533   :  { %392 = vrot.lane.b32.xlu1 %v375_v35, %s2111_s22  ;;  %v2004_v35 = vld [vmem:[%s2771_s1 + $0x10] sm:$0xff]  }
 0x534   :  { %1872 = vmatpush3.bf16.msra.mxu1 %v2002_v33 }
 0x535   :  { %1873 = vmatprep.subr.bf16.mxu1 %v2103_v0 }
 0x538   :  { %1874 = vmatpush3.bf16.msra.mxu1 %v2003_v34 }
 0x539   :  { %1875 = vmatprep.subr.bf16.mxu1 %v2103_v0 }
 0x53c   :  { %1876 = vmatpush3.bf16.msra.mxu1 %v2004_v35 }
 0x53d   :  { %1877 = vmatprep.subr.bf16.mxu1 %v2103_v0 }
 0x540   :  { %1878 = vmatpush3.bf16.msra.mxu1 %v2005_v36 }
 0x541   :  { %1879 = vmatprep.subr.bf16.mxu1 %v2103_v0 }
 0x544   :  { %1880 = vmatpush3.bf16.msra.mxu1 %v2006_v37 }
 0x545   :  { %1905 = vmatprep.subr.bf16.mxu1 %v2103_v0 }
 0x59d   :  { %v401_v50 = vpop.permute.xlu0 %400 }
 0x59e   :  { %406 = vst.msk [vmem:[#allocation2] sm:$0xff] %vm21_vm0, %v401_v50 }
 0x5a1   :  { %v403_v51 = vpop.permute.xlu1 %402  ;;  %v391_v52 = vpop.permute.xlu0 %390 }
 0x5a2   :  { %407 = vst.msk [vmem:[#allocation2 + $0x8] sm:$0xff] %vm21_vm0, %v403_v51  ;;  %396 = vst.msk [vmem:[#allocation3] sm:$0xff] %vm21_vm0, %v391_v52  ;;  %v1657_v51 = vld [vmem:[%s2772_s0 + $0x30] sm:$0xff] }
 0x5a5   :  { %v393_v53 = vpop.permute.xlu1 %392  ;;  %v426_v54 = vld [vmem:[#allocation2] sm:$0xff] }
 0x5a6   :  { %397 = vst.msk [vmem:[#allocation3 + $0x8] sm:$0xff] %vm21_vm0, %v393_v53 }
 0x5a9   :  { %v427_v55 = vld [vmem:[#allocation2 + $0x8] sm:$0xff]  ;;  %v544_v12 = vld [vmem:[#allocation3] sm:$0xff] }
 0x5aa   :  { %v428_v56 = vpack.c.bf16 %v427_v55, %v426_v54  ;;  %v1658_v55 = vld [vmem:[%s2772_s0 + $0x38] sm:$0xff] }
 0x5ac   :  { %1862 = vmatmul.mubr.bf16.vlgmr.msra.gmra.mxu0 %v428_v56 }
 0x5ad   :  { %1901 = vmatprep.mubr.msk.bf16.mxu0 %vm2104_vm1, %v2103_v0  ;;  %v545_v13 = vld [vmem:[#allocation3 + $0x8] sm:$0xff] }
 0x66c   :  { %v527_v60 = vpop.f32.mrf.mxu0 }
 0x66d   :  { %v534_v61 = vadd.f32 %v1645_v58, %v527_v60 }
 0x66e   :  { %v1863_v62 = vpop.f32.mrf.mxu0 }
 0x66f   :  { %v536_v1 = vmul.f32 %v534_v61, %v2186_v17 }
 0x670   :  { %v530_v2 = vpop.f32.mrf.mxu0 }
 0x671   :  { %2055 = vtanh.f32 %v536_v1  ;;  %v535_v3 = vadd.f32 %v1646_v63, %v530_v2 }
 0x672   :  { %v1864_v4 = vpop.f32.mrf.mxu0 }
 0x673   :  { %v537_v5 = vmul.f32 %v535_v3, %v2186_v17 }
 0x675   :  { %2057 = vtanh.f32 %v537_v5 }
 0x67e   :  { %v2056_v6 = vpop.eup %2055 }
 0x67f   :  { %v540_v7 = vmul.f32 %v2056_v6, %v2186_v17 }
 0x681   :  { %v542_v8 = vadd.f32 %v540_v7, %v2195_v28 }
 0x682   :  { %v2058_v9 = vpop.eup %2057 }
 0x683   :  { %558 = vrot.lane.b32.xlu0 %v542_v8, %s2108_s30  ;;  %v541_v10 = vmul.f32 %v2058_v9, %v2186_v17 }
 0x685   :  { %v543_v11 = vadd.f32 %v541_v10, %v2195_v28 }
 0x687   :  { %560 = vrot.lane.b32.xlu1 %v543_v11, %s2108_s30  ;;  %548 = vrot.lane.b32.xlu0 %v544_v12, %s2105_s17 }
 0x68b   :  { %550 = vrot.lane.b32.xlu1 %v545_v13, %s2105_s17 }
 0x6f5   :  { %v559_v14 = vpop.permute.xlu0 %558 }
 0x6f6   :  { %v564_v15 = vmul.f32 %v559_v14, %v542_v8 }
 0x6f8   :  { %568 = vrot.lane.b32.xlu0 %v564_v15, %s2105_s17 }
 0x6f9   :  { %v561_v16 = vpop.permute.xlu1 %560  ;;  %v549_v19 = vpop.permute.xlu0 %548 }
 0x6fa   :  { %v565_v18 = vmul.f32 %v561_v16, %v543_v11  ;;  %v554_v20 = vmul.f32 %v549_v19, %v542_v8 }
 0x6fc   :  { %570 = vrot.lane.b32.xlu1 %v565_v18, %s2105_s17 }
 0x6fd   :  { %v551_v21 = vpop.permute.xlu1 %550 }
 0x6fe   :  { %v555_v24 = vmul.f32 %v551_v21, %v543_v11  ;;  %v2007_v21 = vld [vmem:[%s2771_s1 + $0x38] sm:$0xff]  }
 0x6ff   :  { %1886 = vmatpush3.bf16.msra.mxu0 %v2007_v21  ;;  %v2017_v21 = vld [vmem:[%s2771_s1 + $0x28] sm:$0xff]  }
 0x700   :  { %1887 = vmatprep.subr.bf16.mxu0 %v2103_v0 }
 0x76a   :  { %v569_v22 = vpop.permute.xlu0 %568 }
 0x76b   :  { %v574_v23 = vadd.f32 %v569_v22, %v554_v20 }
 0x76d   :  { %2059 = vtanh.f32 %v574_v23 }
 0x76e   :  { %v571_v25 = vpop.permute.xlu1 %570 }
 0x76f   :  { %v575_v26 = vadd.f32 %v571_v25, %v555_v24  ;;  %v2009_v25 = vld [vmem:[%s2771_s1 + $0x28] sm:$0xff]  }
 0x771   :  { %2061 = vtanh.f32 %v575_v26 }
 0x77a   :  { %v2060_v29 = vpop.eup %2059 }
 0x77b   :  { %580 = vrot.lane.b32.xlu0 %v2060_v29, %s2109_s7  ;;  %v2012_v29 = vld [vmem:[%s2771_s1 + $0x10] sm:$0xff]  }
 0x77e   :  { %v2062_v31 = vpop.eup %2061 }
 0x77f   :  { %582 = vrot.lane.b32.xlu1 %v2062_v31, %s2109_s7  ;;  %v2014_v31 = vld [vmem:[%s2771_s1] sm:$0xff]  }
 0x7ed   :  { %v581_v38 = vpop.permute.xlu0 %580 }
 0x7ee   :  { %v2374_v39 = vmul.f32 %v581_v38, %v542_v8 }
 0x7f0   :  { %600 = vrot.lane.b32.xlu0 %v2374_v39, %s2110_s21 }
 0x7f1   :  { %v583_v40 = vpop.permute.xlu1 %582 }
 0x7f2   :  { %v2379_v41 = vmul.f32 %v583_v40, %v543_v11 }
 0x7f4   :  { %602 = vrot.lane.b32.xlu1 %v2379_v41, %s2110_s21  ;;  %590 = vrot.lane.b32.xlu0 %v574_v23, %s2111_s22  ;;  %v2008_v23 = vld [vmem:[%s2771_s1 + $0x30] sm:$0xff]  }
 0x7f5   :  { %1888 = vmatpush3.bf16.msra.mxu0 %v2008_v23  ;;  %v2019_v23 = vld [vmem:[%s2771_s1 + $0x18] sm:$0xff]  }
 0x7f6   :  { %1889 = vmatprep.subr.bf16.mxu0 %v2103_v0 }
 0x7f8   :  { %592 = vrot.lane.b32.xlu1 %v575_v26, %s2111_s22  ;;  %v2010_v26 = vld [vmem:[%s2771_s1 + $0x20] sm:$0xff]  }
 0x7f9   :  { %1890 = vmatpush3.bf16.msra.mxu0 %v2009_v25  ;;  %v2021_v25 = vld [vmem:[%s2771_s1 + $0x8] sm:$0xff]  }
 0x7fa   :  { %1891 = vmatprep.subr.bf16.mxu0 %v2103_v0 }
 0x7fd   :  { %1892 = vmatpush3.bf16.msra.mxu0 %v2010_v26  ;;  %v2022_v26 = vld [vmem:[%s2771_s1] sm:$0xff]  }
 0x7fe   :  { %1893 = vmatprep.subr.bf16.mxu0 %v2103_v0 }
 0x801   :  { %1894 = vmatpush3.bf16.msra.mxu0 %v2011_v27 }
 0x802   :  { %1895 = vmatprep.subr.bf16.mxu0 %v2103_v0 }
 0x805   :  { %1896 = vmatpush3.bf16.msra.mxu0 %v2012_v29 }
 0x806   :  { %1897 = vmatprep.subr.bf16.mxu0 %v2103_v0 }
 0x809   :  { %1898 = vmatpush3.bf16.msra.mxu0 %v2013_v30 }
 0x80a   :  { %1899 = vmatprep.subr.bf16.mxu0 %v2103_v0 }
 0x80d   :  { %1900 = vmatpush3.bf16.msra.mxu0 %v2014_v31 }
 0x80e   :  { %1925 = vmatprep.subr.bf16.mxu0 %v2103_v0 }
 0x862   :  { %v601_v42 = vpop.permute.xlu0 %600 }
 0x863   :  { %606 = vst.msk [vmem:[#allocation2] sm:$0xff] %vm21_vm0, %v601_v42 }
 0x866   :  { %v603_v43 = vpop.permute.xlu1 %602  ;;  %v591_v44 = vpop.permute.xlu0 %590 }
 0x867   :  { %607 = vst.msk [vmem:[#allocation2 + $0x8] sm:$0xff] %vm21_vm0, %v603_v43  ;;  %596 = vst.msk [vmem:[#allocation3] sm:$0xff] %vm21_vm0, %v591_v44 }
 0x86a   :  { %v593_v45 = vpop.permute.xlu1 %592  ;;  %v626_v46 = vld [vmem:[#allocation2] sm:$0xff] }
 0x86b   :  { %597 = vst.msk [vmem:[#allocation3 + $0x8] sm:$0xff] %vm21_vm0, %v593_v45  ;;  %v1669_v45 = vld [vmem:[%s2772_s0 + $0x40] sm:$0xff] }
 0x86e   :  { %v627_v48 = vld [vmem:[#allocation2 + $0x8] sm:$0xff]  ;;  %v744_v6 = vld [vmem:[#allocation3] sm:$0xff] }
 0x86f   :  { %v628_v50 = vpack.c.bf16 %v627_v48, %v626_v46 }
 0x871   :  { %1882 = vmatmul.mubr.bf16.vlgmr.msra.gmra.mxu1 %v628_v50 }
 0x872   :  { %1921 = vmatprep.mubr.msk.bf16.mxu1 %vm2104_vm1, %v2103_v0  ;;  %v745_v7 = vld [vmem:[#allocation3 + $0x8] sm:$0xff] }
 0x931   :  { %v727_v52 = vpop.f32.mrf.mxu1 }
 0x932   :  { %v734_v53 = vadd.f32 %v1657_v51, %v727_v52  ;;  %v1670_v51 = vld [vmem:[%s2772_s0 + $0x48] sm:$0xff] }
 0x933   :  { %v1883_v54 = vpop.f32.mrf.mxu1 }
 0x934   :  { %v736_v56 = vmul.f32 %v734_v53, %v2186_v17 }
 0x935   :  { %v730_v58 = vpop.f32.mrf.mxu1 }
 0x936   :  { %2063 = vtanh.f32 %v736_v56  ;;  %v735_v60 = vadd.f32 %v1658_v55, %v730_v58 }
 0x937   :  { %v1884_v61 = vpop.f32.mrf.mxu1 }
 0x938   :  { %v737_v62 = vmul.f32 %v735_v60, %v2186_v17 }
 0x93a   :  { %2065 = vtanh.f32 %v737_v62 }
 0x943   :  { %v2064_v63 = vpop.eup %2063 }
 0x944   :  { %v740_v1 = vmul.f32 %v2064_v63, %v2186_v17 }
 0x946   :  { %v742_v2 = vadd.f32 %v740_v1, %v2195_v28 }
 0x947   :  { %v2066_v3 = vpop.eup %2065 }
 0x948   :  { %758 = vrot.lane.b32.xlu0 %v742_v2, %s2108_s30  ;;  %v741_v4 = vmul.f32 %v2066_v3, %v2186_v17 }
 0x94a   :  { %v743_v5 = vadd.f32 %v741_v4, %v2195_v28 }
 0x94c   :  { %760 = vrot.lane.b32.xlu1 %v743_v5, %s2108_s30  ;;  %748 = vrot.lane.b32.xlu0 %v744_v6, %s2105_s17 }
 0x950   :  { %750 = vrot.lane.b32.xlu1 %v745_v7, %s2105_s17 }
 0x9ba   :  { %v759_v8 = vpop.permute.xlu0 %758 }
 0x9bb   :  { %v764_v9 = vmul.f32 %v759_v8, %v742_v2 }
 0x9bd   :  { %768 = vrot.lane.b32.xlu0 %v764_v9, %s2105_s17 }
 0x9be   :  { %v761_v10 = vpop.permute.xlu1 %760  ;;  %v749_v12 = vpop.permute.xlu0 %748 }
 0x9bf   :  { %v765_v11 = vmul.f32 %v761_v10, %v743_v5  ;;  %v754_v13 = vmul.f32 %v749_v12, %v742_v2 }
 0x9c1   :  { %770 = vrot.lane.b32.xlu1 %v765_v11, %s2105_s17 }
 0x9c2   :  { %v751_v14 = vpop.permute.xlu1 %750 }
 0x9c3   :  { %v755_v18 = vmul.f32 %v751_v14, %v743_v5 }
 0xa2f   :  { %v769_v15 = vpop.permute.xlu0 %768 }
 0xa30   :  { %v774_v16 = vadd.f32 %v769_v15, %v754_v13 }
 0xa32   :  { %2067 = vtanh.f32 %v774_v16 }
 0xa33   :  { %v771_v19 = vpop.permute.xlu1 %770 }
 0xa34   :  { %v775_v20 = vadd.f32 %v771_v19, %v755_v18  ;;  %v2016_v19 = vld [vmem:[%s2771_s1 + $0x30] sm:$0xff]  }
 0xa36   :  { %2069 = vtanh.f32 %v775_v20 }
 0xa3f   :  { %v2068_v22 = vpop.eup %2067 }
 0xa40   :  { %780 = vrot.lane.b32.xlu0 %v2068_v22, %s2109_s7  ;;  %v2018_v22 = vld [vmem:[%s2771_s1 + $0x20] sm:$0xff]  }
 0xa43   :  { %v2070_v24 = vpop.eup %2069 }
 0xa44   :  { %782 = vrot.lane.b32.xlu1 %v2070_v24, %s2109_s7  ;;  %v2020_v24 = vld [vmem:[%s2771_s1 + $0x10] sm:$0xff]  }
 0xab2   :  { %v781_v32 = vpop.permute.xlu0 %780 }
 0xab3   :  { %v2442_v33 = vmul.f32 %v781_v32, %v742_v2 }
 0xab5   :  { %800 = vrot.lane.b32.xlu0 %v2442_v33, %s2110_s21 }
 0xab6   :  { %v783_v34 = vpop.permute.xlu1 %782 }
 0xab7   :  { %v2447_v35 = vmul.f32 %v783_v34, %v743_v5 }
 0xab9   :  { %802 = vrot.lane.b32.xlu1 %v2447_v35, %s2110_s21  ;;  %790 = vrot.lane.b32.xlu0 %v774_v16, %s2111_s22  ;;  %v2015_v16 = vld [vmem:[%s2771_s1 + $0x38] sm:$0xff]  }
 0xaba   :  { %1906 = vmatpush3.bf16.msra.mxu1 %v2015_v16  ;;  %v2024_v16 = vld [vmem:[%s2771_s1 + $0x30] sm:$0xff]  }
 0xabb   :  { %1907 = vmatprep.subr.bf16.mxu1 %v2103_v0 }
 0xabd   :  { %792 = vrot.lane.b32.xlu1 %v775_v20, %s2111_s22 }
 0xabe   :  { %1908 = vmatpush3.bf16.msra.mxu1 %v2016_v19  ;;  %v2025_v19 = vld [vmem:[%s2771_s1 + $0x28] sm:$0xff]  }
 0xabf   :  { %1909 = vmatprep.subr.bf16.mxu1 %v2103_v0 }
 0xac2   :  { %1910 = vmatpush3.bf16.msra.mxu1 %v2017_v21  ;;  %v2027_v21 = vld [vmem:[%s2771_s1 + $0x18] sm:$0xff]  }
 0xac3   :  { %1911 = vmatprep.subr.bf16.mxu1 %v2103_v0 }
 0xac6   :  { %1912 = vmatpush3.bf16.msra.mxu1 %v2018_v22  ;;  %v2028_v22 = vld [vmem:[%s2771_s1 + $0x10] sm:$0xff]  }
 0xac7   :  { %1913 = vmatprep.subr.bf16.mxu1 %v2103_v0 }
 0xaca   :  { %1914 = vmatpush3.bf16.msra.mxu1 %v2019_v23  ;;  %v2029_v23 = vld [vmem:[%s2771_s1 + $0x8] sm:$0xff]  }
 0xacb   :  { %1915 = vmatprep.subr.bf16.mxu1 %v2103_v0 }
 0xace   :  { %1916 = vmatpush3.bf16.msra.mxu1 %v2020_v24  ;;  %v2030_v24 = vld [vmem:[%s2771_s1] sm:$0xff]  }
 0xacf   :  { %1917 = vmatprep.subr.bf16.mxu1 %v2103_v0 }
 0xad2   :  { %1918 = vmatpush3.bf16.msra.mxu1 %v2021_v25 }
 0xad3   :  { %1919 = vmatprep.subr.bf16.mxu1 %v2103_v0 }
 0xad6   :  { %1920 = vmatpush3.bf16.msra.mxu1 %v2022_v26 }
 0xad7   :  { %1945 = vmatprep.subr.bf16.mxu1 %v2103_v0 }
 0xb27   :  { %v801_v36 = vpop.permute.xlu0 %800 }
 0xb28   :  { %806 = vst.msk [vmem:[#allocation2] sm:$0xff] %vm21_vm0, %v801_v36 }
 0xb2b   :  { %v803_v37 = vpop.permute.xlu1 %802  ;;  %v791_v38 = vpop.permute.xlu0 %790 }
 0xb2c   :  { %807 = vst.msk [vmem:[#allocation2 + $0x8] sm:$0xff] %vm21_vm0, %v803_v37  ;;  %796 = vst.msk [vmem:[#allocation3] sm:$0xff] %vm21_vm0, %v791_v38 }
 0xb2f   :  { %v793_v40 = vpop.permute.xlu1 %792  ;;  %v822_v42 = vld [vmem:[#allocation2] sm:$0xff] }
 0xb30   :  { %797 = vst.msk [vmem:[#allocation3 + $0x8] sm:$0xff] %vm21_vm0, %v793_v40 }
 0xb33   :  { %v823_v43 = vld [vmem:[#allocation2 + $0x8] sm:$0xff]  ;;  %v940_v2 = vld [vmem:[#allocation3] sm:$0xff] }
 0xb34   :  { %v824_v44 = vpack.c.bf16 %v823_v43, %v822_v42  ;;  %v1681_v43 = vld [vmem:[%s2772_s0 + $0x50] sm:$0xff] }
 0xb36   :  { %1902 = vmatmul.mubr.bf16.vlgmr.msra.gmra.mxu0 %v824_v44 }
 0xb37   :  { %1941 = vmatprep.mubr.msk.bf16.mxu0 %vm2104_vm1, %v2103_v0  ;;  %v941_v3 = vld [vmem:[#allocation3 + $0x8] sm:$0xff] }
 0xbf6   :  { %v923_v46 = vpop.f32.mrf.mxu0 }
 0xbf7   :  { %v930_v48 = vadd.f32 %v1669_v45, %v923_v46 }
 0xbf8   :  { %v1903_v50 = vpop.f32.mrf.mxu0 }
 0xbf9   :  { %v932_v52 = vmul.f32 %v930_v48, %v2186_v17  ;;  %v1682_v48 = vld [vmem:[%s2772_s0 + $0x58] sm:$0xff] }
 0xbfa   :  { %v926_v53 = vpop.f32.mrf.mxu0 }
 0xbfb   :  { %2071 = vtanh.f32 %v932_v52  ;;  %v931_v54 = vadd.f32 %v1670_v51, %v926_v53 }
 0xbfc   :  { %v1904_v55 = vpop.f32.mrf.mxu0 }
 0xbfd   :  { %v933_v56 = vmul.f32 %v931_v54, %v2186_v17 }
 0xbff   :  { %2073 = vtanh.f32 %v933_v56 }
 0xc08   :  { %v2072_v58 = vpop.eup %2071 }
 0xc09   :  { %v936_v60 = vmul.f32 %v2072_v58, %v2186_v17 }
 0xc0b   :  { %v938_v61 = vadd.f32 %v936_v60, %v2195_v28 }
 0xc0c   :  { %v2074_v62 = vpop.eup %2073 }
 0xc0d   :  { %954 = vrot.lane.b32.xlu0 %v938_v61, %s2108_s30  ;;  %v937_v63 = vmul.f32 %v2074_v62, %v2186_v17 }
 0xc0f   :  { %v939_v1 = vadd.f32 %v937_v63, %v2195_v28 }
 0xc11   :  { %956 = vrot.lane.b32.xlu1 %v939_v1, %s2108_s30  ;;  %944 = vrot.lane.b32.xlu0 %v940_v2, %s2105_s17 }
 0xc15   :  { %946 = vrot.lane.b32.xlu1 %v941_v3, %s2105_s17 }
 0xc7f   :  { %v955_v4 = vpop.permute.xlu0 %954 }
 0xc80   :  { %v960_v5 = vmul.f32 %v955_v4, %v938_v61 }
 0xc82   :  { %964 = vrot.lane.b32.xlu0 %v960_v5, %s2105_s17 }
 0xc83   :  { %v957_v6 = vpop.permute.xlu1 %956  ;;  %v945_v8 = vpop.permute.xlu0 %944 }
 0xc84   :  { %v961_v7 = vmul.f32 %v957_v6, %v939_v1  ;;  %v950_v9 = vmul.f32 %v945_v8, %v938_v61 }
 0xc86   :  { %966 = vrot.lane.b32.xlu1 %v961_v7, %s2105_s17 }
 0xc87   :  { %v947_v10 = vpop.permute.xlu1 %946 }
 0xc88   :  { %v951_v13 = vmul.f32 %v947_v10, %v939_v1 }
 0xcf4   :  { %v965_v11 = vpop.permute.xlu0 %964 }
 0xcf5   :  { %v970_v12 = vadd.f32 %v965_v11, %v950_v9 }
 0xcf7   :  { %2075 = vtanh.f32 %v970_v12 }
 0xcf8   :  { %v967_v14 = vpop.permute.xlu1 %966 }
 0xcf9   :  { %v971_v15 = vadd.f32 %v967_v14, %v951_v13  ;;  %v2023_v14 = vld [vmem:[%s2771_s1 + $0x38] sm:$0xff]  }
 0xcfa   :  { %1926 = vmatpush3.bf16.msra.mxu0 %v2023_v14  ;;  %v2031_v14 = vld [vmem:[%s2771_s1 + $0x38] sm:$0xff]  }
 0xcfb   :  { %2077 = vtanh.f32 %v971_v15  ;;  %1927 = vmatprep.subr.bf16.mxu0 %v2103_v0 }
 0xcfe   :  { %1928 = vmatpush3.bf16.msra.mxu0 %v2024_v16  ;;  %v2032_v16 = vld [vmem:[%s2771_s1 + $0x30] sm:$0xff]  }
 0xcff   :  { %1929 = vmatprep.subr.bf16.mxu0 %v2103_v0 }
 0xd02   :  { %1930 = vmatpush3.bf16.msra.mxu0 %v2025_v19  ;;  %v2033_v19 = vld [vmem:[%s2771_s1 + $0x28] sm:$0xff]  }
 0xd03   :  { %1931 = vmatprep.subr.bf16.mxu0 %v2103_v0 }
 0xd04   :  { %v2076_v18 = vpop.eup %2075 }
 0xd05   :  { %976 = vrot.lane.b32.xlu0 %v2076_v18, %s2109_s7 }
 0xd08   :  { %v2078_v20 = vpop.eup %2077 }
 0xd09   :  { %978 = vrot.lane.b32.xlu1 %v2078_v20, %s2109_s7  ;;  %v2026_v20 = vld [vmem:[%s2771_s1 + $0x20] sm:$0xff]  }
 0xd0a   :  { %1932 = vmatpush3.bf16.msra.mxu0 %v2026_v20  ;;  %v2034_v20 = vld [vmem:[%s2771_s1 + $0x20] sm:$0xff]  }
 0xd0b   :  { %1933 = vmatprep.subr.bf16.mxu0 %v2103_v0 }
 0xd0e   :  { %1934 = vmatpush3.bf16.msra.mxu0 %v2027_v21  ;;  %v2035_v21 = vld [vmem:[%s2771_s1 + $0x18] sm:$0xff]  }
 0xd0f   :  { %1935 = vmatprep.subr.bf16.mxu0 %v2103_v0 }
 0xd12   :  { %1936 = vmatpush3.bf16.msra.mxu0 %v2028_v22  ;;  %v2036_v22 = vld [vmem:[%s2771_s1 + $0x10] sm:$0xff]  }
 0xd13   :  { %1937 = vmatprep.subr.bf16.mxu0 %v2103_v0 }
 0xd16   :  { %1938 = vmatpush3.bf16.msra.mxu0 %v2029_v23  ;;  %v2037_v23 = vld [vmem:[%s2771_s1 + $0x8] sm:$0xff]  }
 0xd17   :  { %1939 = vmatprep.subr.bf16.mxu0 %v2103_v0 }
 0xd1a   :  { %1940 = vmatpush3.bf16.msra.mxu0 %v2030_v24  ;;  %v2038_v24 = vld [vmem:[%s2771_s1] sm:$0xff]  }
 0xd77   :  { %v977_v27 = vpop.permute.xlu0 %976 }
 0xd78   :  { %v2510_v29 = vmul.f32 %v977_v27, %v938_v61 }
 0xd7a   :  { %996 = vrot.lane.b32.xlu0 %v2510_v29, %s2110_s21 }
 0xd7b   :  { %v979_v30 = vpop.permute.xlu1 %978 }
 0xd7c   :  { %v2515_v31 = vmul.f32 %v979_v30, %v939_v1 }
 0xd7e   :  { %998 = vrot.lane.b32.xlu1 %v2515_v31, %s2110_s21  ;;  %986 = vrot.lane.b32.xlu0 %v970_v12, %s2111_s22 }
 0xd82   :  { %988 = vrot.lane.b32.xlu1 %v971_v15, %s2111_s22 }
 0xdec   :  { %v997_v32 = vpop.permute.xlu0 %996 }
 0xded   :  { %1002 = vst.msk [vmem:[#allocation2] sm:$0xff] %vm21_vm0, %v997_v32 }
 0xdf0   :  { %v999_v34 = vpop.permute.xlu1 %998  ;;  %v987_v36 = vpop.permute.xlu0 %986 }
 0xdf1   :  { %1003 = vst.msk [vmem:[#allocation2 + $0x8] sm:$0xff] %vm21_vm0, %v999_v34  ;;  %992 = vst.msk [vmem:[#allocation3] sm:$0xff] %vm21_vm0, %v987_v36 }
 0xdf4   :  { %v989_v37 = vpop.permute.xlu1 %988  ;;  %v1022_v38 = vld [vmem:[#allocation2] sm:$0xff] }
 0xdf5   :  { %993 = vst.msk [vmem:[#allocation3 + $0x8] sm:$0xff] %vm21_vm0, %v989_v37 }
 0xdf8   :  { %v1023_v40 = vld [vmem:[#allocation2 + $0x8] sm:$0xff]  ;;  %v1140_v63 = vld [vmem:[#allocation3] sm:$0xff] }
 0xdf9   :  { %v1024_v42 = vpack.c.bf16 %v1023_v40, %v1022_v38 }
 0xdfb   :  { %1922 = vmatmul.mubr.bf16.vlgmr.msra.gmra.mxu1 %v1024_v42 }
 0xdfc   :  { %1961 = vmatprep.mubr.msk.bf16.mxu1 %vm2104_vm1, %v2103_v0  ;;  %v1141_v1 = vld [vmem:[#allocation3 + $0x8] sm:$0xff]  ;;  %1946 = vmatpush3.bf16.msra.mxu1 %v2031_v14  ;;  %v1717_v14 = vpack.c.bf16 %v2238_v57, %v2238_v57  ;;  %v1721_v57 = vpack.c.bf16 %v2374_v39, %v2374_v39 }
 0xdfd   :  { %1947 = vmatprep.subr.bf16.mxu1 %v2103_v0 }
 0xe00   :  { %1948 = vmatpush3.bf16.msra.mxu1 %v2032_v16  ;;  %v1718_v16 = vpack.c.bf16 %v2243_v59, %v2243_v59  ;;  %v1722_v59 = vpack.c.bf16 %v2379_v41, %v2379_v41 }
 0xe01   :  { %1949 = vmatprep.subr.bf16.mxu1 %v2103_v0 }
 0xe04   :  { %1950 = vmatpush3.bf16.msra.mxu1 %v2033_v19  ;;  %v1720_v19 = vpack.c.bf16 %v2311_v49, %v2311_v49  ;;  %v1726_v49 = vpack.c.bf16 %v2515_v31, %v2515_v31 }
 0xe05   :  { %1951 = vmatprep.subr.bf16.mxu1 %v2103_v0 }
 0xe08   :  { %1952 = vmatpush3.bf16.msra.mxu1 %v2034_v20 }
 0xe09   :  { %1953 = vmatprep.subr.bf16.mxu1 %v2103_v0 }
 0xe0c   :  { %1954 = vmatpush3.bf16.msra.mxu1 %v2035_v21 }
 0xe0d   :  { %1955 = vmatprep.subr.bf16.mxu1 %v2103_v0 }
 0xe10   :  { %1956 = vmatpush3.bf16.msra.mxu1 %v2036_v22 }
 0xe11   :  { %1957 = vmatprep.subr.bf16.mxu1 %v2103_v0 }
 0xe14   :  { %1958 = vmatpush3.bf16.msra.mxu1 %v2037_v23 }
 0xe15   :  { %1959 = vmatprep.subr.bf16.mxu1 %v2103_v0 }
 0xe18   :  { %1960 = vmatpush3.bf16.msra.mxu1 %v2038_v24 }
 0xebb   :  { %v1123_v44 = vpop.f32.mrf.mxu1 }
 0xebc   :  { %v1130_v45 = vadd.f32 %v1681_v43, %v1123_v44  ;;  %v1693_v43 = vld [vmem:[%s2772_s0 + $0x60] sm:$0xff] }
 0xebd   :  { %v1923_v46 = vpop.f32.mrf.mxu1 }
 0xebe   :  { %v1132_v50 = vmul.f32 %v1130_v45, %v2186_v17 }
 0xebf   :  { %v1126_v51 = vpop.f32.mrf.mxu1 }
 0xec0   :  { %2079 = vtanh.f32 %v1132_v50  ;;  %v1131_v52 = vadd.f32 %v1682_v48, %v1126_v51  ;;  %v1694_v48 = vld [vmem:[%s2772_s0 + $0x68] sm:$0xff] }
 0xec1   :  { %v1924_v53 = vpop.f32.mrf.mxu1 }
 0xec2   :  { %v1133_v54 = vmul.f32 %v1131_v52, %v2186_v17 }
 0xec4   :  { %2081 = vtanh.f32 %v1133_v54 }
 0xecd   :  { %v2080_v55 = vpop.eup %2079 }
 0xece   :  { %v1136_v56 = vmul.f32 %v2080_v55, %v2186_v17 }
 0xed0   :  { %v1138_v58 = vadd.f32 %v1136_v56, %v2195_v28 }
 0xed1   :  { %v2082_v60 = vpop.eup %2081 }
 0xed2   :  { %1154 = vrot.lane.b32.xlu0 %v1138_v58, %s2108_s30  ;;  %v1137_v61 = vmul.f32 %v2082_v60, %v2186_v17 }
 0xed4   :  { %v1139_v62 = vadd.f32 %v1137_v61, %v2195_v28 }
 0xed6   :  { %1156 = vrot.lane.b32.xlu1 %v1139_v62, %s2108_s30  ;;  %1144 = vrot.lane.b32.xlu0 %v1140_v63, %s2105_s17 }
 0xeda   :  { %1146 = vrot.lane.b32.xlu1 %v1141_v1, %s2105_s17 }
 0xf44   :  { %v1155_v2 = vpop.permute.xlu0 %1154 }
 0xf45   :  { %v1160_v3 = vmul.f32 %v1155_v2, %v1138_v58 }
 0xf47   :  { %1164 = vrot.lane.b32.xlu0 %v1160_v3, %s2105_s17 }
 0xf48   :  { %v1157_v4 = vpop.permute.xlu1 %1156  ;;  %v1145_v6 = vpop.permute.xlu0 %1144 }
 0xf49   :  { %v1161_v5 = vmul.f32 %v1157_v4, %v1139_v62  ;;  %v1150_v7 = vmul.f32 %v1145_v6, %v1138_v58 }
 0xf4b   :  { %1166 = vrot.lane.b32.xlu1 %v1161_v5, %s2105_s17 }
 0xf4c   :  { %v1147_v8 = vpop.permute.xlu1 %1146 }
 0xf4d   :  { %v1151_v11 = vmul.f32 %v1147_v8, %v1139_v62 }
 0xfb9   :  { %v1165_v9 = vpop.permute.xlu0 %1164 }
 0xfba   :  { %v1170_v10 = vadd.f32 %v1165_v9, %v1150_v7 }
 0xfbc   :  { %2083 = vtanh.f32 %v1170_v10 }
 0xfbd   :  { %v1167_v12 = vpop.permute.xlu1 %1166 }
 0xfbe   :  { %v1171_v13 = vadd.f32 %v1167_v12, %v1151_v11 }
 0xfc0   :  { %2085 = vtanh.f32 %v1171_v13 }
 0xfc9   :  { %v2084_v15 = vpop.eup %2083 }
 0xfca   :  { %1176 = vrot.lane.b32.xlu0 %v2084_v15, %s2109_s7 }
 0xfcd   :  { %v2086_v18 = vpop.eup %2085 }
 0xfce   :  { %1178 = vrot.lane.b32.xlu1 %v2086_v18, %s2109_s7 }
0x103c   :  { %v1177_v25 = vpop.permute.xlu0 %1176 }
0x103d   :  { %v2578_v26 = vmul.f32 %v1177_v25, %v1138_v58 }
0x103f   :  { %1196 = vrot.lane.b32.xlu0 %v2578_v26, %s2110_s21  ;;  %v1727_v39 = vpack.c.bf16 %v2578_v26, %v2578_v26 }
0x1040   :  { %v1179_v27 = vpop.permute.xlu1 %1178 }
0x1041   :  { %v2582_v30 = vmul.f32 %v1179_v27, %v1139_v62 }
0x1043   :  { %1198 = vrot.lane.b32.xlu1 %v2582_v30, %s2110_s21  ;;  %1186 = vrot.lane.b32.xlu0 %v1170_v10, %s2111_s22  ;;  %v1728_v41 = vpack.c.bf16 %v2582_v30, %v2582_v30 }
0x1047   :  { %1188 = vrot.lane.b32.xlu1 %v1171_v13, %s2111_s22 }
0x10b1   :  { %v1197_v32 = vpop.permute.xlu0 %1196 }
0x10b2   :  { %1202 = vst.msk [vmem:[#allocation2] sm:$0xff] %vm21_vm0, %v1197_v32 }
0x10b5   :  { %v1199_v34 = vpop.permute.xlu1 %1198  ;;  %v1187_v36 = vpop.permute.xlu0 %1186 }
0x10b6   :  { %1203 = vst.msk [vmem:[#allocation2 + $0x8] sm:$0xff] %vm21_vm0, %v1199_v34  ;;  %1192 = vst.msk [vmem:[#allocation3] sm:$0xff] %vm21_vm0, %v1187_v36 }
0x10b9   :  { %v1189_v37 = vpop.permute.xlu1 %1188  ;;  %v1222_v38 = vld [vmem:[#allocation2] sm:$0xff] }
0x10ba   :  { %1193 = vst.msk [vmem:[#allocation3 + $0x8] sm:$0xff] %vm21_vm0, %v1189_v37 }
0x10bd   :  { %v1223_v40 = vld [vmem:[#allocation2 + $0x8] sm:$0xff]  ;;  %v1340_v63 = vld [vmem:[#allocation3] sm:$0xff] }
0x10be   :  { %v1224_v42 = vpack.c.bf16 %v1223_v40, %v1222_v38 }
0x10c0   :  { %1942 = vmatmul.mubr.bf16.vlgmr.msra.gmra.mxu0 %v1224_v42 }
0x10c1   :  { %v1341_v1 = vld [vmem:[#allocation3 + $0x8] sm:$0xff] }
0x1180   :  { %v1323_v44 = vpop.f32.mrf.mxu0 }
0x1181   :  { %v1330_v45 = vadd.f32 %v1693_v43, %v1323_v44  ;;  %v1705_v44 = vld [vmem:[%s2772_s0 + $0x70] sm:$0xff] }
0x1182   :  { %v1943_v46 = vpop.f32.mrf.mxu0 }
0x1183   :  { %v1332_v50 = vmul.f32 %v1330_v45, %v2186_v17 }
0x1184   :  { %v1326_v51 = vpop.f32.mrf.mxu0 }
0x1185   :  { %2087 = vtanh.f32 %v1332_v50  ;;  %v1331_v52 = vadd.f32 %v1694_v48, %v1326_v51  ;;  %v1706_v50 = vld [vmem:[%s2772_s0 + $0x78] sm:$0xff]  ;;  %s2112_s0 = smov 24  }
0x1186   :  { %v1944_v53 = vpop.f32.mrf.mxu0 }
0x1187   :  { %v1333_v54 = vmul.f32 %v1331_v52, %v2186_v17 }
0x1189   :  { %2089 = vtanh.f32 %v1333_v54 }
0x1192   :  { %v2088_v55 = vpop.eup %2087 }
0x1193   :  { %v1336_v56 = vmul.f32 %v2088_v55, %v2186_v17 }
0x1195   :  { %v1338_v58 = vadd.f32 %v1336_v56, %v2195_v28 }
0x1196   :  { %v2090_v60 = vpop.eup %2089 }
0x1197   :  { %1354 = vrot.lane.b32.xlu0 %v1338_v58, %s2108_s30  ;;  %v1337_v61 = vmul.f32 %v2090_v60, %v2186_v17 }
0x1199   :  { %v1339_v62 = vadd.f32 %v1337_v61, %v2195_v28 }
0x119b   :  { %1356 = vrot.lane.b32.xlu1 %v1339_v62, %s2108_s30  ;;  %1344 = vrot.lane.b32.xlu0 %v1340_v63, %s2105_s17 }
0x119f   :  { %1346 = vrot.lane.b32.xlu1 %v1341_v1, %s2105_s17 }
0x1209   :  { %v1355_v2 = vpop.permute.xlu0 %1354 }
0x120a   :  { %v1360_v3 = vmul.f32 %v1355_v2, %v1338_v58 }
0x120c   :  { %1364 = vrot.lane.b32.xlu0 %v1360_v3, %s2105_s17 }
0x120d   :  { %v1357_v4 = vpop.permute.xlu1 %1356  ;;  %v1345_v6 = vpop.permute.xlu0 %1344 }
0x120e   :  { %v1361_v5 = vmul.f32 %v1357_v4, %v1339_v62  ;;  %v1350_v7 = vmul.f32 %v1345_v6, %v1338_v58 }
0x1210   :  { %1366 = vrot.lane.b32.xlu1 %v1361_v5, %s2105_s17 }
0x1211   :  { %v1347_v8 = vpop.permute.xlu1 %1346 }
0x1212   :  { %v1351_v11 = vmul.f32 %v1347_v8, %v1339_v62 }
0x127e   :  { %v1365_v9 = vpop.permute.xlu0 %1364 }
0x127f   :  { %v1370_v10 = vadd.f32 %v1365_v9, %v1350_v7 }
0x1281   :  { %2091 = vtanh.f32 %v1370_v10 }
0x1282   :  { %v1367_v12 = vpop.permute.xlu1 %1366 }
0x1283   :  { %v1371_v13 = vadd.f32 %v1367_v12, %v1351_v11 }
0x1285   :  { %2093 = vtanh.f32 %v1371_v13 }
0x128e   :  { %v2092_v15 = vpop.eup %2091 }
0x128f   :  { %1376 = vrot.lane.b32.xlu0 %v2092_v15, %s2109_s7 }
0x1292   :  { %v2094_v18 = vpop.eup %2093 }
0x1293   :  { %1378 = vrot.lane.b32.xlu1 %v2094_v18, %s2109_s7  ;;  %v1719_v18 = vpack.c.bf16 %v2306_v47, %v2306_v47  ;;  %v1725_v47 = vpack.c.bf16 %v2510_v29, %v2510_v29 }
0x1301   :  { %v1377_v25 = vpop.permute.xlu0 %1376 }
0x1302   :  { %v2643_v27 = vmul.f32 %v1377_v25, %v1338_v58 }
0x1304   :  { %1396 = vrot.lane.b32.xlu0 %v2643_v27, %s2110_s21  ;;  %v1729_v29 = vpack.c.bf16 %v2643_v27, %v2643_v27 }
0x1305   :  { %v1379_v32 = vpop.permute.xlu1 %1378 }
0x1306   :  { %v2647_v34 = vmul.f32 %v1379_v32, %v1339_v62  ;;  %v1723_v32 = vpack.c.bf16 %v2442_v33, %v2442_v33 }
0x1308   :  { %1398 = vrot.lane.b32.xlu1 %v2647_v34, %s2110_s21  ;;  %1386 = vrot.lane.b32.xlu0 %v1370_v10, %s2111_s22  ;;  %v1730_v31 = vpack.c.bf16 %v2647_v34, %v2647_v34 }
0x130c   :  { %1388 = vrot.lane.b32.xlu1 %v1371_v13, %s2111_s22 }
0x1376   :  { %v1397_v0 = vpop.permute.xlu0 %1396 }
0x1377   :  { %1402 = vst.msk [vmem:[#allocation2] sm:$0xff] %vm21_vm0, %v1397_v0 }
0x137a   :  { %v1399_v36 = vpop.permute.xlu1 %1398  ;;  %v1387_v37 = vpop.permute.xlu0 %1386 }
0x137b   :  { %1403 = vst.msk [vmem:[#allocation2 + $0x8] sm:$0xff] %vm21_vm0, %v1399_v36  ;;  %1392 = vst.msk [vmem:[#allocation3] sm:$0xff] %vm21_vm0, %v1387_v37  ;;  %v1724_v36 = vpack.c.bf16 %v2447_v35, %v2447_v35 }
0x137e   :  { %v1389_v38 = vpop.permute.xlu1 %1388  ;;  %v1422_v40 = vld [vmem:[#allocation2] sm:$0xff] }
0x137f   :  { %1393 = vst.msk [vmem:[#allocation3 + $0x8] sm:$0xff] %vm21_vm0, %v1389_v38 }
0x1382   :  { %v1423_v42 = vld [vmem:[#allocation2 + $0x8] sm:$0xff]  ;;  %v1540_v1 = vld [vmem:[#allocation3] sm:$0xff] }
0x1383   :  { %v1424_v43 = vpack.c.bf16 %v1423_v42, %v1422_v40 }
0x1385   :  { %1962 = vmatmul.mubr.bf16.vlgmr.msra.gmra.mxu1 %v1424_v43 }
0x1386   :  { %v1541_v2 = vld [vmem:[#allocation3 + $0x8] sm:$0xff] }
0x1445   :  { %v1523_v45 = vpop.f32.mrf.mxu1 }
0x1446   :  { %v1530_v46 = vadd.f32 %v1705_v44, %v1523_v45 }
0x1447   :  { %v1963_v48 = vpop.f32.mrf.mxu1 }
0x1448   :  { %v1532_v51 = vmul.f32 %v1530_v46, %v2186_v17 }
0x1449   :  { %v1526_v52 = vpop.f32.mrf.mxu1 }
0x144a   :  { %2095 = vtanh.f32 %v1532_v51  ;;  %v1531_v53 = vadd.f32 %v1706_v50, %v1526_v52 }
0x144b   :  { %v1964_v54 = vpop.f32.mrf.mxu1 }
0x144c   :  { %v1533_v55 = vmul.f32 %v1531_v53, %v2186_v17 }
0x144e   :  { %2097 = vtanh.f32 %v1533_v55 }
0x1457   :  { %v2096_v56 = vpop.eup %2095 }
0x1458   :  { %v1536_v58 = vmul.f32 %v2096_v56, %v2186_v17 }
0x145a   :  { %v1538_v60 = vadd.f32 %v1536_v58, %v2195_v28 }
0x145b   :  { %v2098_v61 = vpop.eup %2097 }
0x145c   :  { %1554 = vrot.lane.b32.xlu0 %v1538_v60, %s2108_s30  ;;  %v1537_v62 = vmul.f32 %v2098_v61, %v2186_v17 }
0x145e   :  { %v1539_v63 = vadd.f32 %v1537_v62, %v2195_v28 }
0x1460   :  { %1556 = vrot.lane.b32.xlu1 %v1539_v63, %s2108_s30  ;;  %1544 = vrot.lane.b32.xlu0 %v1540_v1, %s2105_s17 }
0x1464   :  { %1546 = vrot.lane.b32.xlu1 %v1541_v2, %s2105_s17 }
0x14ce   :  { %v1555_v3 = vpop.permute.xlu0 %1554 }
0x14cf   :  { %v1560_v4 = vmul.f32 %v1555_v3, %v1538_v60 }
0x14d1   :  { %1564 = vrot.lane.b32.xlu0 %v1560_v4, %s2105_s17 }
0x14d2   :  { %v1557_v5 = vpop.permute.xlu1 %1556  ;;  %v1545_v7 = vpop.permute.xlu0 %1544 }
0x14d3   :  { %v1561_v6 = vmul.f32 %v1557_v5, %v1539_v63  ;;  %v1550_v17 = vmul.f32 %v1545_v7, %v1538_v60 }
0x14d5   :  { %1566 = vrot.lane.b32.xlu1 %v1561_v6, %s2105_s17 }
0x14d6   :  { %v1547_v8 = vpop.permute.xlu1 %1546 }
0x14d7   :  { %v1551_v10 = vmul.f32 %v1547_v8, %v1539_v63 }
0x1543   :  { %v1565_v28 = vpop.permute.xlu0 %1564 }
0x1544   :  { %v1570_v9 = vadd.f32 %v1565_v28, %v1550_v17 }
0x1546   :  { %2099 = vtanh.f32 %v1570_v9 }
0x1547   :  { %v1567_v11 = vpop.permute.xlu1 %1566 }
0x1548   :  { %v1571_v12 = vadd.f32 %v1567_v11, %v1551_v10 }
0x154a   :  { %2101 = vtanh.f32 %v1571_v12 }
0x1553   :  { %v2100_v13 = vpop.eup %2099 }
0x1554   :  { %1576 = vrot.lane.b32.xlu0 %v2100_v13, %s2109_s7 }
0x1557   :  { %v2102_v15 = vpop.eup %2101 }
0x1558   :  { %1578 = vrot.lane.b32.xlu1 %v2102_v15, %s2109_s7  ;;  %214 = vrot.lane.b32.xlu0 %v1717_v14, %s2110_s21 }
0x155c   :  { %216 = vrot.lane.b32.xlu1 %v1718_v16, %s2110_s21  ;;  %414 = vrot.lane.b32.xlu0 %v1719_v18, %s2108_s30 }
0x1560   :  { %416 = vrot.lane.b32.xlu1 %v1720_v19, %s2108_s30  ;;  %614 = vrot.lane.b32.xlu0 %v1721_v57, %s2111_s22 }
0x1564   :  { %616 = vrot.lane.b32.xlu1 %v1722_v59, %s2111_s22  ;;  %1010 = vrot.lane.b32.xlu0 %v1725_v47, %s2105_s17 }
0x1568   :  { %1012 = vrot.lane.b32.xlu1 %v1726_v49, %s2105_s17  ;;  %1210 = vrot.lane.b32.xlu0 %v1727_v39, %s2109_s7 }
0x156c   :  { %1212 = vrot.lane.b32.xlu1 %v1728_v41, %s2109_s7  ;;  %1410 = vrot.lane.b32.xlu0 %v1729_v29, %s2112_s0  ;;  %s2113_s7 = smov 32  }
0x1570   :  { %1412 = vrot.lane.b32.xlu1 %v1730_v31, %s2112_s0  ;;  %1586 = vrot.lane.b32.xlu0 %v1570_v9, %s2111_s22 }
0x1574   :  { %1588 = vrot.lane.b32.xlu1 %v1571_v12, %s2111_s22 }
0x15c6   :  { %v1577_v26 = vpop.permute.xlu0 %1576 }
0x15c7   :  { %v1582_v20 = vmul.f32 %v1577_v26, %v1538_v60 }
0x15c9   :  { %1596 = vrot.lane.b32.xlu0 %v1582_v20, %s2110_s21  ;;  %v1731_v22 = vpack.c.bf16 %v1582_v20, %v1582_v20 }
0x15ca   :  { %v1579_v30 = vpop.permute.xlu1 %1578  ;;  %v215_v21 = vpop.permute.xlu0 %214 }
0x15cb   :  { %v1583_v23 = vmul.f32 %v1579_v30, %v1539_v63  ;;  %221 = vst.msk [vmem:[%s2773_s2] sm:$0xf] %vm220_vm5, %v215_v21 }
0x15cd   :  { %1598 = vrot.lane.b32.xlu1 %v1583_v23, %s2110_s21  ;;  %1610 = vrot.lane.b32.xlu0 %v1731_v22, %s2113_s7  ;;  %v1732_v27 = vpack.c.bf16 %v1583_v23, %v1583_v23 }
0x15ce   :  { %v217_v24 = vpop.permute.xlu1 %216  ;;  %v415_v25 = vpop.permute.xlu0 %414 }
0x15cf   :  { %222 = vst.msk [vmem:[%s2773_s2 + $0x4] sm:$0xf] %vm220_vm5, %v217_v24 }
0x15d0   :  { %421 = vst.msk [vmem:[%s2773_s2] sm:$0xf] %vm420_vm6, %v415_v25 }
0x15d1   :  { %1612 = vrot.lane.b32.xlu1 %v1732_v27, %s2113_s7 }
0x15d2   :  { %v417_v34 = vpop.permute.xlu1 %416  ;;  %v615_v0 = vpop.permute.xlu0 %614 }
0x15d3   :  { %422 = vst.msk [vmem:[%s2773_s2 + $0x4] sm:$0xf] %vm420_vm6, %v417_v34 }
0x15d4   :  { %621 = vst.msk [vmem:[%s2773_s2] sm:$0xf] %vm620_vm7, %v615_v0 }
0x15d5   :  { %817 = vst.msk [vmem:[%s2773_s2] sm:$0xf] %vm816_vm8, %v1723_v32 }
0x15d6   :  { %v617_v37 = vpop.permute.xlu1 %616  ;;  %v1011_v33 = vpop.permute.xlu0 %1010 }
0x15d7   :  { %622 = vst.msk [vmem:[%s2773_s2 + $0x4] sm:$0xf] %vm620_vm7, %v617_v37 }
0x15d8   :  { %1017 = vst.msk [vmem:[%s2773_s2] sm:$0xf] %vm1016_vm9, %v1011_v33 }
0x15d9   :  { %818 = vst.msk [vmem:[%s2773_s2 + $0x4] sm:$0xf] %vm816_vm8, %v1724_v36 }
0x15da   :  { %v1013_v38 = vpop.permute.xlu1 %1012  ;;  %v1211_v40 = vpop.permute.xlu0 %1210 }
0x15db   :  { %1018 = vst.msk [vmem:[%s2773_s2 + $0x4] sm:$0xf] %vm1016_vm9, %v1013_v38 }
0x15dc   :  { %1217 = vst.msk [vmem:[%s2773_s2] sm:$0xf] %vm1216_vm10, %v1211_v40 }
0x15de   :  { %v1213_v35 = vpop.permute.xlu1 %1212  ;;  %v1411_v42 = vpop.permute.xlu0 %1410 }
0x15df   :  { %1218 = vst.msk [vmem:[%s2773_s2 + $0x4] sm:$0xf] %vm1216_vm10, %v1213_v35 }
0x15e0   :  { %1417 = vst.msk [vmem:[%s2773_s2] sm:$0xf] %vm1416_vm11, %v1411_v42 }
0x15e2   :  { %v1413_v43 = vpop.permute.xlu1 %1412  ;;  %v1587_v44 = vpop.permute.xlu0 %1586 }
0x15e3   :  { %1418 = vst.msk [vmem:[%s2773_s2 + $0x4] sm:$0xf] %vm1416_vm11, %v1413_v43 }
0x15e4   :  { %1592 = vst.msk [vmem:[#allocation3] sm:$0xff] %vm21_vm0, %v1587_v44 }
0x15e6   :  { %v1589_v45 = vpop.permute.xlu1 %1588 }
0x15e7   :  { %1593 = vst.msk [vmem:[#allocation3 + $0x8] sm:$0xff] %vm21_vm0, %v1589_v45 }
0x163b   :  { %v1597_v46 = vpop.permute.xlu0 %1596 }
0x163c   :  { %1602 = vst.msk [vmem:[#allocation2] sm:$0xff] %vm21_vm0, %v1597_v46 }
0x163f   :  { %v1599_v48 = vpop.permute.xlu1 %1598  ;;  %v1611_v50 = vpop.permute.xlu0 %1610 }
0x1640   :  { %1603 = vst.msk [vmem:[#allocation2 + $0x8] sm:$0xff] %vm21_vm0, %v1599_v48 }
0x1641   :  { %1617 = vst.msk [vmem:[%s2773_s2] sm:$0xf] %vm1616_vm12, %v1611_v50 }
0x1643   :  { %v1613_v51 = vpop.permute.xlu1 %1612 }
0x1644   :  { %1618 = vst.msk [vmem:[%s2773_s2 + $0x4] sm:$0xf] %vm1616_vm12, %v1613_v51 }

// kernel: hier_rnn_forward.9
= control target key start
LH: loop header
LB: loop body
LE: loop exit
PB: predicated region body
PF: predicated region fallthrough
CT: control target
= control target key end

     0   :  { %v180_v0 = vmov 0.0   ;;  %vm181_vm0 = vmmov 0   ;;  %s235_s1 = inlined_call_operand.vmem [shape: bf16[128,128], index: 1, kind: input, shape index: {}]   ;;  %s236_s0 = inlined_call_operand.vmem [shape: bf16[8,128], index: 0, kind: input, shape index: {}]   ;;  %s237_s2 = inlined_call_operand.vmem [shape: f32[1,128], index: 2, kind: input, shape index: {}]   ;;  %s238_s3 = inlined_call_operand.vmem [shape: f32[8,128], index: 3, kind: output, shape index: {}]  }
   0x1   :  { %150 = vmatprep.subr.bf16.mxu0 %v180_v0  ;;  %v172_v1 = vld [vmem:[%s235_s1 + $0x38] sm:$0xff]   ;;  %166 = vmatprep.mubr.msk.bf16.mxu0 %vm181_vm0, %v180_v0  ;;  %v173_v2 = vld [vmem:[%s235_s1 + $0x30] sm:$0xff]   ;;  %v174_v3 = vld [vmem:[%s235_s1 + $0x28] sm:$0xff]  }
   0x2   :  { %151 = vmatpush3.bf16.msra.mxu0 %v172_v1  ;;  %v175_v4 = vld [vmem:[%s235_s1 + $0x20] sm:$0xff]   ;;  %v176_v5 = vld [vmem:[%s235_s1 + $0x18] sm:$0xff]   ;;  %v177_v6 = vld [vmem:[%s235_s1 + $0x10] sm:$0xff]  }
   0x3   :  { %152 = vmatprep.subr.bf16.mxu0 %v180_v0  ;;  %v178_v7 = vld [vmem:[%s235_s1 + $0x8] sm:$0xff]   ;;  %v179_v8 = vld [vmem:[%s235_s1] sm:$0xff]  }
   0x4   :  { %v15_v9 = vld [vmem:[%s236_s0] sm:$0xf] }
   0x5   :  { %v132_v10 = vld [vmem:[%s237_s2] ss:$0 sm:$0xff] }
   0x6   :  { %153 = vmatpush3.bf16.msra.mxu0 %v173_v2 }
   0x7   :  { %154 = vmatprep.subr.bf16.mxu0 %v180_v0 }
   0xa   :  { %155 = vmatpush3.bf16.msra.mxu0 %v174_v3 }
   0xb   :  { %156 = vmatprep.subr.bf16.mxu0 %v180_v0 }
   0xe   :  { %157 = vmatpush3.bf16.msra.mxu0 %v175_v4 }
   0xf   :  { %158 = vmatprep.subr.bf16.mxu0 %v180_v0 }
  0x12   :  { %159 = vmatpush3.bf16.msra.mxu0 %v176_v5 }
  0x13   :  { %160 = vmatprep.subr.bf16.mxu0 %v180_v0 }
  0x16   :  { %161 = vmatpush3.bf16.msra.mxu0 %v177_v6 }
  0x17   :  { %162 = vmatprep.subr.bf16.mxu0 %v180_v0 }
  0x1a   :  { %163 = vmatpush3.bf16.msra.mxu0 %v178_v7 }
  0x1b   :  { %164 = vmatprep.subr.bf16.mxu0 %v180_v0 }
  0x1e   :  { %165 = vmatpush3.bf16.msra.mxu0 %v179_v8 }
  0x21   :  { %167 = vmatmul.mubr.bf16.vlgmr.msra.gmra.mxu0 %v15_v9 }
  0xe1   :  { %v121_v11 = vpop.f32.mrf.mxu0 }
  0xe2   :  { %v122_v12 = vadd.f32 %v132_v10, %v121_v11 }
  0xe3   :  { %v168_v13 = vpop.f32.mrf.mxu0 }
  0xe4   :  { %127 = vst [vmem:[%s238_s3] sm:$0xff] %v122_v12 }
  0xe5   :  { %v124_v14 = vpop.f32.mrf.mxu0 }
  0xe7   :  { %v169_v15 = vpop.f32.mrf.mxu0 }

</bundles_post_ra>
